<compile_context>
chip_gen: v7x
topology: tpu7x:2x2x1
jax: 0.10.0
libtpu: 0.0.40
codegen_flags: <defaults>
</compile_context>

<pallas_src>
import functools

import jax
import jax.numpy as jnp
from jax.experimental import pallas as pl
from jax.experimental.pallas import tpu as pltpu

BN_EPS = 1e-5
LANE = 128


# ---------------------------------------------------------------------------
# Pallas kernels: tiled matmul + BN affine (+ residual) (+ ReLU)
# ---------------------------------------------------------------------------
def _mm_bn_kernel(x_ref, w_ref, scale_ref, shift_ref, o_ref, acc_ref, *, relu):
    """Multi-K-step path: f32 VMEM accumulator, finalize on the last K step."""
    @pl.when(pl.program_id(2) == 0)
    def _():
        acc_ref[...] = jnp.zeros_like(acc_ref)

    acc_ref[...] += jnp.dot(x_ref[...], w_ref[...],
                            preferred_element_type=jnp.float32)

    @pl.when(pl.program_id(2) == pl.num_programs(2) - 1)
    def _():
        y = acc_ref[...] * scale_ref[...] + shift_ref[...]
        if relu:
            y = jnp.maximum(y, 0.0)
        o_ref[...] = y.astype(o_ref.dtype)


def _mm_bn_add_kernel(x_ref, w_ref, scale_ref, shift_ref, res_ref,
                      o_ref, acc_ref):
    """Multi-K-step path with fused residual add + ReLU."""
    @pl.when(pl.program_id(2) == 0)
    def _():
        acc_ref[...] = jnp.zeros_like(acc_ref)

    acc_ref[...] += jnp.dot(x_ref[...], w_ref[...],
                            preferred_element_type=jnp.float32)

    @pl.when(pl.program_id(2) == pl.num_programs(2) - 1)
    def _():
        y = (acc_ref[...] * scale_ref[...] + shift_ref[...]
             + res_ref[...].astype(jnp.float32))
        o_ref[...] = jnp.maximum(y, 0.0).astype(o_ref.dtype)


def _mm_bn_single_kernel(x_ref, w_ref, scale_ref, shift_ref, o_ref, *, relu):
    """Single-K-step fast path: no scratch, no pl.when gates."""
    acc = jnp.dot(x_ref[...], w_ref[...], preferred_element_type=jnp.float32)
    y = acc * scale_ref[...] + shift_ref[...]
    if relu:
        y = jnp.maximum(y, 0.0)
    o_ref[...] = y.astype(o_ref.dtype)


def _mm_bn_add_single_kernel(x_ref, w_ref, scale_ref, shift_ref, res_ref, o_ref):
    """Single-K-step fast path with fused residual add + ReLU."""
    acc = jnp.dot(x_ref[...], w_ref[...], preferred_element_type=jnp.float32)
    y = acc * scale_ref[...] + shift_ref[...] + res_ref[...].astype(jnp.float32)
    o_ref[...] = jnp.maximum(y, 0.0).astype(o_ref.dtype)


# ---------------------------------------------------------------------------
# Tiling helpers
# ---------------------------------------------------------------------------
def _round_up(x, m):
    return (x + m - 1) // m * m


def _largest_aligned_divisor(total, cap):
    """Largest multiple of 128 that divides `total` and is <= cap (total % 128 == 0)."""
    best = LANE
    t = LANE
    cap = min(cap, total)
    while t <= cap:
        if total % t == 0:
            best = t
        t += LANE
    return best


def _pad2(a, rows, cols):
    r, c = a.shape
    if r == rows and c == cols:
        return a
    return jnp.pad(a, ((0, rows - r), (0, cols - c)))


def fused_matmul_bn(x2d, w2d, scale, shift, residual=None, relu=True):
    """y = maybe_relu((x2d @ w2d) * scale + shift [+ residual]) in one tiled kernel."""
    M, K = x2d.shape
    Kw, Cout = w2d.shape
    assert K == Kw

    # ----- tile / padded-extent selection (all (8,128)-aligned) -----
    Mp8 = _round_up(M, 8)
    Kp = _round_up(K, LANE)
    Np = _round_up(Cout, LANE)
    if Mp8 <= 512:
        tm, Mp = Mp8, Mp8
    else:
        tm = 512
        Mp = _round_up(M, tm)
    tk = _largest_aligned_divisor(Kp, 2048)   # single pass for all 1x1 convs
    tn = _largest_aligned_divisor(Np, 512)    # lane-dense, unmasked stores
    grid_k = Kp // tk

    # bf16 operands (f32 accumulate on the MXU); zero-pad to tile-aligned extents.
    x_p = _pad2(x2d.astype(jnp.bfloat16), Mp, Kp)
    w_p = _pad2(w2d.astype(jnp.bfloat16), Kp, Np)
    scale_p = _pad2(scale.reshape(1, Cout).astype(jnp.float32), 1, Np)
    shift_p = _pad2(shift.reshape(1, Cout).astype(jnp.float32), 1, Np)

    res_p = None
    if residual is not None:
        assert relu, "residual path is always followed by ReLU in Bottleneck"
        res_p = _pad2(residual.reshape(M, Cout).astype(jnp.bfloat16), Mp, Np)

    if grid_k == 1:
        # ---- single-pass fast path: 2-D fully parallel grid, no scratch ----
        grid = (Mp // tm, Np // tn)
        dims = ("parallel", "parallel")
        x_spec = pl.BlockSpec((tm, Kp), lambda i, j: (i, 0))
        w_spec = pl.BlockSpec((Kp, tn), lambda i, j: (0, j))
        vec_spec = pl.BlockSpec((1, tn), lambda i, j: (0, j))
        out_spec = pl.BlockSpec((tm, tn), lambda i, j: (i, j))
        scratch = []
        if residual is None:
            kernel = functools.partial(_mm_bn_single_kernel, relu=relu)
            in_specs = [x_spec, w_spec, vec_spec, vec_spec]
            args = (x_p, w_p, scale_p, shift_p)
        else:
            kernel = _mm_bn_add_single_kernel
            res_spec = pl.BlockSpec((tm, tn), lambda i, j: (i, j))
            in_specs = [x_spec, w_spec, vec_spec, vec_spec, res_spec]
            args = (x_p, w_p, scale_p, shift_p, res_p)
    else:
        # ---- multi-K path: reduction axis last, f32 accumulator in VMEM ----
        grid = (Mp // tm, Np // tn, grid_k)
        dims = ("parallel", "parallel", "arbitrary")
        x_spec = pl.BlockSpec((tm, tk), lambda i, j, k: (i, k))
        w_spec = pl.BlockSpec((tk, tn), lambda i, j, k: (k, j))
        vec_spec = pl.BlockSpec((1, tn), lambda i, j, k: (0, j))
        out_spec = pl.BlockSpec((tm, tn), lambda i, j, k: (i, j))
        scratch = [pltpu.VMEM((tm, tn), jnp.float32)]
        if residual is None:
            kernel = functools.partial(_mm_bn_kernel, relu=relu)
            in_specs = [x_spec, w_spec, vec_spec, vec_spec]
            args = (x_p, w_p, scale_p, shift_p)
        else:
            kernel = _mm_bn_add_kernel
            res_spec = pl.BlockSpec((tm, tn), lambda i, j, k: (i, j))
            in_specs = [x_spec, w_spec, vec_spec, vec_spec, res_spec]
            args = (x_p, w_p, scale_p, shift_p, res_p)

    y = pl.pallas_call(
        kernel,
        out_shape=jax.ShapeDtypeStruct((Mp, Np), jnp.bfloat16),
        grid=grid,
        in_specs=in_specs,
        out_specs=out_spec,
        scratch_shapes=scratch,
        compiler_params=pltpu.CompilerParams(
            dimension_semantics=dims,
            vmem_limit_bytes=32 * 1024 * 1024,
        ),
    )(*args)
    return y[:M, :Cout]


# ---------------------------------------------------------------------------
# Conv / BN / pooling glue (im2col + reshapes in plain JAX, matmul in Pallas)
# ---------------------------------------------------------------------------
def conv_bn(x, w, bn, *, stride=1, padding=0, dilation=1, relu=True, residual=None):
    """x: (N,H,W,Cin) NHWC.  w: (Cout,Cin,kh,kw) torch layout.  bn: dict."""
    N, H, W, Cin = x.shape
    Cout, Cin_w, kh, kw = w.shape
    assert Cin == Cin_w

    scale = bn["gamma"] / jnp.sqrt(bn["var"] + BN_EPS)
    shift = bn["beta"] - bn["mean"] * scale

    x = x.astype(jnp.bfloat16)

    if kh == 1 and kw == 1 and stride == 1 and padding == 0:
        Hout, Wout = H, W
        cols = x.reshape(N * H * W, Cin)
        wmat = w[:, :, 0, 0].T  # (Cin, Cout)
    else:
        xp = jnp.pad(x, ((0, 0), (padding, padding), (padding, padding), (0, 0)))
        Hout = (H + 2 * padding - dilation * (kh - 1) - 1) // stride + 1
        Wout = (W + 2 * padding - dilation * (kw - 1) - 1) // stride + 1
        patches = []
        for di in range(kh):
            for dj in range(kw):
                hi, wi = di * dilation, dj * dilation
                patches.append(
                    xp[:, hi:hi + stride * (Hout - 1) + 1:stride,
                          wi:wi + stride * (Wout - 1) + 1:stride, :])
        cols = jnp.concatenate(patches, axis=-1).reshape(N * Hout * Wout,
                                                         kh * kw * Cin)
        wmat = jnp.transpose(w, (2, 3, 1, 0)).reshape(kh * kw * Cin, Cout)

    res2d = None
    if residual is not None:
        assert residual.shape == (N, Hout, Wout, Cout)
        res2d = residual.reshape(N * Hout * Wout, Cout)

    y = fused_matmul_bn(cols, wmat, scale, shift, residual=res2d, relu=relu)
    return y.reshape(N, Hout, Wout, Cout)


def avg_pool(x, s):
    """nn.AvgPool2d(s): kernel=s, stride=s, no padding (NHWC)."""
    if s <= 1:
        return x
    N, H, W, C = x.shape
    y = x.astype(jnp.float32).reshape(N, H // s, s, W // s, s, C).mean(axis=(2, 4))
    return y.astype(jnp.bfloat16)


# ---------------------------------------------------------------------------
# Module forward (mirrors Bottleneck / ModifiedResNet / D2ModifiedResNet)
# ---------------------------------------------------------------------------
def bottleneck_forward(p, x, stride, dilation):
    if stride > 1:
        assert "downsample" in p, "stride>1 requires a downsample branch"
    out = conv_bn(x, p["conv1"], p["bn1"], relu=True)                                   # 1x1
    out = conv_bn(out, p["conv2"], p["bn2"], padding=dilation, dilation=dilation,
                  relu=True)                                                            # 3x3
    out = avg_pool(out, stride)
    if "downsample" in p:
        identity = avg_pool(x, stride)
        identity = conv_bn(identity, p["downsample"]["conv"], p["downsample"]["bn"],
                           relu=False)                                                  # 1x1
    else:
        identity = x
    # bn3(conv3(out)) + identity, then ReLU — fused in one Pallas kernel.
    out = conv_bn(out, p["conv3"], p["bn3"], relu=True, residual=identity)
    return out


def stem_forward(p, x, stride0):
    x = conv_bn(x, p["conv1"], p["bn1"], stride=2, padding=1, relu=True)
    x = conv_bn(x, p["conv2"], p["bn2"], padding=1, relu=True)
    x = conv_bn(x, p["conv3"], p["bn3"], padding=1, relu=True)
    x = avg_pool(x, stride0)
    return x


def modified_resnet_forward(params, x_nchw, layers, strides, multi_grid):
    x = jnp.transpose(x_nchw, (0, 2, 3, 1)).astype(jnp.bfloat16)   # NCHW -> NHWC
    x = stem_forward(params["stem"], x, strides[0])
    outputs = {}
    names = ["res2", "res3", "res4", "res5"]
    for li in range(4):
        blocks = layers[li]
        dilations = multi_grid if li == 3 else [1] * blocks
        for bi in range(blocks):
            stride = strides[li + 1] if bi == 0 else 1
            x = bottleneck_forward(params[f"layer{li + 1}"][bi], x, stride,
                                   dilations[bi])
        # NHWC -> NCHW; external interface stays f32 (module weights are f32).
        outputs[names[li]] = jnp.transpose(x, (0, 3, 1, 2)).astype(jnp.float32)
    return outputs


def d2_modified_resnet_forward(params, x, layers, strides, multi_grid, out_features):
    y = modified_resnet_forward(params, x, layers, strides, multi_grid)
    return {k: y[k] for k in y if k in out_features}


# ---------------------------------------------------------------------------
# Deterministic parameter initialization (shapes follow the PyTorch __init__)
# ---------------------------------------------------------------------------
class _KeyGen:
    def __init__(self, key):
        self._key = key
        self._i = 0

    def __call__(self):
        self._i += 1
        return jax.random.fold_in(self._key, self._i)


def _conv_init(key, cout, cin, k):
    fan_in = cin * k * k
    return jax.random.normal(key, (cout, cin, k, k), jnp.float32) * (fan_in ** -0.5)


def _bn_init(key, c):
    k1, k2, k3, k4 = jax.random.split(key, 4)
    return {
        "gamma": jax.random.uniform(k1, (c,), jnp.float32, 0.5, 1.5),
        "beta": 0.1 * jax.random.normal(k2, (c,), jnp.float32),
        "mean": 0.1 * jax.random.normal(k3, (c,), jnp.float32),
        "var": jax.random.uniform(k4, (c,), jnp.float32, 0.5, 1.5),
    }


def _bottleneck_init(kg, inplanes, planes, stride):
    exp = 4
    p = {
        "conv1": _conv_init(kg(), planes, inplanes, 1),
        "bn1": _bn_init(kg(), planes),
        "conv2": _conv_init(kg(), planes, planes, 3),
        "bn2": _bn_init(kg(), planes),
        "conv3": _conv_init(kg(), planes * exp, planes, 1),
        "bn3": _bn_init(kg(), planes * exp),
    }
    if stride > 1 or inplanes != planes * exp:
        p["downsample"] = {
            "conv": _conv_init(kg(), planes * exp, inplanes, 1),
            "bn": _bn_init(kg(), planes * exp),
        }
    return p


def init_modified_resnet(key, layers, width, strides):
    kg = _KeyGen(key)
    params = {
        "stem": {
            "conv1": _conv_init(kg(), width // 2, 3, 3),
            "bn1": _bn_init(kg(), width // 2),
            "conv2": _conv_init(kg(), width // 2, width // 2, 3),
            "bn2": _bn_init(kg(), width // 2),
            "conv3": _conv_init(kg(), width, width // 2, 3),
            "bn3": _bn_init(kg(), width),
        }
    }
    inplanes = width
    for li, mult in enumerate([1, 2, 4, 8]):
        planes = width * mult
        blocks = layers[li]
        lstride = strides[li + 1]
        blk_params = []
        for bi in range(blocks):
            s = lstride if bi == 0 else 1
            inp = inplanes if bi == 0 else planes * 4
            blk_params.append(_bottleneck_init(kg, inp, planes, s))
        params[f"layer{li + 1}"] = blk_params
        inplanes = planes * 4
    return params


# ---------------------------------------------------------------------------
if __name__ == "__main__":
    key = jax.random.PRNGKey(0)
    kx, kp = jax.random.split(key)

    # Synthetic small config:
    #   depth=18 -> num_blocks_per_stage=[2,2,2,2]
    #   num_groups=1, width_per_group=8 -> width (bottleneck_channels) = 8
    layers = [2, 2, 2, 2]
    width = 8
    strides = [2, 1, 2, 2, 2]
    multi_grid = [1, 1, 1]
    out_features = ("res2", "res3", "res4", "res5")

    params = init_modified_resnet(kp, layers, width, strides)

    # Input (N, C, H, W) with H, W multiples of size_divisibility (32).
    x = jax.random.normal(kx, (2, 3, 32, 32), jnp.float32)

    @jax.jit
    def run(params, x):
        return d2_modified_resnet_forward(params, x, layers, strides, multi_grid,
                                          out_features)

    out = run(params, x)
    out = jax.block_until_ready(out)

    assert out["res2"].shape == (2, width * 4, 8, 8)
    assert out["res3"].shape == (2, width * 8, 4, 4)
    assert out["res4"].shape == (2, width * 16, 2, 2)
    assert out["res5"].shape == (2, width * 32, 1, 1)
    assert all(jnp.isfinite(v).all() for v in out.values())

    print("KERNEL_OK")
</pallas_src>

<mosaic_0001>
module attributes {stable_mosaic.version = 11 : i64} {
  func.func @_mm_bn_single_kernel(%arg0: i32, %arg1: i32, %arg2: memref<512x128xbf16, #tpu.memory_space<vmem>>, %arg3: memref<128x128xbf16, #tpu.memory_space<vmem>>, %arg4: memref<1x128xf32, #tpu.memory_space<vmem>>, %arg5: memref<1x128xf32, #tpu.memory_space<vmem>>, %arg6: memref<512x128xbf16, #tpu.memory_space<vmem>>) attributes {dimension_semantics = [#tpu.dimension_semantics<parallel>, #tpu.dimension_semantics<parallel>], iteration_bounds = array<i64: 1, 1>, scalar_prefetch = 0 : i64, scratch_operands = 0 : i64, tpu.core_type = #tpu.core_type<tc>, window_params = [{transform_indices = @transform_0, window_bounds = array<i64: 512, 128>}, {transform_indices = @transform_1, window_bounds = array<i64: 128, 128>}, {transform_indices = @transform_2, window_bounds = array<i64: 1, 128>}, {transform_indices = @transform_3, window_bounds = array<i64: 1, 128>}, {transform_indices = @transform_4, window_bounds = array<i64: 512, 128>}]} {
    %c0 = arith.constant 0 : index
    %c0_0 = arith.constant 0 : index
    %0 = vector.load %arg2[%c0, %c0_0] : memref<512x128xbf16, #tpu.memory_space<vmem>>, vector<512x128xbf16>
    %c0_1 = arith.constant 0 : index
    %c0_2 = arith.constant 0 : index
    %1 = vector.load %arg3[%c0_1, %c0_2] : memref<128x128xbf16, #tpu.memory_space<vmem>>, vector<128x128xbf16>
    %cst = arith.constant dense<0.000000e+00> : vector<512x128xf32>
    %2 = tpu.matmul %0, %1, %cst {dimension_numbers = #tpu.dot_dimension_numbers<[1], [0], [0], [1], [0, 0, 1, 1], [], []>} : vector<512x128xbf16>, vector<128x128xbf16>, vector<512x128xf32> -> vector<512x128xf32>
    %c0_3 = arith.constant 0 : index
    %c0_4 = arith.constant 0 : index
    %3 = vector.load %arg4[%c0_3, %c0_4] : memref<1x128xf32, #tpu.memory_space<vmem>>, vector<1x128xf32>
    %4 = vector.broadcast %3 : vector<1x128xf32> to vector<512x128xf32>
    %5 = arith.mulf %2, %4 : vector<512x128xf32>
    %c0_5 = arith.constant 0 : index
    %c0_6 = arith.constant 0 : index
    %6 = vector.load %arg5[%c0_5, %c0_6] : memref<1x128xf32, #tpu.memory_space<vmem>>, vector<1x128xf32>
    %7 = vector.broadcast %6 : vector<1x128xf32> to vector<512x128xf32>
    %8 = arith.addf %5, %7 : vector<512x128xf32>
    %cst_7 = arith.constant 0.000000e+00 : f32
    %9 = vector.broadcast %cst_7 : f32 to vector<512x128xf32>
    %10 = arith.maximumf %8, %9 : vector<512x128xf32>
    %11 = arith.truncf %10 : vector<512x128xf32> to vector<512x128xbf16>
    %c0_8 = arith.constant 0 : index
    %c0_9 = arith.constant 0 : index
    %12 = vector.load %arg6[%c0_8, %c0_9] : memref<512x128xbf16, #tpu.memory_space<vmem>>, vector<512x128xbf16>
    tpu.vector_store %arg6[%c0_8, %c0_9], %11 {strides = array<i32>} : memref<512x128xbf16, #tpu.memory_space<vmem>>, vector<512x128xbf16>,
    return
  }
  func.func @transform_0(%arg0: i32, %arg1: i32) -> (i32, i32) {
    %c0_i32 = arith.constant 0 : i32
    %c0_i32_0 = arith.constant 0 : i32
    return %arg0, %c0_i32 : i32, i32
  }
  func.func @transform_1(%arg0: i32, %arg1: i32) -> (i32, i32) {
    %c0_i32 = arith.constant 0 : i32
    %c0_i32_0 = arith.constant 0 : i32
    return %c0_i32, %arg1 : i32, i32
  }
  func.func @transform_2(%arg0: i32, %arg1: i32) -> (i32, i32) {
    %c0_i32 = arith.constant 0 : i32
    %c0_i32_0 = arith.constant 0 : i32
    return %c0_i32, %arg1 : i32, i32
  }
  func.func @transform_3(%arg0: i32, %arg1: i32) -> (i32, i32) {
    %c0_i32 = arith.constant 0 : i32
    %c0_i32_0 = arith.constant 0 : i32
    return %c0_i32, %arg1 : i32, i32
  }
  func.func @transform_4(%arg0: i32, %arg1: i32) -> (i32, i32) {
    %c0_i32 = arith.constant 0 : i32
    return %arg0, %arg1 : i32, i32
  }
}

module attributes {stable_mosaic.version = 11 : i64} {
  func.func @_mm_bn_single_kernel(%arg0: i32, %arg1: i32, %arg2: memref<128x128xbf16, #tpu.memory_space<vmem>>, %arg3: memref<128x128xbf16, #tpu.memory_space<vmem>>, %arg4: memref<1x128xf32, #tpu.memory_space<vmem>>, %arg5: memref<1x128xf32, #tpu.memory_space<vmem>>, %arg6: memref<128x128xbf16, #tpu.memory_space<vmem>>) attributes {dimension_semantics = [#tpu.dimension_semantics<parallel>, #tpu.dimension_semantics<parallel>], iteration_bounds = array<i64: 1, 1>, scalar_prefetch = 0 : i64, scratch_operands = 0 : i64, tpu.core_type = #tpu.core_type<tc>, window_params = [{transform_indices = @transform_0, window_bounds = array<i64: 128, 128>}, {transform_indices = @transform_1, window_bounds = array<i64: 128, 128>}, {transform_indices = @transform_2, window_bounds = array<i64: 1, 128>}, {transform_indices = @transform_3, window_bounds = array<i64: 1, 128>}, {transform_indices = @transform_4, window_bounds = array<i64: 128, 128>}]} {
    %c0 = arith.constant 0 : index
    %c0_0 = arith.constant 0 : index
    %0 = vector.load %arg2[%c0, %c0_0] : memref<128x128xbf16, #tpu.memory_space<vmem>>, vector<128x128xbf16>
    %c0_1 = arith.constant 0 : index
    %c0_2 = arith.constant 0 : index
    %1 = vector.load %arg3[%c0_1, %c0_2] : memref<128x128xbf16, #tpu.memory_space<vmem>>, vector<128x128xbf16>
    %cst = arith.constant dense<0.000000e+00> : vector<128x128xf32>
    %2 = tpu.matmul %0, %1, %cst {dimension_numbers = #tpu.dot_dimension_numbers<[1], [0], [0], [1], [0, 0, 1, 1], [], []>} : vector<128x128xbf16>, vector<128x128xbf16>, vector<128x128xf32> -> vector<128x128xf32>
    %c0_3 = arith.constant 0 : index
    %c0_4 = arith.constant 0 : index
    %3 = vector.load %arg4[%c0_3, %c0_4] : memref<1x128xf32, #tpu.memory_space<vmem>>, vector<1x128xf32>
    %4 = vector.broadcast %3 : vector<1x128xf32> to vector<128x128xf32>
    %5 = arith.mulf %2, %4 : vector<128x128xf32>
    %c0_5 = arith.constant 0 : index
    %c0_6 = arith.constant 0 : index
    %6 = vector.load %arg5[%c0_5, %c0_6] : memref<1x128xf32, #tpu.memory_space<vmem>>, vector<1x128xf32>
    %7 = vector.broadcast %6 : vector<1x128xf32> to vector<128x128xf32>
    %8 = arith.addf %5, %7 : vector<128x128xf32>
    %cst_7 = arith.constant 0.000000e+00 : f32
    %9 = vector.broadcast %cst_7 : f32 to vector<128x128xf32>
    %10 = arith.maximumf %8, %9 : vector<128x128xf32>
    %11 = arith.truncf %10 : vector<128x128xf32> to vector<128x128xbf16>
    %c0_8 = arith.constant 0 : index
    %c0_9 = arith.constant 0 : index
    %12 = vector.load %arg6[%c0_8, %c0_9] : memref<128x128xbf16, #tpu.memory_space<vmem>>, vector<128x128xbf16>
    tpu.vector_store %arg6[%c0_8, %c0_9], %11 {strides = array<i32>} : memref<128x128xbf16, #tpu.memory_space<vmem>>, vector<128x128xbf16>,
    return
  }
  func.func @transform_0(%arg0: i32, %arg1: i32) -> (i32, i32) {
    %c0_i32 = arith.constant 0 : i32
    %c0_i32_0 = arith.constant 0 : i32
    return %arg0, %c0_i32 : i32, i32
  }
  func.func @transform_1(%arg0: i32, %arg1: i32) -> (i32, i32) {
    %c0_i32 = arith.constant 0 : i32
    %c0_i32_0 = arith.constant 0 : i32
    return %c0_i32, %arg1 : i32, i32
  }
  func.func @transform_2(%arg0: i32, %arg1: i32) -> (i32, i32) {
    %c0_i32 = arith.constant 0 : i32
    %c0_i32_0 = arith.constant 0 : i32
    return %c0_i32, %arg1 : i32, i32
  }
  func.func @transform_3(%arg0: i32, %arg1: i32) -> (i32, i32) {
    %c0_i32 = arith.constant 0 : i32
    %c0_i32_0 = arith.constant 0 : i32
    return %c0_i32, %arg1 : i32, i32
  }
  func.func @transform_4(%arg0: i32, %arg1: i32) -> (i32, i32) {
    %c0_i32 = arith.constant 0 : i32
    return %arg0, %arg1 : i32, i32
  }
}

module attributes {stable_mosaic.version = 11 : i64} {
  func.func @_mm_bn_single_kernel(%arg0: i32, %arg1: i32, %arg2: memref<128x128xbf16, #tpu.memory_space<vmem>>, %arg3: memref<128x128xbf16, #tpu.memory_space<vmem>>, %arg4: memref<1x128xf32, #tpu.memory_space<vmem>>, %arg5: memref<1x128xf32, #tpu.memory_space<vmem>>, %arg6: memref<128x128xbf16, #tpu.memory_space<vmem>>) attributes {dimension_semantics = [#tpu.dimension_semantics<parallel>, #tpu.dimension_semantics<parallel>], iteration_bounds = array<i64: 1, 1>, scalar_prefetch = 0 : i64, scratch_operands = 0 : i64, tpu.core_type = #tpu.core_type<tc>, window_params = [{transform_indices = @transform_0, window_bounds = array<i64: 128, 128>}, {transform_indices = @transform_1, window_bounds = array<i64: 128, 128>}, {transform_indices = @transform_2, window_bounds = array<i64: 1, 128>}, {transform_indices = @transform_3, window_bounds = array<i64: 1, 128>}, {transform_indices = @transform_4, window_bounds = array<i64: 128, 128>}]} {
    %c0 = arith.constant 0 : index
    %c0_0 = arith.constant 0 : index
    %0 = vector.load %arg2[%c0, %c0_0] : memref<128x128xbf16, #tpu.memory_space<vmem>>, vector<128x128xbf16>
    %c0_1 = arith.constant 0 : index
    %c0_2 = arith.constant 0 : index
    %1 = vector.load %arg3[%c0_1, %c0_2] : memref<128x128xbf16, #tpu.memory_space<vmem>>, vector<128x128xbf16>
    %cst = arith.constant dense<0.000000e+00> : vector<128x128xf32>
    %2 = tpu.matmul %0, %1, %cst {dimension_numbers = #tpu.dot_dimension_numbers<[1], [0], [0], [1], [0, 0, 1, 1], [], []>} : vector<128x128xbf16>, vector<128x128xbf16>, vector<128x128xf32> -> vector<128x128xf32>
    %c0_3 = arith.constant 0 : index
    %c0_4 = arith.constant 0 : index
    %3 = vector.load %arg4[%c0_3, %c0_4] : memref<1x128xf32, #tpu.memory_space<vmem>>, vector<1x128xf32>
    %4 = vector.broadcast %3 : vector<1x128xf32> to vector<128x128xf32>
    %5 = arith.mulf %2, %4 : vector<128x128xf32>
    %c0_5 = arith.constant 0 : index
    %c0_6 = arith.constant 0 : index
    %6 = vector.load %arg5[%c0_5, %c0_6] : memref<1x128xf32, #tpu.memory_space<vmem>>, vector<1x128xf32>
    %7 = vector.broadcast %6 : vector<1x128xf32> to vector<128x128xf32>
    %8 = arith.addf %5, %7 : vector<128x128xf32>
    %9 = arith.truncf %8 : vector<128x128xf32> to vector<128x128xbf16>
    %c0_7 = arith.constant 0 : index
    %c0_8 = arith.constant 0 : index
    %10 = vector.load %arg6[%c0_7, %c0_8] : memref<128x128xbf16, #tpu.memory_space<vmem>>, vector<128x128xbf16>
    tpu.vector_store %arg6[%c0_7, %c0_8], %9 {strides = array<i32>} : memref<128x128xbf16, #tpu.memory_space<vmem>>, vector<128x128xbf16>,
    return
  }
  func.func @transform_0(%arg0: i32, %arg1: i32) -> (i32, i32) {
    %c0_i32 = arith.constant 0 : i32
    %c0_i32_0 = arith.constant 0 : i32
    return %arg0, %c0_i32 : i32, i32
  }
  func.func @transform_1(%arg0: i32, %arg1: i32) -> (i32, i32) {
    %c0_i32 = arith.constant 0 : i32
    %c0_i32_0 = arith.constant 0 : i32
    return %c0_i32, %arg1 : i32, i32
  }
  func.func @transform_2(%arg0: i32, %arg1: i32) -> (i32, i32) {
    %c0_i32 = arith.constant 0 : i32
    %c0_i32_0 = arith.constant 0 : i32
    return %c0_i32, %arg1 : i32, i32
  }
  func.func @transform_3(%arg0: i32, %arg1: i32) -> (i32, i32) {
    %c0_i32 = arith.constant 0 : i32
    %c0_i32_0 = arith.constant 0 : i32
    return %c0_i32, %arg1 : i32, i32
  }
  func.func @transform_4(%arg0: i32, %arg1: i32) -> (i32, i32) {
    %c0_i32 = arith.constant 0 : i32
    return %arg0, %arg1 : i32, i32
  }
}

module attributes {stable_mosaic.version = 11 : i64} {
  func.func @_mm_bn_add_single_kernel(%arg0: i32, %arg1: i32, %arg2: memref<128x128xbf16, #tpu.memory_space<vmem>>, %arg3: memref<128x128xbf16, #tpu.memory_space<vmem>>, %arg4: memref<1x128xf32, #tpu.memory_space<vmem>>, %arg5: memref<1x128xf32, #tpu.memory_space<vmem>>, %arg6: memref<128x128xbf16, #tpu.memory_space<vmem>>, %arg7: memref<128x128xbf16, #tpu.memory_space<vmem>>) attributes {dimension_semantics = [#tpu.dimension_semantics<parallel>, #tpu.dimension_semantics<parallel>], iteration_bounds = array<i64: 1, 1>, scalar_prefetch = 0 : i64, scratch_operands = 0 : i64, tpu.core_type = #tpu.core_type<tc>, window_params = [{transform_indices = @transform_0, window_bounds = array<i64: 128, 128>}, {transform_indices = @transform_1, window_bounds = array<i64: 128, 128>}, {transform_indices = @transform_2, window_bounds = array<i64: 1, 128>}, {transform_indices = @transform_3, window_bounds = array<i64: 1, 128>}, {transform_indices = @transform_4, window_bounds = array<i64: 128, 128>}, {transform_indices = @transform_5, window_bounds = array<i64: 128, 128>}]} {
    %c0 = arith.constant 0 : index
    %c0_0 = arith.constant 0 : index
    %0 = vector.load %arg2[%c0, %c0_0] : memref<128x128xbf16, #tpu.memory_space<vmem>>, vector<128x128xbf16>
    %c0_1 = arith.constant 0 : index
    %c0_2 = arith.constant 0 : index
    %1 = vector.load %arg3[%c0_1, %c0_2] : memref<128x128xbf16, #tpu.memory_space<vmem>>, vector<128x128xbf16>
    %cst = arith.constant dense<0.000000e+00> : vector<128x128xf32>
    %2 = tpu.matmul %0, %1, %cst {dimension_numbers = #tpu.dot_dimension_numbers<[1], [0], [0], [1], [0, 0, 1, 1], [], []>} : vector<128x128xbf16>, vector<128x128xbf16>, vector<128x128xf32> -> vector<128x128xf32>
    %c0_3 = arith.constant 0 : index
    %c0_4 = arith.constant 0 : index
    %3 = vector.load %arg4[%c0_3, %c0_4] : memref<1x128xf32, #tpu.memory_space<vmem>>, vector<1x128xf32>
    %4 = vector.broadcast %3 : vector<1x128xf32> to vector<128x128xf32>
    %5 = arith.mulf %2, %4 : vector<128x128xf32>
    %c0_5 = arith.constant 0 : index
    %c0_6 = arith.constant 0 : index
    %6 = vector.load %arg5[%c0_5, %c0_6] : memref<1x128xf32, #tpu.memory_space<vmem>>, vector<1x128xf32>
    %7 = vector.broadcast %6 : vector<1x128xf32> to vector<128x128xf32>
    %8 = arith.addf %5, %7 : vector<128x128xf32>
    %c0_7 = arith.constant 0 : index
    %c0_8 = arith.constant 0 : index
    %9 = vector.load %arg6[%c0_7, %c0_8] : memref<128x128xbf16, #tpu.memory_space<vmem>>, vector<128x128xbf16>
    %10 = arith.extf %9 : vector<128x128xbf16> to vector<128x128xf32>
    %11 = arith.addf %8, %10 : vector<128x128xf32>
    %cst_9 = arith.constant 0.000000e+00 : f32
    %12 = vector.broadcast %cst_9 : f32 to vector<128x128xf32>
    %13 = arith.maximumf %11, %12 : vector<128x128xf32>
    %14 = arith.truncf %13 : vector<128x128xf32> to vector<128x128xbf16>
    %c0_10 = arith.constant 0 : index
    %c0_11 = arith.constant 0 : index
    %15 = vector.load %arg7[%c0_10, %c0_11] : memref<128x128xbf16, #tpu.memory_space<vmem>>, vector<128x128xbf16>
    tpu.vector_store %arg7[%c0_10, %c0_11], %14 {strides = array<i32>} : memref<128x128xbf16, #tpu.memory_space<vmem>>, vector<128x128xbf16>,
    return
  }
  func.func @transform_0(%arg0: i32, %arg1: i32) -> (i32, i32) {
    %c0_i32 = arith.constant 0 : i32
    %c0_i32_0 = arith.constant 0 : i32
    return %arg0, %c0_i32 : i32, i32
  }
  func.func @transform_1(%arg0: i32, %arg1: i32) -> (i32, i32) {
    %c0_i32 = arith.constant 0 : i32
    %c0_i32_0 = arith.constant 0 : i32
    return %c0_i32, %arg1 : i32, i32
  }
  func.func @transform_2(%arg0: i32, %arg1: i32) -> (i32, i32) {
    %c0_i32 = arith.constant 0 : i32
    %c0_i32_0 = arith.constant 0 : i32
    return %c0_i32, %arg1 : i32, i32
  }
  func.func @transform_3(%arg0: i32, %arg1: i32) -> (i32, i32) {
    %c0_i32 = arith.constant 0 : i32
    %c0_i32_0 = arith.constant 0 : i32
    return %c0_i32, %arg1 : i32, i32
  }
  func.func @transform_4(%arg0: i32, %arg1: i32) -> (i32, i32) {
    %c0_i32 = arith.constant 0 : i32
    return %arg0, %arg1 : i32, i32
  }
  func.func @transform_5(%arg0: i32, %arg1: i32) -> (i32, i32) {
    %c0_i32 = arith.constant 0 : i32
    return %arg0, %arg1 : i32, i32
  }
}

module attributes {stable_mosaic.version = 11 : i64} {
  func.func @_mm_bn_single_kernel(%arg0: i32, %arg1: i32, %arg2: memref<128x256xbf16, #tpu.memory_space<vmem>>, %arg3: memref<256x128xbf16, #tpu.memory_space<vmem>>, %arg4: memref<1x128xf32, #tpu.memory_space<vmem>>, %arg5: memref<1x128xf32, #tpu.memory_space<vmem>>, %arg6: memref<128x128xbf16, #tpu.memory_space<vmem>>) attributes {dimension_semantics = [#tpu.dimension_semantics<parallel>, #tpu.dimension_semantics<parallel>], iteration_bounds = array<i64: 1, 1>, scalar_prefetch = 0 : i64, scratch_operands = 0 : i64, tpu.core_type = #tpu.core_type<tc>, window_params = [{transform_indices = @transform_0, window_bounds = array<i64: 128, 256>}, {transform_indices = @transform_1, window_bounds = array<i64: 256, 128>}, {transform_indices = @transform_2, window_bounds = array<i64: 1, 128>}, {transform_indices = @transform_3, window_bounds = array<i64: 1, 128>}, {transform_indices = @transform_4, window_bounds = array<i64: 128, 128>}]} {
    %c0 = arith.constant 0 : index
    %c0_0 = arith.constant 0 : index
    %0 = vector.load %arg2[%c0, %c0_0] : memref<128x256xbf16, #tpu.memory_space<vmem>>, vector<128x256xbf16>
    %c0_1 = arith.constant 0 : index
    %c0_2 = arith.constant 0 : index
    %1 = vector.load %arg3[%c0_1, %c0_2] : memref<256x128xbf16, #tpu.memory_space<vmem>>, vector<256x128xbf16>
    %cst = arith.constant dense<0.000000e+00> : vector<128x128xf32>
    %2 = tpu.matmul %0, %1, %cst {dimension_numbers = #tpu.dot_dimension_numbers<[1], [0], [0], [1], [0, 0, 1, 1], [], []>} : vector<128x256xbf16>, vector<256x128xbf16>, vector<128x128xf32> -> vector<128x128xf32>
    %c0_3 = arith.constant 0 : index
    %c0_4 = arith.constant 0 : index
    %3 = vector.load %arg4[%c0_3, %c0_4] : memref<1x128xf32, #tpu.memory_space<vmem>>, vector<1x128xf32>
    %4 = vector.broadcast %3 : vector<1x128xf32> to vector<128x128xf32>
    %5 = arith.mulf %2, %4 : vector<128x128xf32>
    %c0_5 = arith.constant 0 : index
    %c0_6 = arith.constant 0 : index
    %6 = vector.load %arg5[%c0_5, %c0_6] : memref<1x128xf32, #tpu.memory_space<vmem>>, vector<1x128xf32>
    %7 = vector.broadcast %6 : vector<1x128xf32> to vector<128x128xf32>
    %8 = arith.addf %5, %7 : vector<128x128xf32>
    %cst_7 = arith.constant 0.000000e+00 : f32
    %9 = vector.broadcast %cst_7 : f32 to vector<128x128xf32>
    %10 = arith.maximumf %8, %9 : vector<128x128xf32>
    %11 = arith.truncf %10 : vector<128x128xf32> to vector<128x128xbf16>
    %c0_8 = arith.constant 0 : index
    %c0_9 = arith.constant 0 : index
    %12 = vector.load %arg6[%c0_8, %c0_9] : memref<128x128xbf16, #tpu.memory_space<vmem>>, vector<128x128xbf16>
    tpu.vector_store %arg6[%c0_8, %c0_9], %11 {strides = array<i32>} : memref<128x128xbf16, #tpu.memory_space<vmem>>, vector<128x128xbf16>,
    return
  }
  func.func @transform_0(%arg0: i32, %arg1: i32) -> (i32, i32) {
    %c0_i32 = arith.constant 0 : i32
    %c0_i32_0 = arith.constant 0 : i32
    return %arg0, %c0_i32 : i32, i32
  }
  func.func @transform_1(%arg0: i32, %arg1: i32) -> (i32, i32) {
    %c0_i32 = arith.constant 0 : i32
    %c0_i32_0 = arith.constant 0 : i32
    return %c0_i32, %arg1 : i32, i32
  }
  func.func @transform_2(%arg0: i32, %arg1: i32) -> (i32, i32) {
    %c0_i32 = arith.constant 0 : i32
    %c0_i32_0 = arith.constant 0 : i32
    return %c0_i32, %arg1 : i32, i32
  }
  func.func @transform_3(%arg0: i32, %arg1: i32) -> (i32, i32) {
    %c0_i32 = arith.constant 0 : i32
    %c0_i32_0 = arith.constant 0 : i32
    return %c0_i32, %arg1 : i32, i32
  }
  func.func @transform_4(%arg0: i32, %arg1: i32) -> (i32, i32) {
    %c0_i32 = arith.constant 0 : i32
    return %arg0, %arg1 : i32, i32
  }
}

module attributes {stable_mosaic.version = 11 : i64} {
  func.func @_mm_bn_single_kernel(%arg0: i32, %arg1: i32, %arg2: memref<32x128xbf16, #tpu.memory_space<vmem>>, %arg3: memref<128x128xbf16, #tpu.memory_space<vmem>>, %arg4: memref<1x128xf32, #tpu.memory_space<vmem>>, %arg5: memref<1x128xf32, #tpu.memory_space<vmem>>, %arg6: memref<32x128xbf16, #tpu.memory_space<vmem>>) attributes {dimension_semantics = [#tpu.dimension_semantics<parallel>, #tpu.dimension_semantics<parallel>], iteration_bounds = array<i64: 1, 1>, scalar_prefetch = 0 : i64, scratch_operands = 0 : i64, tpu.core_type = #tpu.core_type<tc>, window_params = [{transform_indices = @transform_0, window_bounds = array<i64: 32, 128>}, {transform_indices = @transform_1, window_bounds = array<i64: 128, 128>}, {transform_indices = @transform_2, window_bounds = array<i64: 1, 128>}, {transform_indices = @transform_3, window_bounds = array<i64: 1, 128>}, {transform_indices = @transform_4, window_bounds = array<i64: 32, 128>}]} {
    %c0 = arith.constant 0 : index
    %c0_0 = arith.constant 0 : index
    %0 = vector.load %arg2[%c0, %c0_0] : memref<32x128xbf16, #tpu.memory_space<vmem>>, vector<32x128xbf16>
    %c0_1 = arith.constant 0 : index
    %c0_2 = arith.constant 0 : index
    %1 = vector.load %arg3[%c0_1, %c0_2] : memref<128x128xbf16, #tpu.memory_space<vmem>>, vector<128x128xbf16>
    %cst = arith.constant dense<0.000000e+00> : vector<32x128xf32>
    %2 = tpu.matmul %0, %1, %cst {dimension_numbers = #tpu.dot_dimension_numbers<[1], [0], [0], [1], [0, 0, 1, 1], [], []>} : vector<32x128xbf16>, vector<128x128xbf16>, vector<32x128xf32> -> vector<32x128xf32>
    %c0_3 = arith.constant 0 : index
    %c0_4 = arith.constant 0 : index
    %3 = vector.load %arg4[%c0_3, %c0_4] : memref<1x128xf32, #tpu.memory_space<vmem>>, vector<1x128xf32>
    %4 = vector.broadcast %3 : vector<1x128xf32> to vector<32x128xf32>
    %5 = arith.mulf %2, %4 : vector<32x128xf32>
    %c0_5 = arith.constant 0 : index
    %c0_6 = arith.constant 0 : index
    %6 = vector.load %arg5[%c0_5, %c0_6] : memref<1x128xf32, #tpu.memory_space<vmem>>, vector<1x128xf32>
    %7 = vector.broadcast %6 : vector<1x128xf32> to vector<32x128xf32>
    %8 = arith.addf %5, %7 : vector<32x128xf32>
    %9 = arith.truncf %8 : vector<32x128xf32> to vector<32x128xbf16>
    %c0_7 = arith.constant 0 : index
    %c0_8 = arith.constant 0 : index
    %10 = vector.load %arg6[%c0_7, %c0_8] : memref<32x128xbf16, #tpu.memory_space<vmem>>, vector<32x128xbf16>
    tpu.vector_store %arg6[%c0_7, %c0_8], %9 {strides = array<i32>} : memref<32x128xbf16, #tpu.memory_space<vmem>>, vector<32x128xbf16>,
    return
  }
  func.func @transform_0(%arg0: i32, %arg1: i32) -> (i32, i32) {
    %c0_i32 = arith.constant 0 : i32
    %c0_i32_0 = arith.constant 0 : i32
    return %arg0, %c0_i32 : i32, i32
  }
  func.func @transform_1(%arg0: i32, %arg1: i32) -> (i32, i32) {
    %c0_i32 = arith.constant 0 : i32
    %c0_i32_0 = arith.constant 0 : i32
    return %c0_i32, %arg1 : i32, i32
  }
  func.func @transform_2(%arg0: i32, %arg1: i32) -> (i32, i32) {
    %c0_i32 = arith.constant 0 : i32
    %c0_i32_0 = arith.constant 0 : i32
    return %c0_i32, %arg1 : i32, i32
  }
  func.func @transform_3(%arg0: i32, %arg1: i32) -> (i32, i32) {
    %c0_i32 = arith.constant 0 : i32
    %c0_i32_0 = arith.constant 0 : i32
    return %c0_i32, %arg1 : i32, i32
  }
  func.func @transform_4(%arg0: i32, %arg1: i32) -> (i32, i32) {
    %c0_i32 = arith.constant 0 : i32
    return %arg0, %arg1 : i32, i32
  }
}

module attributes {stable_mosaic.version = 11 : i64} {
  func.func @_mm_bn_add_single_kernel(%arg0: i32, %arg1: i32, %arg2: memref<32x128xbf16, #tpu.memory_space<vmem>>, %arg3: memref<128x128xbf16, #tpu.memory_space<vmem>>, %arg4: memref<1x128xf32, #tpu.memory_space<vmem>>, %arg5: memref<1x128xf32, #tpu.memory_space<vmem>>, %arg6: memref<32x128xbf16, #tpu.memory_space<vmem>>, %arg7: memref<32x128xbf16, #tpu.memory_space<vmem>>) attributes {dimension_semantics = [#tpu.dimension_semantics<parallel>, #tpu.dimension_semantics<parallel>], iteration_bounds = array<i64: 1, 1>, scalar_prefetch = 0 : i64, scratch_operands = 0 : i64, tpu.core_type = #tpu.core_type<tc>, window_params = [{transform_indices = @transform_0, window_bounds = array<i64: 32, 128>}, {transform_indices = @transform_1, window_bounds = array<i64: 128, 128>}, {transform_indices = @transform_2, window_bounds = array<i64: 1, 128>}, {transform_indices = @transform_3, window_bounds = array<i64: 1, 128>}, {transform_indices = @transform_4, window_bounds = array<i64: 32, 128>}, {transform_indices = @transform_5, window_bounds = array<i64: 32, 128>}]} {
    %c0 = arith.constant 0 : index
    %c0_0 = arith.constant 0 : index
    %0 = vector.load %arg2[%c0, %c0_0] : memref<32x128xbf16, #tpu.memory_space<vmem>>, vector<32x128xbf16>
    %c0_1 = arith.constant 0 : index
    %c0_2 = arith.constant 0 : index
    %1 = vector.load %arg3[%c0_1, %c0_2] : memref<128x128xbf16, #tpu.memory_space<vmem>>, vector<128x128xbf16>
    %cst = arith.constant dense<0.000000e+00> : vector<32x128xf32>
    %2 = tpu.matmul %0, %1, %cst {dimension_numbers = #tpu.dot_dimension_numbers<[1], [0], [0], [1], [0, 0, 1, 1], [], []>} : vector<32x128xbf16>, vector<128x128xbf16>, vector<32x128xf32> -> vector<32x128xf32>
    %c0_3 = arith.constant 0 : index
    %c0_4 = arith.constant 0 : index
    %3 = vector.load %arg4[%c0_3, %c0_4] : memref<1x128xf32, #tpu.memory_space<vmem>>, vector<1x128xf32>
    %4 = vector.broadcast %3 : vector<1x128xf32> to vector<32x128xf32>
    %5 = arith.mulf %2, %4 : vector<32x128xf32>
    %c0_5 = arith.constant 0 : index
    %c0_6 = arith.constant 0 : index
    %6 = vector.load %arg5[%c0_5, %c0_6] : memref<1x128xf32, #tpu.memory_space<vmem>>, vector<1x128xf32>
    %7 = vector.broadcast %6 : vector<1x128xf32> to vector<32x128xf32>
    %8 = arith.addf %5, %7 : vector<32x128xf32>
    %c0_7 = arith.constant 0 : index
    %c0_8 = arith.constant 0 : index
    %9 = vector.load %arg6[%c0_7, %c0_8] : memref<32x128xbf16, #tpu.memory_space<vmem>>, vector<32x128xbf16>
    %10 = arith.extf %9 : vector<32x128xbf16> to vector<32x128xf32>
    %11 = arith.addf %8, %10 : vector<32x128xf32>
    %cst_9 = arith.constant 0.000000e+00 : f32
    %12 = vector.broadcast %cst_9 : f32 to vector<32x128xf32>
    %13 = arith.maximumf %11, %12 : vector<32x128xf32>
    %14 = arith.truncf %13 : vector<32x128xf32> to vector<32x128xbf16>
    %c0_10 = arith.constant 0 : index
    %c0_11 = arith.constant 0 : index
    %15 = vector.load %arg7[%c0_10, %c0_11] : memref<32x128xbf16, #tpu.memory_space<vmem>>, vector<32x128xbf16>
    tpu.vector_store %arg7[%c0_10, %c0_11], %14 {strides = array<i32>} : memref<32x128xbf16, #tpu.memory_space<vmem>>, vector<32x128xbf16>,
    return
  }
  func.func @transform_0(%arg0: i32, %arg1: i32) -> (i32, i32) {
    %c0_i32 = arith.constant 0 : i32
    %c0_i32_0 = arith.constant 0 : i32
    return %arg0, %c0_i32 : i32, i32
  }
  func.func @transform_1(%arg0: i32, %arg1: i32) -> (i32, i32) {
    %c0_i32 = arith.constant 0 : i32
    %c0_i32_0 = arith.constant 0 : i32
    return %c0_i32, %arg1 : i32, i32
  }
  func.func @transform_2(%arg0: i32, %arg1: i32) -> (i32, i32) {
    %c0_i32 = arith.constant 0 : i32
    %c0_i32_0 = arith.constant 0 : i32
    return %c0_i32, %arg1 : i32, i32
  }
  func.func @transform_3(%arg0: i32, %arg1: i32) -> (i32, i32) {
    %c0_i32 = arith.constant 0 : i32
    %c0_i32_0 = arith.constant 0 : i32
    return %c0_i32, %arg1 : i32, i32
  }
  func.func @transform_4(%arg0: i32, %arg1: i32) -> (i32, i32) {
    %c0_i32 = arith.constant 0 : i32
    return %arg0, %arg1 : i32, i32
  }
  func.func @transform_5(%arg0: i32, %arg1: i32) -> (i32, i32) {
    %c0_i32 = arith.constant 0 : i32
    return %arg0, %arg1 : i32, i32
  }
}

module attributes {stable_mosaic.version = 11 : i64} {
  func.func @_mm_bn_single_kernel(%arg0: i32, %arg1: i32, %arg2: memref<32x128xbf16, #tpu.memory_space<vmem>>, %arg3: memref<128x128xbf16, #tpu.memory_space<vmem>>, %arg4: memref<1x128xf32, #tpu.memory_space<vmem>>, %arg5: memref<1x128xf32, #tpu.memory_space<vmem>>, %arg6: memref<32x128xbf16, #tpu.memory_space<vmem>>) attributes {dimension_semantics = [#tpu.dimension_semantics<parallel>, #tpu.dimension_semantics<parallel>], iteration_bounds = array<i64: 1, 1>, scalar_prefetch = 0 : i64, scratch_operands = 0 : i64, tpu.core_type = #tpu.core_type<tc>, window_params = [{transform_indices = @transform_0, window_bounds = array<i64: 32, 128>}, {transform_indices = @transform_1, window_bounds = array<i64: 128, 128>}, {transform_indices = @transform_2, window_bounds = array<i64: 1, 128>}, {transform_indices = @transform_3, window_bounds = array<i64: 1, 128>}, {transform_indices = @transform_4, window_bounds = array<i64: 32, 128>}]} {
    %c0 = arith.constant 0 : index
    %c0_0 = arith.constant 0 : index
    %0 = vector.load %arg2[%c0, %c0_0] : memref<32x128xbf16, #tpu.memory_space<vmem>>, vector<32x128xbf16>
    %c0_1 = arith.constant 0 : index
    %c0_2 = arith.constant 0 : index
    %1 = vector.load %arg3[%c0_1, %c0_2] : memref<128x128xbf16, #tpu.memory_space<vmem>>, vector<128x128xbf16>
    %cst = arith.constant dense<0.000000e+00> : vector<32x128xf32>
    %2 = tpu.matmul %0, %1, %cst {dimension_numbers = #tpu.dot_dimension_numbers<[1], [0], [0], [1], [0, 0, 1, 1], [], []>} : vector<32x128xbf16>, vector<128x128xbf16>, vector<32x128xf32> -> vector<32x128xf32>
    %c0_3 = arith.constant 0 : index
    %c0_4 = arith.constant 0 : index
    %3 = vector.load %arg4[%c0_3, %c0_4] : memref<1x128xf32, #tpu.memory_space<vmem>>, vector<1x128xf32>
    %4 = vector.broadcast %3 : vector<1x128xf32> to vector<32x128xf32>
    %5 = arith.mulf %2, %4 : vector<32x128xf32>
    %c0_5 = arith.constant 0 : index
    %c0_6 = arith.constant 0 : index
    %6 = vector.load %arg5[%c0_5, %c0_6] : memref<1x128xf32, #tpu.memory_space<vmem>>, vector<1x128xf32>
    %7 = vector.broadcast %6 : vector<1x128xf32> to vector<32x128xf32>
    %8 = arith.addf %5, %7 : vector<32x128xf32>
    %cst_7 = arith.constant 0.000000e+00 : f32
    %9 = vector.broadcast %cst_7 : f32 to vector<32x128xf32>
    %10 = arith.maximumf %8, %9 : vector<32x128xf32>
    %11 = arith.truncf %10 : vector<32x128xf32> to vector<32x128xbf16>
    %c0_8 = arith.constant 0 : index
    %c0_9 = arith.constant 0 : index
    %12 = vector.load %arg6[%c0_8, %c0_9] : memref<32x128xbf16, #tpu.memory_space<vmem>>, vector<32x128xbf16>
    tpu.vector_store %arg6[%c0_8, %c0_9], %11 {strides = array<i32>} : memref<32x128xbf16, #tpu.memory_space<vmem>>, vector<32x128xbf16>,
    return
  }
  func.func @transform_0(%arg0: i32, %arg1: i32) -> (i32, i32) {
    %c0_i32 = arith.constant 0 : i32
    %c0_i32_0 = arith.constant 0 : i32
    return %arg0, %c0_i32 : i32, i32
  }
  func.func @transform_1(%arg0: i32, %arg1: i32) -> (i32, i32) {
    %c0_i32 = arith.constant 0 : i32
    %c0_i32_0 = arith.constant 0 : i32
    return %c0_i32, %arg1 : i32, i32
  }
  func.func @transform_2(%arg0: i32, %arg1: i32) -> (i32, i32) {
    %c0_i32 = arith.constant 0 : i32
    %c0_i32_0 = arith.constant 0 : i32
    return %c0_i32, %arg1 : i32, i32
  }
  func.func @transform_3(%arg0: i32, %arg1: i32) -> (i32, i32) {
    %c0_i32 = arith.constant 0 : i32
    %c0_i32_0 = arith.constant 0 : i32
    return %c0_i32, %arg1 : i32, i32
  }
  func.func @transform_4(%arg0: i32, %arg1: i32) -> (i32, i32) {
    %c0_i32 = arith.constant 0 : i32
    return %arg0, %arg1 : i32, i32
  }
}

module attributes {stable_mosaic.version = 11 : i64} {
  func.func @_mm_bn_single_kernel(%arg0: i32, %arg1: i32, %arg2: memref<32x256xbf16, #tpu.memory_space<vmem>>, %arg3: memref<256x128xbf16, #tpu.memory_space<vmem>>, %arg4: memref<1x128xf32, #tpu.memory_space<vmem>>, %arg5: memref<1x128xf32, #tpu.memory_space<vmem>>, %arg6: memref<32x128xbf16, #tpu.memory_space<vmem>>) attributes {dimension_semantics = [#tpu.dimension_semantics<parallel>, #tpu.dimension_semantics<parallel>], iteration_bounds = array<i64: 1, 1>, scalar_prefetch = 0 : i64, scratch_operands = 0 : i64, tpu.core_type = #tpu.core_type<tc>, window_params = [{transform_indices = @transform_0, window_bounds = array<i64: 32, 256>}, {transform_indices = @transform_1, window_bounds = array<i64: 256, 128>}, {transform_indices = @transform_2, window_bounds = array<i64: 1, 128>}, {transform_indices = @transform_3, window_bounds = array<i64: 1, 128>}, {transform_indices = @transform_4, window_bounds = array<i64: 32, 128>}]} {
    %c0 = arith.constant 0 : index
    %c0_0 = arith.constant 0 : index
    %0 = vector.load %arg2[%c0, %c0_0] : memref<32x256xbf16, #tpu.memory_space<vmem>>, vector<32x256xbf16>
    %c0_1 = arith.constant 0 : index
    %c0_2 = arith.constant 0 : index
    %1 = vector.load %arg3[%c0_1, %c0_2] : memref<256x128xbf16, #tpu.memory_space<vmem>>, vector<256x128xbf16>
    %cst = arith.constant dense<0.000000e+00> : vector<32x128xf32>
    %2 = tpu.matmul %0, %1, %cst {dimension_numbers = #tpu.dot_dimension_numbers<[1], [0], [0], [1], [0, 0, 1, 1], [], []>} : vector<32x256xbf16>, vector<256x128xbf16>, vector<32x128xf32> -> vector<32x128xf32>
    %c0_3 = arith.constant 0 : index
    %c0_4 = arith.constant 0 : index
    %3 = vector.load %arg4[%c0_3, %c0_4] : memref<1x128xf32, #tpu.memory_space<vmem>>, vector<1x128xf32>
    %4 = vector.broadcast %3 : vector<1x128xf32> to vector<32x128xf32>
    %5 = arith.mulf %2, %4 : vector<32x128xf32>
    %c0_5 = arith.constant 0 : index
    %c0_6 = arith.constant 0 : index
    %6 = vector.load %arg5[%c0_5, %c0_6] : memref<1x128xf32, #tpu.memory_space<vmem>>, vector<1x128xf32>
    %7 = vector.broadcast %6 : vector<1x128xf32> to vector<32x128xf32>
    %8 = arith.addf %5, %7 : vector<32x128xf32>
    %cst_7 = arith.constant 0.000000e+00 : f32
    %9 = vector.broadcast %cst_7 : f32 to vector<32x128xf32>
    %10 = arith.maximumf %8, %9 : vector<32x128xf32>
    %11 = arith.truncf %10 : vector<32x128xf32> to vector<32x128xbf16>
    %c0_8 = arith.constant 0 : index
    %c0_9 = arith.constant 0 : index
    %12 = vector.load %arg6[%c0_8, %c0_9] : memref<32x128xbf16, #tpu.memory_space<vmem>>, vector<32x128xbf16>
    tpu.vector_store %arg6[%c0_8, %c0_9], %11 {strides = array<i32>} : memref<32x128xbf16, #tpu.memory_space<vmem>>, vector<32x128xbf16>,
    return
  }
  func.func @transform_0(%arg0: i32, %arg1: i32) -> (i32, i32) {
    %c0_i32 = arith.constant 0 : i32
    %c0_i32_0 = arith.constant 0 : i32
    return %arg0, %c0_i32 : i32, i32
  }
  func.func @transform_1(%arg0: i32, %arg1: i32) -> (i32, i32) {
    %c0_i32 = arith.constant 0 : i32
    %c0_i32_0 = arith.constant 0 : i32
    return %c0_i32, %arg1 : i32, i32
  }
  func.func @transform_2(%arg0: i32, %arg1: i32) -> (i32, i32) {
    %c0_i32 = arith.constant 0 : i32
    %c0_i32_0 = arith.constant 0 : i32
    return %c0_i32, %arg1 : i32, i32
  }
  func.func @transform_3(%arg0: i32, %arg1: i32) -> (i32, i32) {
    %c0_i32 = arith.constant 0 : i32
    %c0_i32_0 = arith.constant 0 : i32
    return %c0_i32, %arg1 : i32, i32
  }
  func.func @transform_4(%arg0: i32, %arg1: i32) -> (i32, i32) {
    %c0_i32 = arith.constant 0 : i32
    return %arg0, %arg1 : i32, i32
  }
}

module attributes {stable_mosaic.version = 11 : i64} {
  func.func @_mm_bn_single_kernel(%arg0: i32, %arg1: i32, %arg2: memref<32x384xbf16, #tpu.memory_space<vmem>>, %arg3: memref<384x128xbf16, #tpu.memory_space<vmem>>, %arg4: memref<1x128xf32, #tpu.memory_space<vmem>>, %arg5: memref<1x128xf32, #tpu.memory_space<vmem>>, %arg6: memref<32x128xbf16, #tpu.memory_space<vmem>>) attributes {dimension_semantics = [#tpu.dimension_semantics<parallel>, #tpu.dimension_semantics<parallel>], iteration_bounds = array<i64: 1, 1>, scalar_prefetch = 0 : i64, scratch_operands = 0 : i64, tpu.core_type = #tpu.core_type<tc>, window_params = [{transform_indices = @transform_0, window_bounds = array<i64: 32, 384>}, {transform_indices = @transform_1, window_bounds = array<i64: 384, 128>}, {transform_indices = @transform_2, window_bounds = array<i64: 1, 128>}, {transform_indices = @transform_3, window_bounds = array<i64: 1, 128>}, {transform_indices = @transform_4, window_bounds = array<i64: 32, 128>}]} {
    %c0 = arith.constant 0 : index
    %c0_0 = arith.constant 0 : index
    %0 = vector.load %arg2[%c0, %c0_0] : memref<32x384xbf16, #tpu.memory_space<vmem>>, vector<32x384xbf16>
    %c0_1 = arith.constant 0 : index
    %c0_2 = arith.constant 0 : index
    %1 = vector.load %arg3[%c0_1, %c0_2] : memref<384x128xbf16, #tpu.memory_space<vmem>>, vector<384x128xbf16>
    %cst = arith.constant dense<0.000000e+00> : vector<32x128xf32>
    %2 = tpu.matmul %0, %1, %cst {dimension_numbers = #tpu.dot_dimension_numbers<[1], [0], [0], [1], [0, 0, 1, 1], [], []>} : vector<32x384xbf16>, vector<384x128xbf16>, vector<32x128xf32> -> vector<32x128xf32>
    %c0_3 = arith.constant 0 : index
    %c0_4 = arith.constant 0 : index
    %3 = vector.load %arg4[%c0_3, %c0_4] : memref<1x128xf32, #tpu.memory_space<vmem>>, vector<1x128xf32>
    %4 = vector.broadcast %3 : vector<1x128xf32> to vector<32x128xf32>
    %5 = arith.mulf %2, %4 : vector<32x128xf32>
    %c0_5 = arith.constant 0 : index
    %c0_6 = arith.constant 0 : index
    %6 = vector.load %arg5[%c0_5, %c0_6] : memref<1x128xf32, #tpu.memory_space<vmem>>, vector<1x128xf32>
    %7 = vector.broadcast %6 : vector<1x128xf32> to vector<32x128xf32>
    %8 = arith.addf %5, %7 : vector<32x128xf32>
    %cst_7 = arith.constant 0.000000e+00 : f32
    %9 = vector.broadcast %cst_7 : f32 to vector<32x128xf32>
    %10 = arith.maximumf %8, %9 : vector<32x128xf32>
    %11 = arith.truncf %10 : vector<32x128xf32> to vector<32x128xbf16>
    %c0_8 = arith.constant 0 : index
    %c0_9 = arith.constant 0 : index
    %12 = vector.load %arg6[%c0_8, %c0_9] : memref<32x128xbf16, #tpu.memory_space<vmem>>, vector<32x128xbf16>
    tpu.vector_store %arg6[%c0_8, %c0_9], %11 {strides = array<i32>} : memref<32x128xbf16, #tpu.memory_space<vmem>>, vector<32x128xbf16>,
    return
  }
  func.func @transform_0(%arg0: i32, %arg1: i32) -> (i32, i32) {
    %c0_i32 = arith.constant 0 : i32
    %c0_i32_0 = arith.constant 0 : i32
    return %arg0, %c0_i32 : i32, i32
  }
  func.func @transform_1(%arg0: i32, %arg1: i32) -> (i32, i32) {
    %c0_i32 = arith.constant 0 : i32
    %c0_i32_0 = arith.constant 0 : i32
    return %c0_i32, %arg1 : i32, i32
  }
  func.func @transform_2(%arg0: i32, %arg1: i32) -> (i32, i32) {
    %c0_i32 = arith.constant 0 : i32
    %c0_i32_0 = arith.constant 0 : i32
    return %c0_i32, %arg1 : i32, i32
  }
  func.func @transform_3(%arg0: i32, %arg1: i32) -> (i32, i32) {
    %c0_i32 = arith.constant 0 : i32
    %c0_i32_0 = arith.constant 0 : i32
    return %c0_i32, %arg1 : i32, i32
  }
  func.func @transform_4(%arg0: i32, %arg1: i32) -> (i32, i32) {
    %c0_i32 = arith.constant 0 : i32
    return %arg0, %arg1 : i32, i32
  }
}

module attributes {stable_mosaic.version = 11 : i64} {
  func.func @_mm_bn_single_kernel(%arg0: i32, %arg1: i32, %arg2: memref<8x128xbf16, #tpu.memory_space<vmem>>, %arg3: memref<128x128xbf16, #tpu.memory_space<vmem>>, %arg4: memref<1x128xf32, #tpu.memory_space<vmem>>, %arg5: memref<1x128xf32, #tpu.memory_space<vmem>>, %arg6: memref<8x128xbf16, #tpu.memory_space<vmem>>) attributes {dimension_semantics = [#tpu.dimension_semantics<parallel>, #tpu.dimension_semantics<parallel>], iteration_bounds = array<i64: 1, 1>, scalar_prefetch = 0 : i64, scratch_operands = 0 : i64, tpu.core_type = #tpu.core_type<tc>, window_params = [{transform_indices = @transform_0, window_bounds = array<i64: 8, 128>}, {transform_indices = @transform_1, window_bounds = array<i64: 128, 128>}, {transform_indices = @transform_2, window_bounds = array<i64: 1, 128>}, {transform_indices = @transform_3, window_bounds = array<i64: 1, 128>}, {transform_indices = @transform_4, window_bounds = array<i64: 8, 128>}]} {
    %c0 = arith.constant 0 : index
    %c0_0 = arith.constant 0 : index
    %0 = vector.load %arg2[%c0, %c0_0] : memref<8x128xbf16, #tpu.memory_space<vmem>>, vector<8x128xbf16>
    %c0_1 = arith.constant 0 : index
    %c0_2 = arith.constant 0 : index
    %1 = vector.load %arg3[%c0_1, %c0_2] : memref<128x128xbf16, #tpu.memory_space<vmem>>, vector<128x128xbf16>
    %cst = arith.constant dense<0.000000e+00> : vector<8x128xf32>
    %2 = tpu.matmul %0, %1, %cst {dimension_numbers = #tpu.dot_dimension_numbers<[1], [0], [0], [1], [0, 0, 1, 1], [], []>} : vector<8x128xbf16>, vector<128x128xbf16>, vector<8x128xf32> -> vector<8x128xf32>
    %c0_3 = arith.constant 0 : index
    %c0_4 = arith.constant 0 : index
    %3 = vector.load %arg4[%c0_3, %c0_4] : memref<1x128xf32, #tpu.memory_space<vmem>>, vector<1x128xf32>
    %4 = vector.broadcast %3 : vector<1x128xf32> to vector<8x128xf32>
    %5 = arith.mulf %2, %4 : vector<8x128xf32>
    %c0_5 = arith.constant 0 : index
    %c0_6 = arith.constant 0 : index
    %6 = vector.load %arg5[%c0_5, %c0_6] : memref<1x128xf32, #tpu.memory_space<vmem>>, vector<1x128xf32>
    %7 = vector.broadcast %6 : vector<1x128xf32> to vector<8x128xf32>
    %8 = arith.addf %5, %7 : vector<8x128xf32>
    %9 = arith.truncf %8 : vector<8x128xf32> to vector<8x128xbf16>
    %c0_7 = arith.constant 0 : index
    %c0_8 = arith.constant 0 : index
    %10 = vector.load %arg6[%c0_7, %c0_8] : memref<8x128xbf16, #tpu.memory_space<vmem>>, vector<8x128xbf16>
    tpu.vector_store %arg6[%c0_7, %c0_8], %9 {strides = array<i32>} : memref<8x128xbf16, #tpu.memory_space<vmem>>, vector<8x128xbf16>,
    return
  }
  func.func @transform_0(%arg0: i32, %arg1: i32) -> (i32, i32) {
    %c0_i32 = arith.constant 0 : i32
    %c0_i32_0 = arith.constant 0 : i32
    return %arg0, %c0_i32 : i32, i32
  }
  func.func @transform_1(%arg0: i32, %arg1: i32) -> (i32, i32) {
    %c0_i32 = arith.constant 0 : i32
    %c0_i32_0 = arith.constant 0 : i32
    return %c0_i32, %arg1 : i32, i32
  }
  func.func @transform_2(%arg0: i32, %arg1: i32) -> (i32, i32) {
    %c0_i32 = arith.constant 0 : i32
    %c0_i32_0 = arith.constant 0 : i32
    return %c0_i32, %arg1 : i32, i32
  }
  func.func @transform_3(%arg0: i32, %arg1: i32) -> (i32, i32) {
    %c0_i32 = arith.constant 0 : i32
    %c0_i32_0 = arith.constant 0 : i32
    return %c0_i32, %arg1 : i32, i32
  }
  func.func @transform_4(%arg0: i32, %arg1: i32) -> (i32, i32) {
    %c0_i32 = arith.constant 0 : i32
    return %arg0, %arg1 : i32, i32
  }
}

module attributes {stable_mosaic.version = 11 : i64} {
  func.func @_mm_bn_add_single_kernel(%arg0: i32, %arg1: i32, %arg2: memref<8x128xbf16, #tpu.memory_space<vmem>>, %arg3: memref<128x128xbf16, #tpu.memory_space<vmem>>, %arg4: memref<1x128xf32, #tpu.memory_space<vmem>>, %arg5: memref<1x128xf32, #tpu.memory_space<vmem>>, %arg6: memref<8x128xbf16, #tpu.memory_space<vmem>>, %arg7: memref<8x128xbf16, #tpu.memory_space<vmem>>) attributes {dimension_semantics = [#tpu.dimension_semantics<parallel>, #tpu.dimension_semantics<parallel>], iteration_bounds = array<i64: 1, 1>, scalar_prefetch = 0 : i64, scratch_operands = 0 : i64, tpu.core_type = #tpu.core_type<tc>, window_params = [{transform_indices = @transform_0, window_bounds = array<i64: 8, 128>}, {transform_indices = @transform_1, window_bounds = array<i64: 128, 128>}, {transform_indices = @transform_2, window_bounds = array<i64: 1, 128>}, {transform_indices = @transform_3, window_bounds = array<i64: 1, 128>}, {transform_indices = @transform_4, window_bounds = array<i64: 8, 128>}, {transform_indices = @transform_5, window_bounds = array<i64: 8, 128>}]} {
    %c0 = arith.constant 0 : index
    %c0_0 = arith.constant 0 : index
    %0 = vector.load %arg2[%c0, %c0_0] : memref<8x128xbf16, #tpu.memory_space<vmem>>, vector<8x128xbf16>
    %c0_1 = arith.constant 0 : index
    %c0_2 = arith.constant 0 : index
    %1 = vector.load %arg3[%c0_1, %c0_2] : memref<128x128xbf16, #tpu.memory_space<vmem>>, vector<128x128xbf16>
    %cst = arith.constant dense<0.000000e+00> : vector<8x128xf32>
    %2 = tpu.matmul %0, %1, %cst {dimension_numbers = #tpu.dot_dimension_numbers<[1], [0], [0], [1], [0, 0, 1, 1], [], []>} : vector<8x128xbf16>, vector<128x128xbf16>, vector<8x128xf32> -> vector<8x128xf32>
    %c0_3 = arith.constant 0 : index
    %c0_4 = arith.constant 0 : index
    %3 = vector.load %arg4[%c0_3, %c0_4] : memref<1x128xf32, #tpu.memory_space<vmem>>, vector<1x128xf32>
    %4 = vector.broadcast %3 : vector<1x128xf32> to vector<8x128xf32>
    %5 = arith.mulf %2, %4 : vector<8x128xf32>
    %c0_5 = arith.constant 0 : index
    %c0_6 = arith.constant 0 : index
    %6 = vector.load %arg5[%c0_5, %c0_6] : memref<1x128xf32, #tpu.memory_space<vmem>>, vector<1x128xf32>
    %7 = vector.broadcast %6 : vector<1x128xf32> to vector<8x128xf32>
    %8 = arith.addf %5, %7 : vector<8x128xf32>
    %c0_7 = arith.constant 0 : index
    %c0_8 = arith.constant 0 : index
    %9 = vector.load %arg6[%c0_7, %c0_8] : memref<8x128xbf16, #tpu.memory_space<vmem>>, vector<8x128xbf16>
    %10 = arith.extf %9 : vector<8x128xbf16> to vector<8x128xf32>
    %11 = arith.addf %8, %10 : vector<8x128xf32>
    %cst_9 = arith.constant 0.000000e+00 : f32
    %12 = vector.broadcast %cst_9 : f32 to vector<8x128xf32>
    %13 = arith.maximumf %11, %12 : vector<8x128xf32>
    %14 = arith.truncf %13 : vector<8x128xf32> to vector<8x128xbf16>
    %c0_10 = arith.constant 0 : index
    %c0_11 = arith.constant 0 : index
    %15 = vector.load %arg7[%c0_10, %c0_11] : memref<8x128xbf16, #tpu.memory_space<vmem>>, vector<8x128xbf16>
    tpu.vector_store %arg7[%c0_10, %c0_11], %14 {strides = array<i32>} : memref<8x128xbf16, #tpu.memory_space<vmem>>, vector<8x128xbf16>,
    return
  }
  func.func @transform_0(%arg0: i32, %arg1: i32) -> (i32, i32) {
    %c0_i32 = arith.constant 0 : i32
    %c0_i32_0 = arith.constant 0 : i32
    return %arg0, %c0_i32 : i32, i32
  }
  func.func @transform_1(%arg0: i32, %arg1: i32) -> (i32, i32) {
    %c0_i32 = arith.constant 0 : i32
    %c0_i32_0 = arith.constant 0 : i32
    return %c0_i32, %arg1 : i32, i32
  }
  func.func @transform_2(%arg0: i32, %arg1: i32) -> (i32, i32) {
    %c0_i32 = arith.constant 0 : i32
    %c0_i32_0 = arith.constant 0 : i32
    return %c0_i32, %arg1 : i32, i32
  }
  func.func @transform_3(%arg0: i32, %arg1: i32) -> (i32, i32) {
    %c0_i32 = arith.constant 0 : i32
    %c0_i32_0 = arith.constant 0 : i32
    return %c0_i32, %arg1 : i32, i32
  }
  func.func @transform_4(%arg0: i32, %arg1: i32) -> (i32, i32) {
    %c0_i32 = arith.constant 0 : i32
    return %arg0, %arg1 : i32, i32
  }
  func.func @transform_5(%arg0: i32, %arg1: i32) -> (i32, i32) {
    %c0_i32 = arith.constant 0 : i32
    return %arg0, %arg1 : i32, i32
  }
}

module attributes {stable_mosaic.version = 11 : i64} {
  func.func @_mm_bn_single_kernel(%arg0: i32, %arg1: i32, %arg2: memref<8x128xbf16, #tpu.memory_space<vmem>>, %arg3: memref<128x128xbf16, #tpu.memory_space<vmem>>, %arg4: memref<1x128xf32, #tpu.memory_space<vmem>>, %arg5: memref<1x128xf32, #tpu.memory_space<vmem>>, %arg6: memref<8x128xbf16, #tpu.memory_space<vmem>>) attributes {dimension_semantics = [#tpu.dimension_semantics<parallel>, #tpu.dimension_semantics<parallel>], iteration_bounds = array<i64: 1, 1>, scalar_prefetch = 0 : i64, scratch_operands = 0 : i64, tpu.core_type = #tpu.core_type<tc>, window_params = [{transform_indices = @transform_0, window_bounds = array<i64: 8, 128>}, {transform_indices = @transform_1, window_bounds = array<i64: 128, 128>}, {transform_indices = @transform_2, window_bounds = array<i64: 1, 128>}, {transform_indices = @transform_3, window_bounds = array<i64: 1, 128>}, {transform_indices = @transform_4, window_bounds = array<i64: 8, 128>}]} {
    %c0 = arith.constant 0 : index
    %c0_0 = arith.constant 0 : index
    %0 = vector.load %arg2[%c0, %c0_0] : memref<8x128xbf16, #tpu.memory_space<vmem>>, vector<8x128xbf16>
    %c0_1 = arith.constant 0 : index
    %c0_2 = arith.constant 0 : index
    %1 = vector.load %arg3[%c0_1, %c0_2] : memref<128x128xbf16, #tpu.memory_space<vmem>>, vector<128x128xbf16>
    %cst = arith.constant dense<0.000000e+00> : vector<8x128xf32>
    %2 = tpu.matmul %0, %1, %cst {dimension_numbers = #tpu.dot_dimension_numbers<[1], [0], [0], [1], [0, 0, 1, 1], [], []>} : vector<8x128xbf16>, vector<128x128xbf16>, vector<8x128xf32> -> vector<8x128xf32>
    %c0_3 = arith.constant 0 : index
    %c0_4 = arith.constant 0 : index
    %3 = vector.load %arg4[%c0_3, %c0_4] : memref<1x128xf32, #tpu.memory_space<vmem>>, vector<1x128xf32>
    %4 = vector.broadcast %3 : vector<1x128xf32> to vector<8x128xf32>
    %5 = arith.mulf %2, %4 : vector<8x128xf32>
    %c0_5 = arith.constant 0 : index
    %c0_6 = arith.constant 0 : index
    %6 = vector.load %arg5[%c0_5, %c0_6] : memref<1x128xf32, #tpu.memory_space<vmem>>, vector<1x128xf32>
    %7 = vector.broadcast %6 : vector<1x128xf32> to vector<8x128xf32>
    %8 = arith.addf %5, %7 : vector<8x128xf32>
    %cst_7 = arith.constant 0.000000e+00 : f32
    %9 = vector.broadcast %cst_7 : f32 to vector<8x128xf32>
    %10 = arith.maximumf %8, %9 : vector<8x128xf32>
    %11 = arith.truncf %10 : vector<8x128xf32> to vector<8x128xbf16>
    %c0_8 = arith.constant 0 : index
    %c0_9 = arith.constant 0 : index
    %12 = vector.load %arg6[%c0_8, %c0_9] : memref<8x128xbf16, #tpu.memory_space<vmem>>, vector<8x128xbf16>
    tpu.vector_store %arg6[%c0_8, %c0_9], %11 {strides = array<i32>} : memref<8x128xbf16, #tpu.memory_space<vmem>>, vector<8x128xbf16>,
    return
  }
  func.func @transform_0(%arg0: i32, %arg1: i32) -> (i32, i32) {
    %c0_i32 = arith.constant 0 : i32
    %c0_i32_0 = arith.constant 0 : i32
    return %arg0, %c0_i32 : i32, i32
  }
  func.func @transform_1(%arg0: i32, %arg1: i32) -> (i32, i32) {
    %c0_i32 = arith.constant 0 : i32
    %c0_i32_0 = arith.constant 0 : i32
    return %c0_i32, %arg1 : i32, i32
  }
  func.func @transform_2(%arg0: i32, %arg1: i32) -> (i32, i32) {
    %c0_i32 = arith.constant 0 : i32
    %c0_i32_0 = arith.constant 0 : i32
    return %c0_i32, %arg1 : i32, i32
  }
  func.func @transform_3(%arg0: i32, %arg1: i32) -> (i32, i32) {
    %c0_i32 = arith.constant 0 : i32
    %c0_i32_0 = arith.constant 0 : i32
    return %c0_i32, %arg1 : i32, i32
  }
  func.func @transform_4(%arg0: i32, %arg1: i32) -> (i32, i32) {
    %c0_i32 = arith.constant 0 : i32
    return %arg0, %arg1 : i32, i32
  }
}

module attributes {stable_mosaic.version = 11 : i64} {
  func.func @_mm_bn_single_kernel(%arg0: i32, %arg1: i32, %arg2: memref<8x384xbf16, #tpu.memory_space<vmem>>, %arg3: memref<384x128xbf16, #tpu.memory_space<vmem>>, %arg4: memref<1x128xf32, #tpu.memory_space<vmem>>, %arg5: memref<1x128xf32, #tpu.memory_space<vmem>>, %arg6: memref<8x128xbf16, #tpu.memory_space<vmem>>) attributes {dimension_semantics = [#tpu.dimension_semantics<parallel>, #tpu.dimension_semantics<parallel>], iteration_bounds = array<i64: 1, 1>, scalar_prefetch = 0 : i64, scratch_operands = 0 : i64, tpu.core_type = #tpu.core_type<tc>, window_params = [{transform_indices = @transform_0, window_bounds = array<i64: 8, 384>}, {transform_indices = @transform_1, window_bounds = array<i64: 384, 128>}, {transform_indices = @transform_2, window_bounds = array<i64: 1, 128>}, {transform_indices = @transform_3, window_bounds = array<i64: 1, 128>}, {transform_indices = @transform_4, window_bounds = array<i64: 8, 128>}]} {
    %c0 = arith.constant 0 : index
    %c0_0 = arith.constant 0 : index
    %0 = vector.load %arg2[%c0, %c0_0] : memref<8x384xbf16, #tpu.memory_space<vmem>>, vector<8x384xbf16>
    %c0_1 = arith.constant 0 : index
    %c0_2 = arith.constant 0 : index
    %1 = vector.load %arg3[%c0_1, %c0_2] : memref<384x128xbf16, #tpu.memory_space<vmem>>, vector<384x128xbf16>
    %cst = arith.constant dense<0.000000e+00> : vector<8x128xf32>
    %2 = tpu.matmul %0, %1, %cst {dimension_numbers = #tpu.dot_dimension_numbers<[1], [0], [0], [1], [0, 0, 1, 1], [], []>} : vector<8x384xbf16>, vector<384x128xbf16>, vector<8x128xf32> -> vector<8x128xf32>
    %c0_3 = arith.constant 0 : index
    %c0_4 = arith.constant 0 : index
    %3 = vector.load %arg4[%c0_3, %c0_4] : memref<1x128xf32, #tpu.memory_space<vmem>>, vector<1x128xf32>
    %4 = vector.broadcast %3 : vector<1x128xf32> to vector<8x128xf32>
    %5 = arith.mulf %2, %4 : vector<8x128xf32>
    %c0_5 = arith.constant 0 : index
    %c0_6 = arith.constant 0 : index
    %6 = vector.load %arg5[%c0_5, %c0_6] : memref<1x128xf32, #tpu.memory_space<vmem>>, vector<1x128xf32>
    %7 = vector.broadcast %6 : vector<1x128xf32> to vector<8x128xf32>
    %8 = arith.addf %5, %7 : vector<8x128xf32>
    %cst_7 = arith.constant 0.000000e+00 : f32
    %9 = vector.broadcast %cst_7 : f32 to vector<8x128xf32>
    %10 = arith.maximumf %8, %9 : vector<8x128xf32>
    %11 = arith.truncf %10 : vector<8x128xf32> to vector<8x128xbf16>
    %c0_8 = arith.constant 0 : index
    %c0_9 = arith.constant 0 : index
    %12 = vector.load %arg6[%c0_8, %c0_9] : memref<8x128xbf16, #tpu.memory_space<vmem>>, vector<8x128xbf16>
    tpu.vector_store %arg6[%c0_8, %c0_9], %11 {strides = array<i32>} : memref<8x128xbf16, #tpu.memory_space<vmem>>, vector<8x128xbf16>,
    return
  }
  func.func @transform_0(%arg0: i32, %arg1: i32) -> (i32, i32) {
    %c0_i32 = arith.constant 0 : i32
    %c0_i32_0 = arith.constant 0 : i32
    return %arg0, %c0_i32 : i32, i32
  }
  func.func @transform_1(%arg0: i32, %arg1: i32) -> (i32, i32) {
    %c0_i32 = arith.constant 0 : i32
    %c0_i32_0 = arith.constant 0 : i32
    return %c0_i32, %arg1 : i32, i32
  }
  func.func @transform_2(%arg0: i32, %arg1: i32) -> (i32, i32) {
    %c0_i32 = arith.constant 0 : i32
    %c0_i32_0 = arith.constant 0 : i32
    return %c0_i32, %arg1 : i32, i32
  }
  func.func @transform_3(%arg0: i32, %arg1: i32) -> (i32, i32) {
    %c0_i32 = arith.constant 0 : i32
    %c0_i32_0 = arith.constant 0 : i32
    return %c0_i32, %arg1 : i32, i32
  }
  func.func @transform_4(%arg0: i32, %arg1: i32) -> (i32, i32) {
    %c0_i32 = arith.constant 0 : i32
    return %arg0, %arg1 : i32, i32
  }
}

module attributes {stable_mosaic.version = 11 : i64} {
  func.func @_mm_bn_single_kernel(%arg0: i32, %arg1: i32, %arg2: memref<8x640xbf16, #tpu.memory_space<vmem>>, %arg3: memref<640x128xbf16, #tpu.memory_space<vmem>>, %arg4: memref<1x128xf32, #tpu.memory_space<vmem>>, %arg5: memref<1x128xf32, #tpu.memory_space<vmem>>, %arg6: memref<8x128xbf16, #tpu.memory_space<vmem>>) attributes {dimension_semantics = [#tpu.dimension_semantics<parallel>, #tpu.dimension_semantics<parallel>], iteration_bounds = array<i64: 1, 1>, scalar_prefetch = 0 : i64, scratch_operands = 0 : i64, tpu.core_type = #tpu.core_type<tc>, window_params = [{transform_indices = @transform_0, window_bounds = array<i64: 8, 640>}, {transform_indices = @transform_1, window_bounds = array<i64: 640, 128>}, {transform_indices = @transform_2, window_bounds = array<i64: 1, 128>}, {transform_indices = @transform_3, window_bounds = array<i64: 1, 128>}, {transform_indices = @transform_4, window_bounds = array<i64: 8, 128>}]} {
    %c0 = arith.constant 0 : index
    %c0_0 = arith.constant 0 : index
    %0 = vector.load %arg2[%c0, %c0_0] : memref<8x640xbf16, #tpu.memory_space<vmem>>, vector<8x640xbf16>
    %c0_1 = arith.constant 0 : index
    %c0_2 = arith.constant 0 : index
    %1 = vector.load %arg3[%c0_1, %c0_2] : memref<640x128xbf16, #tpu.memory_space<vmem>>, vector<640x128xbf16>
    %cst = arith.constant dense<0.000000e+00> : vector<8x128xf32>
    %2 = tpu.matmul %0, %1, %cst {dimension_numbers = #tpu.dot_dimension_numbers<[1], [0], [0], [1], [0, 0, 1, 1], [], []>} : vector<8x640xbf16>, vector<640x128xbf16>, vector<8x128xf32> -> vector<8x128xf32>
    %c0_3 = arith.constant 0 : index
    %c0_4 = arith.constant 0 : index
    %3 = vector.load %arg4[%c0_3, %c0_4] : memref<1x128xf32, #tpu.memory_space<vmem>>, vector<1x128xf32>
    %4 = vector.broadcast %3 : vector<1x128xf32> to vector<8x128xf32>
    %5 = arith.mulf %2, %4 : vector<8x128xf32>
    %c0_5 = arith.constant 0 : index
    %c0_6 = arith.constant 0 : index
    %6 = vector.load %arg5[%c0_5, %c0_6] : memref<1x128xf32, #tpu.memory_space<vmem>>, vector<1x128xf32>
    %7 = vector.broadcast %6 : vector<1x128xf32> to vector<8x128xf32>
    %8 = arith.addf %5, %7 : vector<8x128xf32>
    %cst_7 = arith.constant 0.000000e+00 : f32
    %9 = vector.broadcast %cst_7 : f32 to vector<8x128xf32>
    %10 = arith.maximumf %8, %9 : vector<8x128xf32>
    %11 = arith.truncf %10 : vector<8x128xf32> to vector<8x128xbf16>
    %c0_8 = arith.constant 0 : index
    %c0_9 = arith.constant 0 : index
    %12 = vector.load %arg6[%c0_8, %c0_9] : memref<8x128xbf16, #tpu.memory_space<vmem>>, vector<8x128xbf16>
    tpu.vector_store %arg6[%c0_8, %c0_9], %11 {strides = array<i32>} : memref<8x128xbf16, #tpu.memory_space<vmem>>, vector<8x128xbf16>,
    return
  }
  func.func @transform_0(%arg0: i32, %arg1: i32) -> (i32, i32) {
    %c0_i32 = arith.constant 0 : i32
    %c0_i32_0 = arith.constant 0 : i32
    return %arg0, %c0_i32 : i32, i32
  }
  func.func @transform_1(%arg0: i32, %arg1: i32) -> (i32, i32) {
    %c0_i32 = arith.constant 0 : i32
    %c0_i32_0 = arith.constant 0 : i32
    return %c0_i32, %arg1 : i32, i32
  }
  func.func @transform_2(%arg0: i32, %arg1: i32) -> (i32, i32) {
    %c0_i32 = arith.constant 0 : i32
    %c0_i32_0 = arith.constant 0 : i32
    return %c0_i32, %arg1 : i32, i32
  }
  func.func @transform_3(%arg0: i32, %arg1: i32) -> (i32, i32) {
    %c0_i32 = arith.constant 0 : i32
    %c0_i32_0 = arith.constant 0 : i32
    return %c0_i32, %arg1 : i32, i32
  }
  func.func @transform_4(%arg0: i32, %arg1: i32) -> (i32, i32) {
    %c0_i32 = arith.constant 0 : i32
    return %arg0, %arg1 : i32, i32
  }
}

module attributes {stable_mosaic.version = 11 : i64} {
  func.func @_mm_bn_add_single_kernel(%arg0: i32, %arg1: i32, %arg2: memref<8x128xbf16, #tpu.memory_space<vmem>>, %arg3: memref<128x256xbf16, #tpu.memory_space<vmem>>, %arg4: memref<1x256xf32, #tpu.memory_space<vmem>>, %arg5: memref<1x256xf32, #tpu.memory_space<vmem>>, %arg6: memref<8x256xbf16, #tpu.memory_space<vmem>>, %arg7: memref<8x256xbf16, #tpu.memory_space<vmem>>) attributes {dimension_semantics = [#tpu.dimension_semantics<parallel>, #tpu.dimension_semantics<parallel>], iteration_bounds = array<i64: 1, 1>, scalar_prefetch = 0 : i64, scratch_operands = 0 : i64, tpu.core_type = #tpu.core_type<tc>, window_params = [{transform_indices = @transform_0, window_bounds = array<i64: 8, 128>}, {transform_indices = @transform_1, window_bounds = array<i64: 128, 256>}, {transform_indices = @transform_2, window_bounds = array<i64: 1, 256>}, {transform_indices = @transform_3, window_bounds = array<i64: 1, 256>}, {transform_indices = @transform_4, window_bounds = array<i64: 8, 256>}, {transform_indices = @transform_5, window_bounds = array<i64: 8, 256>}]} {
    %c0 = arith.constant 0 : index
    %c0_0 = arith.constant 0 : index
    %0 = vector.load %arg2[%c0, %c0_0] : memref<8x128xbf16, #tpu.memory_space<vmem>>, vector<8x128xbf16>
    %c0_1 = arith.constant 0 : index
    %c0_2 = arith.constant 0 : index
    %1 = vector.load %arg3[%c0_1, %c0_2] : memref<128x256xbf16, #tpu.memory_space<vmem>>, vector<128x256xbf16>
    %cst = arith.constant dense<0.000000e+00> : vector<8x256xf32>
    %2 = tpu.matmul %0, %1, %cst {dimension_numbers = #tpu.dot_dimension_numbers<[1], [0], [0], [1], [0, 0, 1, 1], [], []>} : vector<8x128xbf16>, vector<128x256xbf16>, vector<8x256xf32> -> vector<8x256xf32>
    %c0_3 = arith.constant 0 : index
    %c0_4 = arith.constant 0 : index
    %3 = vector.load %arg4[%c0_3, %c0_4] : memref<1x256xf32, #tpu.memory_space<vmem>>, vector<1x256xf32>
    %4 = vector.broadcast %3 : vector<1x256xf32> to vector<8x256xf32>
    %5 = arith.mulf %2, %4 : vector<8x256xf32>
    %c0_5 = arith.constant 0 : index
    %c0_6 = arith.constant 0 : index
    %6 = vector.load %arg5[%c0_5, %c0_6] : memref<1x256xf32, #tpu.memory_space<vmem>>, vector<1x256xf32>
    %7 = vector.broadcast %6 : vector<1x256xf32> to vector<8x256xf32>
    %8 = arith.addf %5, %7 : vector<8x256xf32>
    %c0_7 = arith.constant 0 : index
    %c0_8 = arith.constant 0 : index
    %9 = vector.load %arg6[%c0_7, %c0_8] : memref<8x256xbf16, #tpu.memory_space<vmem>>, vector<8x256xbf16>
    %10 = arith.extf %9 : vector<8x256xbf16> to vector<8x256xf32>
    %11 = arith.addf %8, %10 : vector<8x256xf32>
    %cst_9 = arith.constant 0.000000e+00 : f32
    %12 = vector.broadcast %cst_9 : f32 to vector<8x256xf32>
    %13 = arith.maximumf %11, %12 : vector<8x256xf32>
    %14 = arith.truncf %13 : vector<8x256xf32> to vector<8x256xbf16>
    %c0_10 = arith.constant 0 : index
    %c0_11 = arith.constant 0 : index
    %15 = vector.load %arg7[%c0_10, %c0_11] : memref<8x256xbf16, #tpu.memory_space<vmem>>, vector<8x256xbf16>
    tpu.vector_store %arg7[%c0_10, %c0_11], %14 {strides = array<i32>} : memref<8x256xbf16, #tpu.memory_space<vmem>>, vector<8x256xbf16>,
    return
  }
  func.func @transform_0(%arg0: i32, %arg1: i32) -> (i32, i32) {
    %c0_i32 = arith.constant 0 : i32
    %c0_i32_0 = arith.constant 0 : i32
    return %arg0, %c0_i32 : i32, i32
  }
  func.func @transform_1(%arg0: i32, %arg1: i32) -> (i32, i32) {
    %c0_i32 = arith.constant 0 : i32
    %c0_i32_0 = arith.constant 0 : i32
    return %c0_i32, %arg1 : i32, i32
  }
  func.func @transform_2(%arg0: i32, %arg1: i32) -> (i32, i32) {
    %c0_i32 = arith.constant 0 : i32
    %c0_i32_0 = arith.constant 0 : i32
    return %c0_i32, %arg1 : i32, i32
  }
  func.func @transform_3(%arg0: i32, %arg1: i32) -> (i32, i32) {
    %c0_i32 = arith.constant 0 : i32
    %c0_i32_0 = arith.constant 0 : i32
    return %c0_i32, %arg1 : i32, i32
  }
  func.func @transform_4(%arg0: i32, %arg1: i32) -> (i32, i32) {
    %c0_i32 = arith.constant 0 : i32
    return %arg0, %arg1 : i32, i32
  }
  func.func @transform_5(%arg0: i32, %arg1: i32) -> (i32, i32) {
    %c0_i32 = arith.constant 0 : i32
    return %arg0, %arg1 : i32, i32
  }
}

module attributes {stable_mosaic.version = 11 : i64} {
  func.func @_mm_bn_single_kernel(%arg0: i32, %arg1: i32, %arg2: memref<8x128xbf16, #tpu.memory_space<vmem>>, %arg3: memref<128x256xbf16, #tpu.memory_space<vmem>>, %arg4: memref<1x256xf32, #tpu.memory_space<vmem>>, %arg5: memref<1x256xf32, #tpu.memory_space<vmem>>, %arg6: memref<8x256xbf16, #tpu.memory_space<vmem>>) attributes {dimension_semantics = [#tpu.dimension_semantics<parallel>, #tpu.dimension_semantics<parallel>], iteration_bounds = array<i64: 1, 1>, scalar_prefetch = 0 : i64, scratch_operands = 0 : i64, tpu.core_type = #tpu.core_type<tc>, window_params = [{transform_indices = @transform_0, window_bounds = array<i64: 8, 128>}, {transform_indices = @transform_1, window_bounds = array<i64: 128, 256>}, {transform_indices = @transform_2, window_bounds = array<i64: 1, 256>}, {transform_indices = @transform_3, window_bounds = array<i64: 1, 256>}, {transform_indices = @transform_4, window_bounds = array<i64: 8, 256>}]} {
    %c0 = arith.constant 0 : index
    %c0_0 = arith.constant 0 : index
    %0 = vector.load %arg2[%c0, %c0_0] : memref<8x128xbf16, #tpu.memory_space<vmem>>, vector<8x128xbf16>
    %c0_1 = arith.constant 0 : index
    %c0_2 = arith.constant 0 : index
    %1 = vector.load %arg3[%c0_1, %c0_2] : memref<128x256xbf16, #tpu.memory_space<vmem>>, vector<128x256xbf16>
    %cst = arith.constant dense<0.000000e+00> : vector<8x256xf32>
    %2 = tpu.matmul %0, %1, %cst {dimension_numbers = #tpu.dot_dimension_numbers<[1], [0], [0], [1], [0, 0, 1, 1], [], []>} : vector<8x128xbf16>, vector<128x256xbf16>, vector<8x256xf32> -> vector<8x256xf32>
    %c0_3 = arith.constant 0 : index
    %c0_4 = arith.constant 0 : index
    %3 = vector.load %arg4[%c0_3, %c0_4] : memref<1x256xf32, #tpu.memory_space<vmem>>, vector<1x256xf32>
    %4 = vector.broadcast %3 : vector<1x256xf32> to vector<8x256xf32>
    %5 = arith.mulf %2, %4 : vector<8x256xf32>
    %c0_5 = arith.constant 0 : index
    %c0_6 = arith.constant 0 : index
    %6 = vector.load %arg5[%c0_5, %c0_6] : memref<1x256xf32, #tpu.memory_space<vmem>>, vector<1x256xf32>
    %7 = vector.broadcast %6 : vector<1x256xf32> to vector<8x256xf32>
    %8 = arith.addf %5, %7 : vector<8x256xf32>
    %9 = arith.truncf %8 : vector<8x256xf32> to vector<8x256xbf16>
    %c0_7 = arith.constant 0 : index
    %c0_8 = arith.constant 0 : index
    %10 = vector.load %arg6[%c0_7, %c0_8] : memref<8x256xbf16, #tpu.memory_space<vmem>>, vector<8x256xbf16>
    tpu.vector_store %arg6[%c0_7, %c0_8], %9 {strides = array<i32>} : memref<8x256xbf16, #tpu.memory_space<vmem>>, vector<8x256xbf16>,
    return
  }
  func.func @transform_0(%arg0: i32, %arg1: i32) -> (i32, i32) {
    %c0_i32 = arith.constant 0 : i32
    %c0_i32_0 = arith.constant 0 : i32
    return %arg0, %c0_i32 : i32, i32
  }
  func.func @transform_1(%arg0: i32, %arg1: i32) -> (i32, i32) {
    %c0_i32 = arith.constant 0 : i32
    %c0_i32_0 = arith.constant 0 : i32
    return %c0_i32, %arg1 : i32, i32
  }
  func.func @transform_2(%arg0: i32, %arg1: i32) -> (i32, i32) {
    %c0_i32 = arith.constant 0 : i32
    %c0_i32_0 = arith.constant 0 : i32
    return %c0_i32, %arg1 : i32, i32
  }
  func.func @transform_3(%arg0: i32, %arg1: i32) -> (i32, i32) {
    %c0_i32 = arith.constant 0 : i32
    %c0_i32_0 = arith.constant 0 : i32
    return %c0_i32, %arg1 : i32, i32
  }
  func.func @transform_4(%arg0: i32, %arg1: i32) -> (i32, i32) {
    %c0_i32 = arith.constant 0 : i32
    return %arg0, %arg1 : i32, i32
  }
}

module attributes {stable_mosaic.version = 11 : i64} {
  func.func @_mm_bn_single_kernel(%arg0: i32, %arg1: i32, %arg2: memref<8x256xbf16, #tpu.memory_space<vmem>>, %arg3: memref<256x128xbf16, #tpu.memory_space<vmem>>, %arg4: memref<1x128xf32, #tpu.memory_space<vmem>>, %arg5: memref<1x128xf32, #tpu.memory_space<vmem>>, %arg6: memref<8x128xbf16, #tpu.memory_space<vmem>>) attributes {dimension_semantics = [#tpu.dimension_semantics<parallel>, #tpu.dimension_semantics<parallel>], iteration_bounds = array<i64: 1, 1>, scalar_prefetch = 0 : i64, scratch_operands = 0 : i64, tpu.core_type = #tpu.core_type<tc>, window_params = [{transform_indices = @transform_0, window_bounds = array<i64: 8, 256>}, {transform_indices = @transform_1, window_bounds = array<i64: 256, 128>}, {transform_indices = @transform_2, window_bounds = array<i64: 1, 128>}, {transform_indices = @transform_3, window_bounds = array<i64: 1, 128>}, {transform_indices = @transform_4, window_bounds = array<i64: 8, 128>}]} {
    %c0 = arith.constant 0 : index
    %c0_0 = arith.constant 0 : index
    %0 = vector.load %arg2[%c0, %c0_0] : memref<8x256xbf16, #tpu.memory_space<vmem>>, vector<8x256xbf16>
    %c0_1 = arith.constant 0 : index
    %c0_2 = arith.constant 0 : index
    %1 = vector.load %arg3[%c0_1, %c0_2] : memref<256x128xbf16, #tpu.memory_space<vmem>>, vector<256x128xbf16>
    %cst = arith.constant dense<0.000000e+00> : vector<8x128xf32>
    %2 = tpu.matmul %0, %1, %cst {dimension_numbers = #tpu.dot_dimension_numbers<[1], [0], [0], [1], [0, 0, 1, 1], [], []>} : vector<8x256xbf16>, vector<256x128xbf16>, vector<8x128xf32> -> vector<8x128xf32>
    %c0_3 = arith.constant 0 : index
    %c0_4 = arith.constant 0 : index
    %3 = vector.load %arg4[%c0_3, %c0_4] : memref<1x128xf32, #tpu.memory_space<vmem>>, vector<1x128xf32>
    %4 = vector.broadcast %3 : vector<1x128xf32> to vector<8x128xf32>
    %5 = arith.mulf %2, %4 : vector<8x128xf32>
    %c0_5 = arith.constant 0 : index
    %c0_6 = arith.constant 0 : index
    %6 = vector.load %arg5[%c0_5, %c0_6] : memref<1x128xf32, #tpu.memory_space<vmem>>, vector<1x128xf32>
    %7 = vector.broadcast %6 : vector<1x128xf32> to vector<8x128xf32>
    %8 = arith.addf %5, %7 : vector<8x128xf32>
    %cst_7 = arith.constant 0.000000e+00 : f32
    %9 = vector.broadcast %cst_7 : f32 to vector<8x128xf32>
    %10 = arith.maximumf %8, %9 : vector<8x128xf32>
    %11 = arith.truncf %10 : vector<8x128xf32> to vector<8x128xbf16>
    %c0_8 = arith.constant 0 : index
    %c0_9 = arith.constant 0 : index
    %12 = vector.load %arg6[%c0_8, %c0_9] : memref<8x128xbf16, #tpu.memory_space<vmem>>, vector<8x128xbf16>
    tpu.vector_store %arg6[%c0_8, %c0_9], %11 {strides = array<i32>} : memref<8x128xbf16, #tpu.memory_space<vmem>>, vector<8x128xbf16>,
    return
  }
  func.func @transform_0(%arg0: i32, %arg1: i32) -> (i32, i32) {
    %c0_i32 = arith.constant 0 : i32
    %c0_i32_0 = arith.constant 0 : i32
    return %arg0, %c0_i32 : i32, i32
  }
  func.func @transform_1(%arg0: i32, %arg1: i32) -> (i32, i32) {
    %c0_i32 = arith.constant 0 : i32
    %c0_i32_0 = arith.constant 0 : i32
    return %c0_i32, %arg1 : i32, i32
  }
  func.func @transform_2(%arg0: i32, %arg1: i32) -> (i32, i32) {
    %c0_i32 = arith.constant 0 : i32
    %c0_i32_0 = arith.constant 0 : i32
    return %c0_i32, %arg1 : i32, i32
  }
  func.func @transform_3(%arg0: i32, %arg1: i32) -> (i32, i32) {
    %c0_i32 = arith.constant 0 : i32
    %c0_i32_0 = arith.constant 0 : i32
    return %c0_i32, %arg1 : i32, i32
  }
  func.func @transform_4(%arg0: i32, %arg1: i32) -> (i32, i32) {
    %c0_i32 = arith.constant 0 : i32
    return %arg0, %arg1 : i32, i32
  }
}

</mosaic_0001>

<bundles_post_ra>
// kernel: run.31
= control target key start
LH: loop header
LB: loop body
LE: loop exit
PB: predicated region body
PF: predicated region fallthrough
CT: control target
= control target key end

     0   :  { %s2073_s1 = inlined_call_operand.vmem [shape: bf16[128,128], index: 1, kind: input, shape index: {}]   ;;  %s2074_s0 = inlined_call_operand.vmem [shape: bf16[512,128], index: 0, kind: input, shape index: {}]   ;;  %s2075_s2 = inlined_call_operand.vmem [shape: f32[1,128], index: 2, kind: input, shape index: {}]   ;;  %s2076_s3 = inlined_call_operand.vmem [shape: f32[1,128], index: 3, kind: input, shape index: {}]   ;;  %s2077_s4 = inlined_call_operand.vmem [shape: bf16[512,128], index: 4, kind: output, shape index: {}]  }
   0x1   :  { %v1654_v0 = vld [vmem:[%s2073_s1] sm:$0xff]   ;;  %v1655_v1 = vld [vmem:[%s2073_s1 + $0x8] sm:$0xff]   ;;  %v1656_v2 = vld [vmem:[%s2073_s1 + $0x10] sm:$0xff]  }
   0x2   :  { %1558 = vmatprep.subr.bf16.mxu0 %v1654_v0  ;;  %1638 = vmatprep.subr.bf16.mxu1 %v1654_v0  ;;  %v1657_v3 = vld [vmem:[%s2073_s1 + $0x18] sm:$0xff]   ;;  %v1662_v4 = vld [vmem:[%s2074_s0] sm:$0xff]   ;;  %v1659_v7 = vld [vmem:[%s2073_s1 + $0x28] sm:$0xff]  }
   0x3   :  { %1559 = vmatpush3.bf16.msra.mxu0 %v1654_v0  ;;  %1646 = vmatpush3.bf16.msra.mxu1 %v1654_v0  ;;  %v1663_v5 = vld [vmem:[%s2074_s0 + $0x80] sm:$0xff]   ;;  %v1660_v8 = vld [vmem:[%s2073_s1 + $0x30] sm:$0xff]   ;;  %v1661_v9 = vld [vmem:[%s2073_s1 + $0x38] sm:$0xff]  }
   0x4   :  { %1560 = vmatprep.subr.bf16.mxu0 %v1655_v1  ;;  %1639 = vmatprep.subr.bf16.mxu1 %v1655_v1  ;;  %v1658_v6 = vld [vmem:[%s2073_s1 + $0x20] sm:$0xff]   ;;  %v1664_v10 = vld [vmem:[%s2074_s0 + $0x8] sm:$0xff]   ;;  %v1666_v12 = vld [vmem:[%s2074_s0 + $0x10] sm:$0xff]  }
   0x5   :  { %1574 = vmatprep.mubr.bf16.mxu0 %v1662_v4  ;;  %1606 = vmatprep.mubr.bf16.mxu1 %v1663_v5  ;;  %v1665_v11 = vld [vmem:[%s2074_s0 + $0x88] sm:$0xff]   ;;  %v1667_v13 = vld [vmem:[%s2074_s0 + $0x90] sm:$0xff]   ;;  %v1668_v14 = vld [vmem:[%s2074_s0 + $0x18] sm:$0xff]  }
   0x6   :  { %v1669_v15 = vld [vmem:[%s2074_s0 + $0x98] sm:$0xff]   ;;  %v1670_v16 = vld [vmem:[%s2074_s0 + $0x20] sm:$0xff]   ;;  %v1672_v18 = vld [vmem:[%s2074_s0 + $0x28] sm:$0xff]  }
   0x7   :  { %1561 = vmatpush3.bf16.msra.mxu0 %v1655_v1  ;;  %1647 = vmatpush3.bf16.msra.mxu1 %v1655_v1  ;;  %v1671_v17 = vld [vmem:[%s2074_s0 + $0xa0] sm:$0xff]   ;;  %v1673_v19 = vld [vmem:[%s2074_s0 + $0xa8] sm:$0xff]   ;;  %v1674_v20 = vld [vmem:[%s2074_s0 + $0x30] sm:$0xff]  }
   0x8   :  { %1562 = vmatprep.subr.bf16.mxu0 %v1656_v2  ;;  %1640 = vmatprep.subr.bf16.mxu1 %v1656_v2  ;;  %v1675_v21 = vld [vmem:[%s2074_s0 + $0xb0] sm:$0xff]   ;;  %v1676_v22 = vld [vmem:[%s2074_s0 + $0x38] sm:$0xff]   ;;  %v1678_v24 = vld [vmem:[%s2074_s0 + $0x40] sm:$0xff]  }
   0x9   :  { %v1677_v23 = vld [vmem:[%s2074_s0 + $0xb8] sm:$0xff]   ;;  %v1679_v25 = vld [vmem:[%s2074_s0 + $0xc0] sm:$0xff]   ;;  %v1680_v26 = vld [vmem:[%s2074_s0 + $0x48] sm:$0xff]  }
   0xa   :  { %v1681_v27 = vld [vmem:[%s2074_s0 + $0xc8] sm:$0xff]   ;;  %v1682_v28 = vld [vmem:[%s2074_s0 + $0x50] sm:$0xff]   ;;  %v1684_v30 = vld [vmem:[%s2074_s0 + $0x58] sm:$0xff]  }
   0xb   :  { %1563 = vmatpush3.bf16.msra.mxu0 %v1656_v2  ;;  %1648 = vmatpush3.bf16.msra.mxu1 %v1656_v2  ;;  %v1683_v29 = vld [vmem:[%s2074_s0 + $0xd0] sm:$0xff]   ;;  %v1685_v31 = vld [vmem:[%s2074_s0 + $0xd8] sm:$0xff]   ;;  %v1686_v32 = vld [vmem:[%s2074_s0 + $0x60] sm:$0xff]  }
   0xc   :  { %1564 = vmatprep.subr.bf16.mxu0 %v1657_v3  ;;  %1641 = vmatprep.subr.bf16.mxu1 %v1657_v3  ;;  %v1687_v33 = vld [vmem:[%s2074_s0 + $0xe0] sm:$0xff]   ;;  %v1688_v34 = vld [vmem:[%s2074_s0 + $0x68] sm:$0xff]   ;;  %v1690_v36 = vld [vmem:[%s2074_s0 + $0x70] sm:$0xff]  }
   0xd   :  { %v1689_v35 = vld [vmem:[%s2074_s0 + $0xe8] sm:$0xff]   ;;  %v1691_v37 = vld [vmem:[%s2074_s0 + $0xf0] sm:$0xff]   ;;  %v1692_v38 = vld [vmem:[%s2074_s0 + $0x78] sm:$0xff]  }
   0xe   :  { %v1693_v39 = vld [vmem:[%s2074_s0 + $0xf8] sm:$0xff]   ;;  %v1842_v40 = vld [vmem:[%s2075_s2] ss:$0 sm:$0xff] }
   0xf   :  { %1565 = vmatpush3.bf16.msra.mxu0 %v1657_v3  ;;  %1649 = vmatpush3.bf16.msra.mxu1 %v1657_v3  ;;  %v1847_v42 = vld [vmem:[%s2076_s3] ss:$0 sm:$0xff] }
  0x10   :  { %1566 = vmatprep.subr.bf16.mxu0 %v1658_v6  ;;  %1642 = vmatprep.subr.bf16.mxu1 %v1658_v6 }
  0x13   :  { %1567 = vmatpush3.bf16.msra.mxu0 %v1658_v6  ;;  %1650 = vmatpush3.bf16.msra.mxu1 %v1658_v6 }
  0x14   :  { %1568 = vmatprep.subr.bf16.mxu0 %v1659_v7  ;;  %1643 = vmatprep.subr.bf16.mxu1 %v1659_v7 }
  0x17   :  { %1569 = vmatpush3.bf16.msra.mxu0 %v1659_v7  ;;  %1651 = vmatpush3.bf16.msra.mxu1 %v1659_v7 }
  0x18   :  { %1570 = vmatprep.subr.bf16.mxu0 %v1660_v8  ;;  %1644 = vmatprep.subr.bf16.mxu1 %v1660_v8 }
  0x1b   :  { %1571 = vmatpush3.bf16.msra.mxu0 %v1660_v8  ;;  %1652 = vmatpush3.bf16.msra.mxu1 %v1660_v8 }
  0x1c   :  { %1572 = vmatprep.subr.bf16.mxu0 %v1661_v9  ;;  %1645 = vmatprep.subr.bf16.mxu1 %v1661_v9 }
  0x1f   :  { %1573 = vmatpush3.bf16.msra.mxu0 %v1661_v9  ;;  %1653 = vmatpush3.bf16.msra.mxu1 %v1661_v9 }
  0x22   :  { %1575 = vmatmul.mubr.bf16.vlgmr.msra.gmra.mrb[0].mxu0 %v1664_v10  ;;  %1607 = vmatmul.mubr.bf16.vlgmr.msra.gmra.mrb[0].mxu1 %v1665_v11 }
  0x23   :  { %1578 = vmatprep.mubr.bf16.mxu0 %v1666_v12  ;;  %1610 = vmatprep.mubr.bf16.mxu1 %v1667_v13 }
  0x2a   :  { %1579 = vmatmul.mubr.bf16.gmra.mrb[4].mxu0 %v1668_v14  ;;  %1611 = vmatmul.mubr.bf16.gmra.mrb[4].mxu1 %v1669_v15 }
  0x2b   :  { %1582 = vmatprep.mubr.bf16.mxu0 %v1670_v16  ;;  %1614 = vmatprep.mubr.bf16.mxu1 %v1671_v17 }
  0x32   :  { %1583 = vmatmul.mubr.bf16.gmra.mrb[8].mxu0 %v1672_v18  ;;  %1615 = vmatmul.mubr.bf16.gmra.mrb[8].mxu1 %v1673_v19 }
  0x33   :  { %1586 = vmatprep.mubr.bf16.mxu0 %v1674_v20  ;;  %1618 = vmatprep.mubr.bf16.mxu1 %v1675_v21 }
  0x3a   :  { %1587 = vmatmul.mubr.bf16.gmra.mrb[12].mxu0 %v1676_v22  ;;  %1619 = vmatmul.mubr.bf16.gmra.mrb[12].mxu1 %v1677_v23 }
  0x3b   :  { %1590 = vmatprep.mubr.bf16.mxu0 %v1678_v24  ;;  %1622 = vmatprep.mubr.bf16.mxu1 %v1679_v25 }
  0x42   :  { %1591 = vmatmul.mubr.bf16.gmra.mrb[16].mxu0 %v1680_v26  ;;  %1623 = vmatmul.mubr.bf16.gmra.mrb[16].mxu1 %v1681_v27 }
  0x43   :  { %1594 = vmatprep.mubr.bf16.mxu0 %v1682_v28  ;;  %1626 = vmatprep.mubr.bf16.mxu1 %v1683_v29 }
  0x4a   :  { %1595 = vmatmul.mubr.bf16.gmra.mrb[20].mxu0 %v1684_v30  ;;  %1627 = vmatmul.mubr.bf16.gmra.mrb[20].mxu1 %v1685_v31 }
  0x4b   :  { %1598 = vmatprep.mubr.bf16.mxu0 %v1686_v32  ;;  %1630 = vmatprep.mubr.bf16.mxu1 %v1687_v33 }
  0x52   :  { %1599 = vmatmul.mubr.bf16.gmra.mrb[24].mxu0 %v1688_v34  ;;  %1631 = vmatmul.mubr.bf16.gmra.mrb[24].mxu1 %v1689_v35 }
  0x53   :  { %1602 = vmatprep.mubr.bf16.mxu0 %v1690_v36  ;;  %1634 = vmatprep.mubr.bf16.mxu1 %v1691_v37 }
  0x5a   :  { %1603 = vmatmul.mubr.bf16.gmra.mrb[28].mxu0 %v1692_v38  ;;  %1635 = vmatmul.mubr.bf16.gmra.mrb[28].mxu1 %v1693_v39 }
  0xf5   :  { %v1576_v41 = vpop.f32.mrb[0].mxu0  ;;  %v1608_v43 = vpop.f32.mrb[0].mxu1 }
  0xf6   :  { %v636_v44 = vmul.f32 %v1576_v41, %v1842_v40  ;;  %v668_v45 = vmul.f32 %v1608_v43, %v1842_v40  ;;  %v372_v46 = vpop.f32.mrb[1].mxu0  ;;  %v500_v47 = vpop.f32.mrb[1].mxu1 }
  0xf7   :  { %v634_v48 = vmul.f32 %v1842_v40, %v372_v46  ;;  %v666_v49 = vmul.f32 %v1842_v40, %v500_v47  ;;  %v1577_v50 = vpop.f32.mrb[2].mxu0  ;;  %v1609_v51 = vpop.f32.mrb[2].mxu1 }
  0xf8   :  { %v707_v52 = vadd.f32 %v1847_v42, %v636_v44  ;;  %v739_v53 = vadd.f32 %v1847_v42, %v668_v45  ;;  %v637_v54 = vmul.f32 %v1577_v50, %v1842_v40  ;;  %v669_v55 = vmul.f32 %v1609_v51, %v1842_v40  ;;  %v375_v56 = vpop.f32.mrb[3].mxu0  ;;  %v503_v57 = vpop.f32.mrb[3].mxu1 }
  0xf9   :  { %v705_v58 = vadd.f32 %v1847_v42, %v634_v48  ;;  %v737_v59 = vadd.f32 %v1847_v42, %v666_v49  ;;  %v635_v60 = vmul.f32 %v1842_v40, %v375_v56  ;;  %v667_v61 = vmul.f32 %v1842_v40, %v503_v57 }
  0xfa   :  { %v708_v62 = vadd.f32 %v1847_v42, %v637_v54  ;;  %v740_v63 = vadd.f32 %v1847_v42, %v669_v55  ;;  %v771_v2 = vmax.f32 %v707_v52, 0.0  ;;  %v803_v3 = vmax.f32 %v739_v53, 0.0 }
  0xfb   :  { %v706_v0 = vadd.f32 %v1847_v42, %v635_v60  ;;  %v738_v1 = vadd.f32 %v1847_v42, %v667_v61  ;;  %v769_v6 = vmax.f32 %v705_v58, 0.0  ;;  %v801_v7 = vmax.f32 %v737_v59, 0.0 }
  0xfc   :  { %v772_v4 = vmax.f32 %v708_v62, 0.0  ;;  %v804_v5 = vmax.f32 %v740_v63, 0.0 }
  0xfd   :  { %v770_v8 = vmax.f32 %v706_v0, 0.0  ;;  %v802_v9 = vmax.f32 %v738_v1, 0.0  ;;  %v1580_v10 = vpop.f32.mrb[4].mxu0  ;;  %v1612_v11 = vpop.f32.mrb[4].mxu1 }
  0xfe   :  { %v1335_v12 = vpack.c.bf16 %v772_v4, %v771_v2  ;;  %v1415_v13 = vpack.c.bf16 %v804_v5, %v803_v3  ;;  %v640_v14 = vmul.f32 %v1580_v10, %v1842_v40  ;;  %v672_v15 = vmul.f32 %v1612_v11, %v1842_v40  ;;  %v388_v16 = vpop.f32.mrb[5].mxu0  ;;  %v516_v17 = vpop.f32.mrb[5].mxu1 }
  0xff   :  { %v1330_v18 = vpack.c.bf16 %v770_v8, %v769_v6  ;;  %v1410_v19 = vpack.c.bf16 %v802_v9, %v801_v7  ;;  %v638_v20 = vmul.f32 %v1842_v40, %v388_v16  ;;  %v670_v21 = vmul.f32 %v1842_v40, %v516_v17  ;;  %v1581_v22 = vpop.f32.mrb[6].mxu0  ;;  %v1613_v23 = vpop.f32.mrb[6].mxu1 }
 0x100   :  { %1487 = vst [vmem:[%s2077_s4 + $0x8] sm:$0xff] %v1335_v12   ;;  %1503 = vst [vmem:[%s2077_s4 + $0x88] sm:$0xff] %v1415_v13   ;;  %v711_v24 = vadd.f32 %v1847_v42, %v640_v14  ;;  %v743_v25 = vadd.f32 %v1847_v42, %v672_v15  ;;  %v641_v26 = vmul.f32 %v1581_v22, %v1842_v40  ;;  %v391_v28 = vpop.f32.mrb[7].mxu0  ;;  %v519_v29 = vpop.f32.mrb[7].mxu1 }
 0x101   :  { %v673_v27 = vmul.f32 %v1613_v23, %v1842_v40  ;;  %1331 = vst [vmem:[%s2077_s4] sm:$0xff] %v1330_v18   ;;  %1502 = vst [vmem:[%s2077_s4 + $0x80] sm:$0xff] %v1410_v19   ;;  %v709_v30 = vadd.f32 %v1847_v42, %v638_v20  ;;  %v741_v31 = vadd.f32 %v1847_v42, %v670_v21 }
 0x102   :  { %v639_v32 = vmul.f32 %v1842_v40, %v391_v28  ;;  %v671_v33 = vmul.f32 %v1842_v40, %v519_v29  ;;  %v712_v34 = vadd.f32 %v1847_v42, %v641_v26  ;;  %v775_v38 = vmax.f32 %v711_v24, 0.0 }
 0x103   :  { %v744_v35 = vadd.f32 %v1847_v42, %v673_v27  ;;  %v807_v39 = vmax.f32 %v743_v25, 0.0  ;;  %v773_v44 = vmax.f32 %v709_v30, 0.0  ;;  %v805_v45 = vmax.f32 %v741_v31, 0.0 }
 0x104   :  { %v710_v36 = vadd.f32 %v1847_v42, %v639_v32  ;;  %v742_v37 = vadd.f32 %v1847_v42, %v671_v33  ;;  %v776_v41 = vmax.f32 %v712_v34, 0.0 }
 0x105   :  { %v808_v43 = vmax.f32 %v744_v35, 0.0  ;;  %v1584_v48 = vpop.f32.mrb[8].mxu0  ;;  %v1616_v49 = vpop.f32.mrb[8].mxu1 }
 0x106   :  { %v774_v46 = vmax.f32 %v710_v36, 0.0  ;;  %v806_v47 = vmax.f32 %v742_v37, 0.0  ;;  %v1345_v50 = vpack.c.bf16 %v776_v41, %v775_v38  ;;  %v644_v52 = vmul.f32 %v1584_v48, %v1842_v40  ;;  %v404_v54 = vpop.f32.mrb[9].mxu0  ;;  %v532_v55 = vpop.f32.mrb[9].mxu1 }
 0x107   :  { %v1425_v51 = vpack.c.bf16 %v808_v43, %v807_v39  ;;  %v676_v53 = vmul.f32 %v1616_v49, %v1842_v40  ;;  %v642_v58 = vmul.f32 %v1842_v40, %v404_v54  ;;  %v674_v59 = vmul.f32 %v1842_v40, %v532_v55  ;;  %v1585_v60 = vpop.f32.mrb[10].mxu0  ;;  %v1617_v61 = vpop.f32.mrb[10].mxu1 }
 0x108   :  { %v1340_v56 = vpack.c.bf16 %v774_v46, %v773_v44  ;;  %v1420_v57 = vpack.c.bf16 %v806_v47, %v805_v45  ;;  %1489 = vst [vmem:[%s2077_s4 + $0x18] sm:$0xff] %v1345_v50   ;;  %v715_v62 = vadd.f32 %v1847_v42, %v644_v52  ;;  %v645_v0 = vmul.f32 %v1585_v60, %v1842_v40  ;;  %v407_v2 = vpop.f32.mrb[11].mxu0  ;;  %v535_v3 = vpop.f32.mrb[11].mxu1 }
 0x109   :  { %1505 = vst [vmem:[%s2077_s4 + $0x98] sm:$0xff] %v1425_v51   ;;  %v747_v63 = vadd.f32 %v1847_v42, %v676_v53  ;;  %v677_v1 = vmul.f32 %v1617_v61, %v1842_v40  ;;  %v713_v4 = vadd.f32 %v1847_v42, %v642_v58  ;;  %v745_v5 = vadd.f32 %v1847_v42, %v674_v59 }
 0x10a   :  { %1488 = vst [vmem:[%s2077_s4 + $0x10] sm:$0xff] %v1340_v56   ;;  %1504 = vst [vmem:[%s2077_s4 + $0x90] sm:$0xff] %v1420_v57   ;;  %v643_v6 = vmul.f32 %v1842_v40, %v407_v2  ;;  %v675_v7 = vmul.f32 %v1842_v40, %v535_v3  ;;  %v716_v8 = vadd.f32 %v1847_v42, %v645_v0  ;;  %v779_v12 = vmax.f32 %v715_v62, 0.0 }
 0x10b   :  { %v748_v9 = vadd.f32 %v1847_v42, %v677_v1  ;;  %v811_v13 = vmax.f32 %v747_v63, 0.0  ;;  %v777_v16 = vmax.f32 %v713_v4, 0.0  ;;  %v809_v17 = vmax.f32 %v745_v5, 0.0 }
 0x10c   :  { %v714_v10 = vadd.f32 %v1847_v42, %v643_v6  ;;  %v746_v11 = vadd.f32 %v1847_v42, %v675_v7  ;;  %v780_v14 = vmax.f32 %v716_v8, 0.0 }
 0x10d   :  { %v812_v15 = vmax.f32 %v748_v9, 0.0  ;;  %v1588_v20 = vpop.f32.mrb[12].mxu0  ;;  %v1620_v21 = vpop.f32.mrb[12].mxu1 }
 0x10e   :  { %v778_v18 = vmax.f32 %v714_v10, 0.0  ;;  %v810_v19 = vmax.f32 %v746_v11, 0.0  ;;  %v1355_v22 = vpack.c.bf16 %v780_v14, %v779_v12  ;;  %v648_v24 = vmul.f32 %v1588_v20, %v1842_v40  ;;  %v420_v26 = vpop.f32.mrb[13].mxu0  ;;  %v548_v27 = vpop.f32.mrb[13].mxu1 }
 0x10f   :  { %v1435_v23 = vpack.c.bf16 %v812_v15, %v811_v13  ;;  %v680_v25 = vmul.f32 %v1620_v21, %v1842_v40  ;;  %v646_v30 = vmul.f32 %v1842_v40, %v420_v26  ;;  %v678_v31 = vmul.f32 %v1842_v40, %v548_v27  ;;  %v1589_v32 = vpop.f32.mrb[14].mxu0  ;;  %v1621_v33 = vpop.f32.mrb[14].mxu1 }
 0x110   :  { %v1350_v28 = vpack.c.bf16 %v778_v18, %v777_v16  ;;  %v1430_v29 = vpack.c.bf16 %v810_v19, %v809_v17  ;;  %1491 = vst [vmem:[%s2077_s4 + $0x28] sm:$0xff] %v1355_v22   ;;  %v719_v34 = vadd.f32 %v1847_v42, %v648_v24  ;;  %v649_v36 = vmul.f32 %v1589_v32, %v1842_v40  ;;  %v423_v38 = vpop.f32.mrb[15].mxu0  ;;  %v551_v39 = vpop.f32.mrb[15].mxu1 }
 0x111   :  { %1507 = vst [vmem:[%s2077_s4 + $0xa8] sm:$0xff] %v1435_v23   ;;  %v751_v35 = vadd.f32 %v1847_v42, %v680_v25  ;;  %v681_v37 = vmul.f32 %v1621_v33, %v1842_v40  ;;  %v717_v41 = vadd.f32 %v1847_v42, %v646_v30  ;;  %v749_v43 = vadd.f32 %v1847_v42, %v678_v31 }
 0x112   :  { %1490 = vst [vmem:[%s2077_s4 + $0x20] sm:$0xff] %v1350_v28   ;;  %1506 = vst [vmem:[%s2077_s4 + $0xa0] sm:$0xff] %v1430_v29   ;;  %v647_v44 = vmul.f32 %v1842_v40, %v423_v38  ;;  %v679_v45 = vmul.f32 %v1842_v40, %v551_v39  ;;  %v720_v46 = vadd.f32 %v1847_v42, %v649_v36  ;;  %v783_v50 = vmax.f32 %v719_v34, 0.0 }
 0x113   :  { %v752_v47 = vadd.f32 %v1847_v42, %v681_v37  ;;  %v815_v51 = vmax.f32 %v751_v35, 0.0  ;;  %v781_v54 = vmax.f32 %v717_v41, 0.0  ;;  %v813_v55 = vmax.f32 %v749_v43, 0.0 }
 0x114   :  { %v718_v48 = vadd.f32 %v1847_v42, %v647_v44  ;;  %v750_v49 = vadd.f32 %v1847_v42, %v679_v45  ;;  %v784_v52 = vmax.f32 %v720_v46, 0.0 }
 0x115   :  { %v816_v53 = vmax.f32 %v752_v47, 0.0  ;;  %v1592_v58 = vpop.f32.mrb[16].mxu0  ;;  %v1624_v59 = vpop.f32.mrb[16].mxu1 }
 0x116   :  { %v782_v56 = vmax.f32 %v718_v48, 0.0  ;;  %v814_v57 = vmax.f32 %v750_v49, 0.0  ;;  %v1365_v60 = vpack.c.bf16 %v784_v52, %v783_v50  ;;  %v652_v62 = vmul.f32 %v1592_v58, %v1842_v40  ;;  %v436_v0 = vpop.f32.mrb[17].mxu0  ;;  %v564_v1 = vpop.f32.mrb[17].mxu1 }
 0x117   :  { %v1445_v61 = vpack.c.bf16 %v816_v53, %v815_v51  ;;  %v684_v63 = vmul.f32 %v1624_v59, %v1842_v40  ;;  %v650_v4 = vmul.f32 %v1842_v40, %v436_v0  ;;  %v682_v5 = vmul.f32 %v1842_v40, %v564_v1  ;;  %v1593_v6 = vpop.f32.mrb[18].mxu0  ;;  %v1625_v7 = vpop.f32.mrb[18].mxu1 }
 0x118   :  { %v1360_v2 = vpack.c.bf16 %v782_v56, %v781_v54  ;;  %v1440_v3 = vpack.c.bf16 %v814_v57, %v813_v55  ;;  %1493 = vst [vmem:[%s2077_s4 + $0x38] sm:$0xff] %v1365_v60   ;;  %v723_v8 = vadd.f32 %v1847_v42, %v652_v62  ;;  %v653_v10 = vmul.f32 %v1593_v6, %v1842_v40  ;;  %v439_v12 = vpop.f32.mrb[19].mxu0  ;;  %v567_v13 = vpop.f32.mrb[19].mxu1 }
 0x119   :  { %1509 = vst [vmem:[%s2077_s4 + $0xb8] sm:$0xff] %v1445_v61   ;;  %v755_v9 = vadd.f32 %v1847_v42, %v684_v63  ;;  %v685_v11 = vmul.f32 %v1625_v7, %v1842_v40  ;;  %v721_v14 = vadd.f32 %v1847_v42, %v650_v4  ;;  %v753_v15 = vadd.f32 %v1847_v42, %v682_v5 }
 0x11a   :  { %1492 = vst [vmem:[%s2077_s4 + $0x30] sm:$0xff] %v1360_v2   ;;  %1508 = vst [vmem:[%s2077_s4 + $0xb0] sm:$0xff] %v1440_v3   ;;  %v651_v16 = vmul.f32 %v1842_v40, %v439_v12  ;;  %v683_v17 = vmul.f32 %v1842_v40, %v567_v13  ;;  %v724_v18 = vadd.f32 %v1847_v42, %v653_v10  ;;  %v787_v22 = vmax.f32 %v723_v8, 0.0 }
 0x11b   :  { %v756_v19 = vadd.f32 %v1847_v42, %v685_v11  ;;  %v819_v23 = vmax.f32 %v755_v9, 0.0  ;;  %v785_v26 = vmax.f32 %v721_v14, 0.0  ;;  %v817_v27 = vmax.f32 %v753_v15, 0.0 }
 0x11c   :  { %v722_v20 = vadd.f32 %v1847_v42, %v651_v16  ;;  %v754_v21 = vadd.f32 %v1847_v42, %v683_v17  ;;  %v788_v24 = vmax.f32 %v724_v18, 0.0 }
 0x11d   :  { %v820_v25 = vmax.f32 %v756_v19, 0.0  ;;  %v1596_v30 = vpop.f32.mrb[20].mxu0  ;;  %v1628_v31 = vpop.f32.mrb[20].mxu1 }
 0x11e   :  { %v786_v28 = vmax.f32 %v722_v20, 0.0  ;;  %v818_v29 = vmax.f32 %v754_v21, 0.0  ;;  %v1375_v32 = vpack.c.bf16 %v788_v24, %v787_v22  ;;  %v656_v34 = vmul.f32 %v1596_v30, %v1842_v40  ;;  %v452_v36 = vpop.f32.mrb[21].mxu0  ;;  %v580_v37 = vpop.f32.mrb[21].mxu1 }
 0x11f   :  { %v1455_v33 = vpack.c.bf16 %v820_v25, %v819_v23  ;;  %v688_v35 = vmul.f32 %v1628_v31, %v1842_v40  ;;  %v654_v41 = vmul.f32 %v1842_v40, %v452_v36  ;;  %v686_v43 = vmul.f32 %v1842_v40, %v580_v37  ;;  %v1597_v44 = vpop.f32.mrb[22].mxu0  ;;  %v1629_v45 = vpop.f32.mrb[22].mxu1 }
 0x120   :  { %v1370_v38 = vpack.c.bf16 %v786_v28, %v785_v26  ;;  %v1450_v39 = vpack.c.bf16 %v818_v29, %v817_v27  ;;  %1495 = vst [vmem:[%s2077_s4 + $0x48] sm:$0xff] %v1375_v32   ;;  %v727_v46 = vadd.f32 %v1847_v42, %v656_v34  ;;  %v657_v48 = vmul.f32 %v1597_v44, %v1842_v40  ;;  %v455_v50 = vpop.f32.mrb[23].mxu0  ;;  %v583_v51 = vpop.f32.mrb[23].mxu1 }
 0x121   :  { %1511 = vst [vmem:[%s2077_s4 + $0xc8] sm:$0xff] %v1455_v33   ;;  %v759_v47 = vadd.f32 %v1847_v42, %v688_v35  ;;  %v689_v49 = vmul.f32 %v1629_v45, %v1842_v40  ;;  %v725_v52 = vadd.f32 %v1847_v42, %v654_v41  ;;  %v757_v53 = vadd.f32 %v1847_v42, %v686_v43 }
 0x122   :  { %1494 = vst [vmem:[%s2077_s4 + $0x40] sm:$0xff] %v1370_v38   ;;  %1510 = vst [vmem:[%s2077_s4 + $0xc0] sm:$0xff] %v1450_v39   ;;  %v655_v54 = vmul.f32 %v1842_v40, %v455_v50  ;;  %v687_v55 = vmul.f32 %v1842_v40, %v583_v51  ;;  %v728_v56 = vadd.f32 %v1847_v42, %v657_v48  ;;  %v791_v60 = vmax.f32 %v727_v46, 0.0 }
 0x123   :  { %v760_v57 = vadd.f32 %v1847_v42, %v689_v49  ;;  %v823_v61 = vmax.f32 %v759_v47, 0.0  ;;  %v789_v0 = vmax.f32 %v725_v52, 0.0  ;;  %v821_v1 = vmax.f32 %v757_v53, 0.0 }
 0x124   :  { %v726_v58 = vadd.f32 %v1847_v42, %v655_v54  ;;  %v758_v59 = vadd.f32 %v1847_v42, %v687_v55  ;;  %v792_v62 = vmax.f32 %v728_v56, 0.0 }
 0x125   :  { %v824_v63 = vmax.f32 %v760_v57, 0.0  ;;  %v1600_v4 = vpop.f32.mrb[24].mxu0  ;;  %v1632_v5 = vpop.f32.mrb[24].mxu1 }
 0x126   :  { %v790_v2 = vmax.f32 %v726_v58, 0.0  ;;  %v822_v3 = vmax.f32 %v758_v59, 0.0  ;;  %v1385_v6 = vpack.c.bf16 %v792_v62, %v791_v60  ;;  %v660_v8 = vmul.f32 %v1600_v4, %v1842_v40  ;;  %v468_v10 = vpop.f32.mrb[25].mxu0  ;;  %v596_v11 = vpop.f32.mrb[25].mxu1 }
 0x127   :  { %v1465_v7 = vpack.c.bf16 %v824_v63, %v823_v61  ;;  %v692_v9 = vmul.f32 %v1632_v5, %v1842_v40  ;;  %v658_v14 = vmul.f32 %v1842_v40, %v468_v10  ;;  %v690_v15 = vmul.f32 %v1842_v40, %v596_v11  ;;  %v1601_v16 = vpop.f32.mrb[26].mxu0  ;;  %v1633_v17 = vpop.f32.mrb[26].mxu1 }
 0x128   :  { %v1380_v12 = vpack.c.bf16 %v790_v2, %v789_v0  ;;  %v1460_v13 = vpack.c.bf16 %v822_v3, %v821_v1  ;;  %1497 = vst [vmem:[%s2077_s4 + $0x58] sm:$0xff] %v1385_v6   ;;  %v731_v18 = vadd.f32 %v1847_v42, %v660_v8  ;;  %v661_v20 = vmul.f32 %v1601_v16, %v1842_v40  ;;  %v471_v22 = vpop.f32.mrb[27].mxu0  ;;  %v599_v23 = vpop.f32.mrb[27].mxu1 }
 0x129   :  { %1513 = vst [vmem:[%s2077_s4 + $0xd8] sm:$0xff] %v1465_v7   ;;  %v763_v19 = vadd.f32 %v1847_v42, %v692_v9  ;;  %v693_v21 = vmul.f32 %v1633_v17, %v1842_v40  ;;  %v729_v24 = vadd.f32 %v1847_v42, %v658_v14  ;;  %v761_v25 = vadd.f32 %v1847_v42, %v690_v15 }
 0x12a   :  { %1496 = vst [vmem:[%s2077_s4 + $0x50] sm:$0xff] %v1380_v12   ;;  %1512 = vst [vmem:[%s2077_s4 + $0xd0] sm:$0xff] %v1460_v13   ;;  %v659_v26 = vmul.f32 %v1842_v40, %v471_v22  ;;  %v691_v27 = vmul.f32 %v1842_v40, %v599_v23  ;;  %v732_v28 = vadd.f32 %v1847_v42, %v661_v20  ;;  %v795_v32 = vmax.f32 %v731_v18, 0.0 }
 0x12b   :  { %v764_v29 = vadd.f32 %v1847_v42, %v693_v21  ;;  %v827_v33 = vmax.f32 %v763_v19, 0.0  ;;  %v793_v36 = vmax.f32 %v729_v24, 0.0  ;;  %v825_v37 = vmax.f32 %v761_v25, 0.0 }
 0x12c   :  { %v730_v30 = vadd.f32 %v1847_v42, %v659_v26  ;;  %v762_v31 = vadd.f32 %v1847_v42, %v691_v27  ;;  %v796_v34 = vmax.f32 %v732_v28, 0.0 }
 0x12d   :  { %v828_v35 = vmax.f32 %v764_v29, 0.0  ;;  %v1604_v41 = vpop.f32.mrb[28].mxu0  ;;  %v1636_v43 = vpop.f32.mrb[28].mxu1 }
 0x12e   :  { %v794_v38 = vmax.f32 %v730_v30, 0.0  ;;  %v826_v39 = vmax.f32 %v762_v31, 0.0  ;;  %v1395_v44 = vpack.c.bf16 %v796_v34, %v795_v32  ;;  %v664_v46 = vmul.f32 %v1604_v41, %v1842_v40  ;;  %v484_v48 = vpop.f32.mrb[29].mxu0  ;;  %v612_v49 = vpop.f32.mrb[29].mxu1 }
 0x12f   :  { %v1475_v45 = vpack.c.bf16 %v828_v35, %v827_v33  ;;  %v696_v47 = vmul.f32 %v1636_v43, %v1842_v40  ;;  %v662_v52 = vmul.f32 %v1842_v40, %v484_v48  ;;  %v694_v53 = vmul.f32 %v1842_v40, %v612_v49  ;;  %v1605_v54 = vpop.f32.mrb[30].mxu0  ;;  %v1637_v55 = vpop.f32.mrb[30].mxu1 }
 0x130   :  { %v1390_v50 = vpack.c.bf16 %v794_v38, %v793_v36  ;;  %v1470_v51 = vpack.c.bf16 %v826_v39, %v825_v37  ;;  %1499 = vst [vmem:[%s2077_s4 + $0x68] sm:$0xff] %v1395_v44   ;;  %v735_v56 = vadd.f32 %v1847_v42, %v664_v46  ;;  %v665_v58 = vmul.f32 %v1605_v54, %v1842_v40  ;;  %v487_v60 = vpop.f32.mrb[31].mxu0  ;;  %v615_v61 = vpop.f32.mrb[31].mxu1 }
 0x131   :  { %1515 = vst [vmem:[%s2077_s4 + $0xe8] sm:$0xff] %v1475_v45   ;;  %v767_v57 = vadd.f32 %v1847_v42, %v696_v47  ;;  %v697_v59 = vmul.f32 %v1637_v55, %v1842_v40  ;;  %v733_v62 = vadd.f32 %v1847_v42, %v662_v52  ;;  %v765_v63 = vadd.f32 %v1847_v42, %v694_v53 }
 0x132   :  { %1498 = vst [vmem:[%s2077_s4 + $0x60] sm:$0xff] %v1390_v50   ;;  %1514 = vst [vmem:[%s2077_s4 + $0xe0] sm:$0xff] %v1470_v51   ;;  %v663_v0 = vmul.f32 %v1842_v40, %v487_v60  ;;  %v695_v1 = vmul.f32 %v1842_v40, %v615_v61  ;;  %v736_v2 = vadd.f32 %v1847_v42, %v665_v58  ;;  %v799_v6 = vmax.f32 %v735_v56, 0.0 }
 0x133   :  { %v768_v3 = vadd.f32 %v1847_v42, %v697_v59  ;;  %v831_v7 = vmax.f32 %v767_v57, 0.0  ;;  %v797_v10 = vmax.f32 %v733_v62, 0.0  ;;  %v829_v11 = vmax.f32 %v765_v63, 0.0 }
 0x134   :  { %v734_v4 = vadd.f32 %v1847_v42, %v663_v0  ;;  %v766_v5 = vadd.f32 %v1847_v42, %v695_v1  ;;  %v800_v8 = vmax.f32 %v736_v2, 0.0 }
 0x135   :  { %v832_v9 = vmax.f32 %v768_v3, 0.0 }
 0x136   :  { %v798_v12 = vmax.f32 %v734_v4, 0.0  ;;  %v830_v13 = vmax.f32 %v766_v5, 0.0  ;;  %v1405_v14 = vpack.c.bf16 %v800_v8, %v799_v6 }
 0x137   :  { %v1485_v15 = vpack.c.bf16 %v832_v9, %v831_v7 }
 0x138   :  { %v1400_v16 = vpack.c.bf16 %v798_v12, %v797_v10  ;;  %v1480_v40 = vpack.c.bf16 %v830_v13, %v829_v11  ;;  %1501 = vst [vmem:[%s2077_s4 + $0x78] sm:$0xff] %v1405_v14  }
 0x139   :  { %1517 = vst [vmem:[%s2077_s4 + $0xf8] sm:$0xff] %v1485_v15  }
 0x13a   :  { %1500 = vst [vmem:[%s2077_s4 + $0x70] sm:$0xff] %v1400_v16   ;;  %1516 = vst [vmem:[%s2077_s4 + $0xf0] sm:$0xff] %v1480_v40  }

// kernel: run.34
= control target key start
LH: loop header
LB: loop body
LE: loop exit
PB: predicated region body
PF: predicated region fallthrough
CT: control target
= control target key end

     0   :  { %s687_s1 = inlined_call_operand.vmem [shape: bf16[128,128], index: 1, kind: input, shape index: {}]   ;;  %s688_s0 = inlined_call_operand.vmem [shape: bf16[128,128], index: 0, kind: input, shape index: {}]   ;;  %s689_s2 = inlined_call_operand.vmem [shape: f32[1,128], index: 2, kind: input, shape index: {}]   ;;  %s690_s3 = inlined_call_operand.vmem [shape: f32[1,128], index: 3, kind: input, shape index: {}]   ;;  %s691_s4 = inlined_call_operand.vmem [shape: bf16[128,128], index: 4, kind: output, shape index: {}]  }
   0x1   :  { %v550_v0 = vld [vmem:[%s687_s1] sm:$0xff]   ;;  %v551_v1 = vld [vmem:[%s687_s1 + $0x8] sm:$0xff]   ;;  %v552_v2 = vld [vmem:[%s687_s1 + $0x10] sm:$0xff]  }
   0x2   :  { %502 = vmatprep.subr.bf16.mxu0 %v550_v0  ;;  %534 = vmatprep.subr.bf16.mxu1 %v550_v0  ;;  %v553_v3 = vld [vmem:[%s687_s1 + $0x18] sm:$0xff]   ;;  %v558_v4 = vld [vmem:[%s688_s0] sm:$0xff]   ;;  %v555_v7 = vld [vmem:[%s687_s1 + $0x28] sm:$0xff]  }
   0x3   :  { %503 = vmatpush3.bf16.msra.mxu0 %v550_v0  ;;  %542 = vmatpush3.bf16.msra.mxu1 %v550_v0  ;;  %v559_v5 = vld [vmem:[%s688_s0 + $0x20] sm:$0xff]   ;;  %v556_v8 = vld [vmem:[%s687_s1 + $0x30] sm:$0xff]   ;;  %v557_v9 = vld [vmem:[%s687_s1 + $0x38] sm:$0xff]  }
   0x4   :  { %504 = vmatprep.subr.bf16.mxu0 %v551_v1  ;;  %535 = vmatprep.subr.bf16.mxu1 %v551_v1  ;;  %v554_v6 = vld [vmem:[%s687_s1 + $0x20] sm:$0xff]   ;;  %v560_v10 = vld [vmem:[%s688_s0 + $0x8] sm:$0xff]   ;;  %v562_v12 = vld [vmem:[%s688_s0 + $0x10] sm:$0xff]  }
   0x5   :  { %518 = vmatprep.mubr.bf16.mxu0 %v558_v4  ;;  %526 = vmatprep.mubr.bf16.mxu1 %v559_v5  ;;  %v561_v11 = vld [vmem:[%s688_s0 + $0x28] sm:$0xff]   ;;  %v563_v13 = vld [vmem:[%s688_s0 + $0x30] sm:$0xff]   ;;  %v564_v14 = vld [vmem:[%s688_s0 + $0x18] sm:$0xff]  }
   0x6   :  { %v565_v15 = vld [vmem:[%s688_s0 + $0x38] sm:$0xff]   ;;  %v405_v16 = vld [vmem:[%s689_s2] ss:$0 sm:$0xff] }
   0x7   :  { %505 = vmatpush3.bf16.msra.mxu0 %v551_v1  ;;  %543 = vmatpush3.bf16.msra.mxu1 %v551_v1  ;;  %v645_v18 = vld [vmem:[%s690_s3] ss:$0 sm:$0xff] }
   0x8   :  { %506 = vmatprep.subr.bf16.mxu0 %v552_v2  ;;  %536 = vmatprep.subr.bf16.mxu1 %v552_v2 }
   0xb   :  { %507 = vmatpush3.bf16.msra.mxu0 %v552_v2  ;;  %544 = vmatpush3.bf16.msra.mxu1 %v552_v2 }
   0xc   :  { %508 = vmatprep.subr.bf16.mxu0 %v553_v3  ;;  %537 = vmatprep.subr.bf16.mxu1 %v553_v3 }
   0xf   :  { %509 = vmatpush3.bf16.msra.mxu0 %v553_v3  ;;  %545 = vmatpush3.bf16.msra.mxu1 %v553_v3 }
  0x10   :  { %510 = vmatprep.subr.bf16.mxu0 %v554_v6  ;;  %538 = vmatprep.subr.bf16.mxu1 %v554_v6 }
  0x13   :  { %511 = vmatpush3.bf16.msra.mxu0 %v554_v6  ;;  %546 = vmatpush3.bf16.msra.mxu1 %v554_v6 }
  0x14   :  { %512 = vmatprep.subr.bf16.mxu0 %v555_v7  ;;  %539 = vmatprep.subr.bf16.mxu1 %v555_v7 }
  0x17   :  { %513 = vmatpush3.bf16.msra.mxu0 %v555_v7  ;;  %547 = vmatpush3.bf16.msra.mxu1 %v555_v7 }
  0x18   :  { %514 = vmatprep.subr.bf16.mxu0 %v556_v8  ;;  %540 = vmatprep.subr.bf16.mxu1 %v556_v8 }
  0x1b   :  { %515 = vmatpush3.bf16.msra.mxu0 %v556_v8  ;;  %548 = vmatpush3.bf16.msra.mxu1 %v556_v8 }
  0x1c   :  { %516 = vmatprep.subr.bf16.mxu0 %v557_v9  ;;  %541 = vmatprep.subr.bf16.mxu1 %v557_v9 }
  0x1f   :  { %517 = vmatpush3.bf16.msra.mxu0 %v557_v9  ;;  %549 = vmatpush3.bf16.msra.mxu1 %v557_v9 }
  0x22   :  { %519 = vmatmul.mubr.bf16.vlgmr.msra.gmra.mrb[0].mxu0 %v560_v10  ;;  %527 = vmatmul.mubr.bf16.vlgmr.msra.gmra.mrb[0].mxu1 %v561_v11 }
  0x23   :  { %522 = vmatprep.mubr.bf16.mxu0 %v562_v12  ;;  %530 = vmatprep.mubr.bf16.mxu1 %v563_v13 }
  0x2a   :  { %523 = vmatmul.mubr.bf16.gmra.mrb[4].mxu0 %v564_v14  ;;  %531 = vmatmul.mubr.bf16.gmra.mrb[4].mxu1 %v565_v15 }
  0xf5   :  { %v520_v17 = vpop.f32.mrb[0].mxu0  ;;  %v528_v19 = vpop.f32.mrb[0].mxu1 }
  0xf6   :  { %v252_v20 = vmul.f32 %v520_v17, %v405_v16  ;;  %v260_v21 = vmul.f32 %v528_v19, %v405_v16  ;;  %v180_v22 = vpop.f32.mrb[1].mxu0  ;;  %v212_v23 = vpop.f32.mrb[1].mxu1 }
  0xf7   :  { %v250_v24 = vmul.f32 %v405_v16, %v180_v22  ;;  %v258_v25 = vmul.f32 %v405_v16, %v212_v23  ;;  %v521_v26 = vpop.f32.mrb[2].mxu0  ;;  %v529_v27 = vpop.f32.mrb[2].mxu1 }
  0xf8   :  { %v275_v28 = vadd.f32 %v645_v18, %v252_v20  ;;  %v283_v29 = vadd.f32 %v645_v18, %v260_v21  ;;  %v253_v30 = vmul.f32 %v521_v26, %v405_v16  ;;  %v261_v31 = vmul.f32 %v529_v27, %v405_v16  ;;  %v183_v32 = vpop.f32.mrb[3].mxu0  ;;  %v215_v33 = vpop.f32.mrb[3].mxu1 }
  0xf9   :  { %v273_v34 = vadd.f32 %v645_v18, %v250_v24  ;;  %v281_v35 = vadd.f32 %v645_v18, %v258_v25  ;;  %v251_v36 = vmul.f32 %v405_v16, %v183_v32  ;;  %v259_v37 = vmul.f32 %v405_v16, %v215_v33 }
  0xfa   :  { %v276_v38 = vadd.f32 %v645_v18, %v253_v30  ;;  %v284_v39 = vadd.f32 %v645_v18, %v261_v31  ;;  %v291_v42 = vmax.f32 %v275_v28, 0.0  ;;  %v299_v43 = vmax.f32 %v283_v29, 0.0 }
  0xfb   :  { %v274_v40 = vadd.f32 %v645_v18, %v251_v36  ;;  %v282_v41 = vadd.f32 %v645_v18, %v259_v37  ;;  %v289_v46 = vmax.f32 %v273_v34, 0.0  ;;  %v297_v47 = vmax.f32 %v281_v35, 0.0 }
  0xfc   :  { %v292_v44 = vmax.f32 %v276_v38, 0.0  ;;  %v300_v45 = vmax.f32 %v284_v39, 0.0 }
  0xfd   :  { %v290_v48 = vmax.f32 %v274_v40, 0.0  ;;  %v298_v49 = vmax.f32 %v282_v41, 0.0  ;;  %v524_v50 = vpop.f32.mrb[4].mxu0  ;;  %v532_v51 = vpop.f32.mrb[4].mxu1 }
  0xfe   :  { %v447_v52 = vpack.c.bf16 %v292_v44, %v291_v42  ;;  %v467_v53 = vpack.c.bf16 %v300_v45, %v299_v43  ;;  %v256_v54 = vmul.f32 %v524_v50, %v405_v16  ;;  %v264_v55 = vmul.f32 %v532_v51, %v405_v16  ;;  %v196_v56 = vpop.f32.mrb[5].mxu0  ;;  %v228_v57 = vpop.f32.mrb[5].mxu1 }
  0xff   :  { %v442_v58 = vpack.c.bf16 %v290_v48, %v289_v46  ;;  %v462_v59 = vpack.c.bf16 %v298_v49, %v297_v47  ;;  %v254_v60 = vmul.f32 %v405_v16, %v196_v56  ;;  %v262_v61 = vmul.f32 %v405_v16, %v228_v57  ;;  %v525_v62 = vpop.f32.mrb[6].mxu0  ;;  %v533_v63 = vpop.f32.mrb[6].mxu1 }
 0x100   :  { %479 = vst [vmem:[%s691_s4 + $0x8] sm:$0xff] %v447_v52   ;;  %483 = vst [vmem:[%s691_s4 + $0x28] sm:$0xff] %v467_v53   ;;  %v279_v0 = vadd.f32 %v645_v18, %v256_v54  ;;  %v287_v1 = vadd.f32 %v645_v18, %v264_v55  ;;  %v257_v2 = vmul.f32 %v525_v62, %v405_v16  ;;  %v199_v4 = vpop.f32.mrb[7].mxu0  ;;  %v231_v5 = vpop.f32.mrb[7].mxu1 }
 0x101   :  { %v265_v3 = vmul.f32 %v533_v63, %v405_v16  ;;  %443 = vst [vmem:[%s691_s4] sm:$0xff] %v442_v58   ;;  %482 = vst [vmem:[%s691_s4 + $0x20] sm:$0xff] %v462_v59   ;;  %v277_v6 = vadd.f32 %v645_v18, %v254_v60  ;;  %v285_v7 = vadd.f32 %v645_v18, %v262_v61 }
 0x102   :  { %v255_v8 = vmul.f32 %v405_v16, %v199_v4  ;;  %v263_v9 = vmul.f32 %v405_v16, %v231_v5  ;;  %v280_v10 = vadd.f32 %v645_v18, %v257_v2  ;;  %v295_v14 = vmax.f32 %v279_v0, 0.0 }
 0x103   :  { %v288_v11 = vadd.f32 %v645_v18, %v265_v3  ;;  %v303_v15 = vmax.f32 %v287_v1, 0.0  ;;  %v293_v20 = vmax.f32 %v277_v6, 0.0  ;;  %v301_v21 = vmax.f32 %v285_v7, 0.0 }
 0x104   :  { %v278_v12 = vadd.f32 %v645_v18, %v255_v8  ;;  %v286_v13 = vadd.f32 %v645_v18, %v263_v9  ;;  %v296_v17 = vmax.f32 %v280_v10, 0.0 }
 0x105   :  { %v304_v19 = vmax.f32 %v288_v11, 0.0 }
 0x106   :  { %v294_v22 = vmax.f32 %v278_v12, 0.0  ;;  %v302_v23 = vmax.f32 %v286_v13, 0.0  ;;  %v457_v24 = vpack.c.bf16 %v296_v17, %v295_v14 }
 0x107   :  { %v477_v25 = vpack.c.bf16 %v304_v19, %v303_v15 }
 0x108   :  { %v452_v26 = vpack.c.bf16 %v294_v22, %v293_v20  ;;  %v472_v16 = vpack.c.bf16 %v302_v23, %v301_v21  ;;  %481 = vst [vmem:[%s691_s4 + $0x18] sm:$0xff] %v457_v24  }
 0x109   :  { %485 = vst [vmem:[%s691_s4 + $0x38] sm:$0xff] %v477_v25  }
 0x10a   :  { %480 = vst [vmem:[%s691_s4 + $0x10] sm:$0xff] %v452_v26   ;;  %484 = vst [vmem:[%s691_s4 + $0x30] sm:$0xff] %v472_v16  }

// kernel: run.36
= control target key start
LH: loop header
LB: loop body
LE: loop exit
PB: predicated region body
PF: predicated region fallthrough
CT: control target
= control target key end

     0   :  { %s653_s1 = inlined_call_operand.vmem [shape: bf16[128,128], index: 1, kind: input, shape index: {}]   ;;  %s654_s0 = inlined_call_operand.vmem [shape: bf16[128,128], index: 0, kind: input, shape index: {}]   ;;  %s655_s2 = inlined_call_operand.vmem [shape: f32[1,128], index: 2, kind: input, shape index: {}]   ;;  %s656_s3 = inlined_call_operand.vmem [shape: f32[1,128], index: 3, kind: input, shape index: {}]   ;;  %s657_s4 = inlined_call_operand.vmem [shape: bf16[128,128], index: 4, kind: output, shape index: {}]  }
   0x1   :  { %v534_v0 = vld [vmem:[%s653_s1] sm:$0xff]   ;;  %v535_v1 = vld [vmem:[%s653_s1 + $0x8] sm:$0xff]   ;;  %v536_v2 = vld [vmem:[%s653_s1 + $0x10] sm:$0xff]  }
   0x2   :  { %486 = vmatprep.subr.bf16.mxu0 %v534_v0  ;;  %518 = vmatprep.subr.bf16.mxu1 %v534_v0  ;;  %v537_v3 = vld [vmem:[%s653_s1 + $0x18] sm:$0xff]   ;;  %v542_v4 = vld [vmem:[%s654_s0] sm:$0xff]   ;;  %v539_v7 = vld [vmem:[%s653_s1 + $0x28] sm:$0xff]  }
   0x3   :  { %487 = vmatpush3.bf16.msra.mxu0 %v534_v0  ;;  %526 = vmatpush3.bf16.msra.mxu1 %v534_v0  ;;  %v543_v5 = vld [vmem:[%s654_s0 + $0x20] sm:$0xff]   ;;  %v540_v8 = vld [vmem:[%s653_s1 + $0x30] sm:$0xff]   ;;  %v541_v9 = vld [vmem:[%s653_s1 + $0x38] sm:$0xff]  }
   0x4   :  { %488 = vmatprep.subr.bf16.mxu0 %v535_v1  ;;  %519 = vmatprep.subr.bf16.mxu1 %v535_v1  ;;  %v538_v6 = vld [vmem:[%s653_s1 + $0x20] sm:$0xff]   ;;  %v544_v10 = vld [vmem:[%s654_s0 + $0x8] sm:$0xff]   ;;  %v546_v12 = vld [vmem:[%s654_s0 + $0x10] sm:$0xff]  }
   0x5   :  { %502 = vmatprep.mubr.bf16.mxu0 %v542_v4  ;;  %510 = vmatprep.mubr.bf16.mxu1 %v543_v5  ;;  %v545_v11 = vld [vmem:[%s654_s0 + $0x28] sm:$0xff]   ;;  %v547_v13 = vld [vmem:[%s654_s0 + $0x30] sm:$0xff]   ;;  %v548_v14 = vld [vmem:[%s654_s0 + $0x18] sm:$0xff]  }
   0x6   :  { %v549_v15 = vld [vmem:[%s654_s0 + $0x38] sm:$0xff]   ;;  %v389_v16 = vld [vmem:[%s655_s2] ss:$0 sm:$0xff] }
   0x7   :  { %489 = vmatpush3.bf16.msra.mxu0 %v535_v1  ;;  %527 = vmatpush3.bf16.msra.mxu1 %v535_v1  ;;  %v390_v23 = vld [vmem:[%s656_s3] ss:$0 sm:$0xff] }
   0x8   :  { %490 = vmatprep.subr.bf16.mxu0 %v536_v2  ;;  %520 = vmatprep.subr.bf16.mxu1 %v536_v2 }
   0xb   :  { %491 = vmatpush3.bf16.msra.mxu0 %v536_v2  ;;  %528 = vmatpush3.bf16.msra.mxu1 %v536_v2 }
   0xc   :  { %492 = vmatprep.subr.bf16.mxu0 %v537_v3  ;;  %521 = vmatprep.subr.bf16.mxu1 %v537_v3 }
   0xf   :  { %493 = vmatpush3.bf16.msra.mxu0 %v537_v3  ;;  %529 = vmatpush3.bf16.msra.mxu1 %v537_v3 }
  0x10   :  { %494 = vmatprep.subr.bf16.mxu0 %v538_v6  ;;  %522 = vmatprep.subr.bf16.mxu1 %v538_v6 }
  0x13   :  { %495 = vmatpush3.bf16.msra.mxu0 %v538_v6  ;;  %530 = vmatpush3.bf16.msra.mxu1 %v538_v6 }
  0x14   :  { %496 = vmatprep.subr.bf16.mxu0 %v539_v7  ;;  %523 = vmatprep.subr.bf16.mxu1 %v539_v7 }
  0x17   :  { %497 = vmatpush3.bf16.msra.mxu0 %v539_v7  ;;  %531 = vmatpush3.bf16.msra.mxu1 %v539_v7 }
  0x18   :  { %498 = vmatprep.subr.bf16.mxu0 %v540_v8  ;;  %524 = vmatprep.subr.bf16.mxu1 %v540_v8 }
  0x1b   :  { %499 = vmatpush3.bf16.msra.mxu0 %v540_v8  ;;  %532 = vmatpush3.bf16.msra.mxu1 %v540_v8 }
  0x1c   :  { %500 = vmatprep.subr.bf16.mxu0 %v541_v9  ;;  %525 = vmatprep.subr.bf16.mxu1 %v541_v9 }
  0x1f   :  { %501 = vmatpush3.bf16.msra.mxu0 %v541_v9  ;;  %533 = vmatpush3.bf16.msra.mxu1 %v541_v9 }
  0x22   :  { %503 = vmatmul.mubr.bf16.vlgmr.msra.gmra.mrb[0].mxu0 %v544_v10  ;;  %511 = vmatmul.mubr.bf16.vlgmr.msra.gmra.mrb[0].mxu1 %v545_v11 }
  0x23   :  { %506 = vmatprep.mubr.bf16.mxu0 %v546_v12  ;;  %514 = vmatprep.mubr.bf16.mxu1 %v547_v13 }
  0x2a   :  { %507 = vmatmul.mubr.bf16.gmra.mrb[4].mxu0 %v548_v14  ;;  %515 = vmatmul.mubr.bf16.gmra.mrb[4].mxu1 %v549_v15 }
  0xf5   :  { %v504_v17 = vpop.f32.mrb[0].mxu0  ;;  %v512_v18 = vpop.f32.mrb[0].mxu1 }
  0xf6   :  { %v252_v19 = vmul.f32 %v504_v17, %v389_v16  ;;  %v260_v20 = vmul.f32 %v512_v18, %v389_v16  ;;  %v180_v21 = vpop.f32.mrb[1].mxu0  ;;  %v212_v22 = vpop.f32.mrb[1].mxu1 }
  0xf7   :  { %v250_v24 = vmul.f32 %v389_v16, %v180_v21  ;;  %v258_v25 = vmul.f32 %v389_v16, %v212_v22  ;;  %v505_v26 = vpop.f32.mrb[2].mxu0  ;;  %v513_v27 = vpop.f32.mrb[2].mxu1 }
  0xf8   :  { %v253_v28 = vmul.f32 %v505_v26, %v389_v16  ;;  %v261_v29 = vmul.f32 %v513_v27, %v389_v16  ;;  %v183_v30 = vpop.f32.mrb[3].mxu0  ;;  %v215_v31 = vpop.f32.mrb[3].mxu1  ;;  %v275_v34 = vadd.f32 %v390_v23, %v252_v19  ;;  %v283_v35 = vadd.f32 %v390_v23, %v260_v20 }
  0xf9   :  { %v251_v32 = vmul.f32 %v389_v16, %v183_v30  ;;  %v259_v33 = vmul.f32 %v389_v16, %v215_v31  ;;  %v273_v38 = vadd.f32 %v390_v23, %v250_v24  ;;  %v281_v39 = vadd.f32 %v390_v23, %v258_v25 }
  0xfa   :  { %v276_v36 = vadd.f32 %v390_v23, %v253_v28  ;;  %v284_v37 = vadd.f32 %v390_v23, %v261_v29 }
  0xfb   :  { %v274_v40 = vadd.f32 %v390_v23, %v251_v32  ;;  %v282_v41 = vadd.f32 %v390_v23, %v259_v33 }
  0xfc   :  { %v431_v42 = vpack.c.bf16 %v276_v36, %v275_v34  ;;  %v451_v43 = vpack.c.bf16 %v284_v37, %v283_v35 }
  0xfd   :  { %v426_v44 = vpack.c.bf16 %v274_v40, %v273_v38  ;;  %v446_v45 = vpack.c.bf16 %v282_v41, %v281_v39  ;;  %v508_v46 = vpop.f32.mrb[4].mxu0  ;;  %v516_v47 = vpop.f32.mrb[4].mxu1 }
  0xfe   :  { %463 = vst [vmem:[%s657_s4 + $0x8] sm:$0xff] %v431_v42   ;;  %467 = vst [vmem:[%s657_s4 + $0x28] sm:$0xff] %v451_v43   ;;  %v256_v48 = vmul.f32 %v508_v46, %v389_v16  ;;  %v264_v49 = vmul.f32 %v516_v47, %v389_v16  ;;  %v196_v50 = vpop.f32.mrb[5].mxu0  ;;  %v228_v51 = vpop.f32.mrb[5].mxu1 }
  0xff   :  { %427 = vst [vmem:[%s657_s4] sm:$0xff] %v426_v44   ;;  %466 = vst [vmem:[%s657_s4 + $0x20] sm:$0xff] %v446_v45   ;;  %v254_v52 = vmul.f32 %v389_v16, %v196_v50  ;;  %v262_v53 = vmul.f32 %v389_v16, %v228_v51  ;;  %v509_v54 = vpop.f32.mrb[6].mxu0  ;;  %v517_v55 = vpop.f32.mrb[6].mxu1 }
 0x100   :  { %v257_v56 = vmul.f32 %v509_v54, %v389_v16  ;;  %v265_v57 = vmul.f32 %v517_v55, %v389_v16  ;;  %v199_v58 = vpop.f32.mrb[7].mxu0  ;;  %v231_v59 = vpop.f32.mrb[7].mxu1  ;;  %v279_v62 = vadd.f32 %v390_v23, %v256_v48  ;;  %v287_v63 = vadd.f32 %v390_v23, %v264_v49 }
 0x101   :  { %v255_v60 = vmul.f32 %v389_v16, %v199_v58  ;;  %v263_v61 = vmul.f32 %v389_v16, %v231_v59  ;;  %v277_v2 = vadd.f32 %v390_v23, %v254_v52  ;;  %v285_v3 = vadd.f32 %v390_v23, %v262_v53 }
 0x102   :  { %v280_v0 = vadd.f32 %v390_v23, %v257_v56  ;;  %v288_v1 = vadd.f32 %v390_v23, %v265_v57 }
 0x103   :  { %v278_v4 = vadd.f32 %v390_v23, %v255_v60  ;;  %v286_v5 = vadd.f32 %v390_v23, %v263_v61 }
 0x104   :  { %v441_v6 = vpack.c.bf16 %v280_v0, %v279_v62  ;;  %v461_v7 = vpack.c.bf16 %v288_v1, %v287_v63 }
 0x105   :  { %v436_v8 = vpack.c.bf16 %v278_v4, %v277_v2  ;;  %v456_v9 = vpack.c.bf16 %v286_v5, %v285_v3 }
 0x106   :  { %465 = vst [vmem:[%s657_s4 + $0x18] sm:$0xff] %v441_v6   ;;  %469 = vst [vmem:[%s657_s4 + $0x38] sm:$0xff] %v461_v7  }
 0x107   :  { %464 = vst [vmem:[%s657_s4 + $0x10] sm:$0xff] %v436_v8   ;;  %468 = vst [vmem:[%s657_s4 + $0x30] sm:$0xff] %v456_v9  }

// kernel: run.37
= control target key start
LH: loop header
LB: loop body
LE: loop exit
PB: predicated region body
PF: predicated region fallthrough
CT: control target
= control target key end

     0   :  { %s848_s1 = inlined_call_operand.vmem [shape: bf16[128,128], index: 1, kind: input, shape index: {}]   ;;  %s849_s0 = inlined_call_operand.vmem [shape: bf16[128,128], index: 0, kind: input, shape index: {}]   ;;  %s850_s4 = inlined_call_operand.vmem [shape: bf16[128,128], index: 4, kind: input, shape index: {}]   ;;  %s851_s2 = inlined_call_operand.vmem [shape: f32[1,128], index: 2, kind: input, shape index: {}]   ;;  %s852_s3 = inlined_call_operand.vmem [shape: f32[1,128], index: 3, kind: input, shape index: {}]   ;;  %s853_s5 = inlined_call_operand.vmem [shape: bf16[128,128], index: 5, kind: output, shape index: {}]  }
   0x1   :  { %v640_v0 = vld [vmem:[%s848_s1] sm:$0xff]   ;;  %v641_v1 = vld [vmem:[%s848_s1 + $0x8] sm:$0xff]   ;;  %v642_v2 = vld [vmem:[%s848_s1 + $0x10] sm:$0xff]  }
   0x2   :  { %592 = vmatprep.subr.bf16.mxu0 %v640_v0  ;;  %624 = vmatprep.subr.bf16.mxu1 %v640_v0  ;;  %v643_v3 = vld [vmem:[%s848_s1 + $0x18] sm:$0xff]   ;;  %v648_v4 = vld [vmem:[%s849_s0] sm:$0xff]   ;;  %v645_v7 = vld [vmem:[%s848_s1 + $0x28] sm:$0xff]  }
   0x3   :  { %593 = vmatpush3.bf16.msra.mxu0 %v640_v0  ;;  %632 = vmatpush3.bf16.msra.mxu1 %v640_v0  ;;  %v649_v5 = vld [vmem:[%s849_s0 + $0x20] sm:$0xff]   ;;  %v646_v8 = vld [vmem:[%s848_s1 + $0x30] sm:$0xff]   ;;  %v647_v9 = vld [vmem:[%s848_s1 + $0x38] sm:$0xff]  }
   0x4   :  { %594 = vmatprep.subr.bf16.mxu0 %v641_v1  ;;  %625 = vmatprep.subr.bf16.mxu1 %v641_v1  ;;  %v644_v6 = vld [vmem:[%s848_s1 + $0x20] sm:$0xff]   ;;  %v650_v10 = vld [vmem:[%s849_s0 + $0x8] sm:$0xff]   ;;  %v652_v12 = vld [vmem:[%s849_s0 + $0x10] sm:$0xff]  }
   0x5   :  { %608 = vmatprep.mubr.bf16.mxu0 %v648_v4  ;;  %616 = vmatprep.mubr.bf16.mxu1 %v649_v5  ;;  %v651_v11 = vld [vmem:[%s849_s0 + $0x28] sm:$0xff]   ;;  %v653_v13 = vld [vmem:[%s849_s0 + $0x30] sm:$0xff]   ;;  %v654_v14 = vld [vmem:[%s849_s0 + $0x18] sm:$0xff]  }
   0x6   :  { %v655_v15 = vld [vmem:[%s849_s0 + $0x38] sm:$0xff]   ;;  %v562_v16 = vld [vmem:[%s850_s4 + $0x8] sm:$0xff]   ;;  %v491_v18 = vld [vmem:[%s850_s4] sm:$0xff]  }
   0x7   :  { %595 = vmatpush3.bf16.msra.mxu0 %v641_v1  ;;  %633 = vmatpush3.bf16.msra.mxu1 %v641_v1  ;;  %v566_v17 = vld [vmem:[%s850_s4 + $0x28] sm:$0xff]   ;;  %v565_v19 = vld [vmem:[%s850_s4 + $0x20] sm:$0xff]   ;;  %v754_v21 = vld [vmem:[%s850_s4 + $0x18] sm:$0xff]   ;;  %v496_v23 = vunpack.c.l.bf16 %v562_v16  ;;  %v492_v25 = vunpack.c.l.bf16 %v491_v18  ;;  %v497_v32 = vunpack.c.h.bf16 %v562_v16  ;;  %v493_v34 = vunpack.c.h.bf16 %v491_v18 }
   0x8   :  { %596 = vmatprep.subr.bf16.mxu0 %v642_v2  ;;  %626 = vmatprep.subr.bf16.mxu1 %v642_v2  ;;  %v749_v20 = vld [vmem:[%s851_s2] ss:$0 sm:$0xff]  ;;  %v759_v22 = vld [vmem:[%s850_s4 + $0x38] sm:$0xff]   ;;  %v512_v24 = vunpack.c.l.bf16 %v566_v17  ;;  %v508_v26 = vunpack.c.l.bf16 %v565_v19  ;;  %v764_v27 = vld [vmem:[%s850_s4 + $0x10] sm:$0xff]   ;;  %v513_v33 = vunpack.c.h.bf16 %v566_v17  ;;  %v509_v35 = vunpack.c.h.bf16 %v565_v19 }
   0x9   :  { %v769_v28 = vld [vmem:[%s850_s4 + $0x30] sm:$0xff]   ;;  %v774_v30 = vld [vmem:[%s852_s3] ss:$0 sm:$0xff]  ;;  %v504_v40 = vunpack.c.l.bf16 %v754_v21  ;;  %v520_v41 = vunpack.c.l.bf16 %v759_v22  ;;  %v500_v46 = vunpack.c.l.bf16 %v764_v27 }
   0xa   :  { %v516_v47 = vunpack.c.l.bf16 %v769_v28 }
   0xb   :  { %597 = vmatpush3.bf16.msra.mxu0 %v642_v2  ;;  %634 = vmatpush3.bf16.msra.mxu1 %v642_v2 }
   0xc   :  { %598 = vmatprep.subr.bf16.mxu0 %v643_v3  ;;  %627 = vmatprep.subr.bf16.mxu1 %v643_v3 }
   0xf   :  { %599 = vmatpush3.bf16.msra.mxu0 %v643_v3  ;;  %635 = vmatpush3.bf16.msra.mxu1 %v643_v3 }
  0x10   :  { %600 = vmatprep.subr.bf16.mxu0 %v644_v6  ;;  %628 = vmatprep.subr.bf16.mxu1 %v644_v6 }
  0x13   :  { %601 = vmatpush3.bf16.msra.mxu0 %v644_v6  ;;  %636 = vmatpush3.bf16.msra.mxu1 %v644_v6 }
  0x14   :  { %602 = vmatprep.subr.bf16.mxu0 %v645_v7  ;;  %629 = vmatprep.subr.bf16.mxu1 %v645_v7 }
  0x17   :  { %603 = vmatpush3.bf16.msra.mxu0 %v645_v7  ;;  %637 = vmatpush3.bf16.msra.mxu1 %v645_v7 }
  0x18   :  { %604 = vmatprep.subr.bf16.mxu0 %v646_v8  ;;  %630 = vmatprep.subr.bf16.mxu1 %v646_v8 }
  0x1b   :  { %605 = vmatpush3.bf16.msra.mxu0 %v646_v8  ;;  %638 = vmatpush3.bf16.msra.mxu1 %v646_v8 }
  0x1c   :  { %606 = vmatprep.subr.bf16.mxu0 %v647_v9  ;;  %631 = vmatprep.subr.bf16.mxu1 %v647_v9 }
  0x1f   :  { %607 = vmatpush3.bf16.msra.mxu0 %v647_v9  ;;  %639 = vmatpush3.bf16.msra.mxu1 %v647_v9 }
  0x22   :  { %609 = vmatmul.mubr.bf16.vlgmr.msra.gmra.mrb[0].mxu0 %v650_v10  ;;  %617 = vmatmul.mubr.bf16.vlgmr.msra.gmra.mrb[0].mxu1 %v651_v11 }
  0x23   :  { %612 = vmatprep.mubr.bf16.mxu0 %v652_v12  ;;  %620 = vmatprep.mubr.bf16.mxu1 %v653_v13 }
  0x2a   :  { %613 = vmatmul.mubr.bf16.gmra.mrb[4].mxu0 %v654_v14  ;;  %621 = vmatmul.mubr.bf16.gmra.mrb[4].mxu1 %v655_v15 }
  0xf5   :  { %v610_v29 = vpop.f32.mrb[0].mxu0  ;;  %v618_v31 = vpop.f32.mrb[0].mxu1 }
  0xf6   :  { %v255_v36 = vmul.f32 %v610_v29, %v749_v20  ;;  %v263_v37 = vmul.f32 %v618_v31, %v749_v20  ;;  %v183_v38 = vpop.f32.mrb[1].mxu0  ;;  %v215_v39 = vpop.f32.mrb[1].mxu1 }
  0xf7   :  { %v253_v42 = vmul.f32 %v749_v20, %v183_v38  ;;  %v261_v43 = vmul.f32 %v749_v20, %v215_v39  ;;  %v611_v44 = vpop.f32.mrb[2].mxu0  ;;  %v619_v45 = vpop.f32.mrb[2].mxu1 }
  0xf8   :  { %v278_v48 = vadd.f32 %v774_v30, %v255_v36  ;;  %v286_v49 = vadd.f32 %v774_v30, %v263_v37  ;;  %v256_v50 = vmul.f32 %v611_v44, %v749_v20  ;;  %v264_v51 = vmul.f32 %v619_v45, %v749_v20  ;;  %v186_v52 = vpop.f32.mrb[3].mxu0  ;;  %v218_v53 = vpop.f32.mrb[3].mxu1 }
  0xf9   :  { %v276_v54 = vadd.f32 %v774_v30, %v253_v42  ;;  %v284_v55 = vadd.f32 %v774_v30, %v261_v43  ;;  %v254_v56 = vmul.f32 %v749_v20, %v186_v52  ;;  %v262_v57 = vmul.f32 %v749_v20, %v218_v53 }
  0xfa   :  { %v326_v58 = vadd.f32 %v496_v23, %v278_v48  ;;  %v334_v59 = vadd.f32 %v512_v24, %v286_v49  ;;  %v279_v60 = vadd.f32 %v774_v30, %v256_v50  ;;  %v287_v61 = vadd.f32 %v774_v30, %v264_v51 }
  0xfb   :  { %v324_v62 = vadd.f32 %v492_v25, %v276_v54  ;;  %v332_v63 = vadd.f32 %v508_v26, %v284_v55  ;;  %v277_v0 = vadd.f32 %v774_v30, %v254_v56  ;;  %v285_v1 = vadd.f32 %v774_v30, %v262_v57 }
  0xfc   :  { %v342_v2 = vmax.f32 %v326_v58, 0.0  ;;  %v350_v3 = vmax.f32 %v334_v59, 0.0  ;;  %v327_v4 = vadd.f32 %v497_v32, %v279_v60  ;;  %v335_v5 = vadd.f32 %v513_v33, %v287_v61 }
  0xfd   :  { %v340_v6 = vmax.f32 %v324_v62, 0.0  ;;  %v348_v7 = vmax.f32 %v332_v63, 0.0  ;;  %v325_v8 = vadd.f32 %v493_v34, %v277_v0  ;;  %v333_v9 = vadd.f32 %v509_v35, %v285_v1  ;;  %v614_v10 = vpop.f32.mrb[4].mxu0  ;;  %v622_v11 = vpop.f32.mrb[4].mxu1 }
  0xfe   :  { %v343_v12 = vmax.f32 %v327_v4, 0.0  ;;  %v351_v13 = vmax.f32 %v335_v5, 0.0  ;;  %v259_v14 = vmul.f32 %v614_v10, %v749_v20  ;;  %v267_v15 = vmul.f32 %v622_v11, %v749_v20  ;;  %v199_v16 = vpop.f32.mrb[5].mxu0  ;;  %v231_v17 = vpop.f32.mrb[5].mxu1 }
  0xff   :  { %v341_v18 = vmax.f32 %v325_v8, 0.0  ;;  %v349_v19 = vmax.f32 %v333_v9, 0.0  ;;  %v257_v23 = vmul.f32 %v749_v20, %v199_v16  ;;  %v265_v24 = vmul.f32 %v749_v20, %v231_v17  ;;  %v615_v25 = vpop.f32.mrb[6].mxu0  ;;  %v623_v26 = vpop.f32.mrb[6].mxu1 }
 0x100   :  { %v530_v29 = vpack.c.bf16 %v343_v12, %v342_v2  ;;  %v550_v31 = vpack.c.bf16 %v351_v13, %v350_v3  ;;  %v282_v32 = vadd.f32 %v774_v30, %v259_v14  ;;  %v290_v33 = vadd.f32 %v774_v30, %v267_v15  ;;  %v202_v34 = vpop.f32.mrb[7].mxu0  ;;  %v234_v35 = vpop.f32.mrb[7].mxu1 }
 0x101   :  { %v525_v36 = vpack.c.bf16 %v341_v18, %v340_v6  ;;  %v545_v37 = vpack.c.bf16 %v349_v19, %v348_v7  ;;  %v280_v38 = vadd.f32 %v774_v30, %v257_v23  ;;  %v288_v39 = vadd.f32 %v774_v30, %v265_v24 }
 0x102   :  { %569 = vst [vmem:[%s853_s5 + $0x8] sm:$0xff] %v530_v29   ;;  %573 = vst [vmem:[%s853_s5 + $0x28] sm:$0xff] %v550_v31   ;;  %v260_v42 = vmul.f32 %v615_v25, %v749_v20  ;;  %v505_v43 = vunpack.c.h.bf16 %v754_v21  ;;  %v268_v44 = vmul.f32 %v623_v26, %v749_v20  ;;  %v521_v45 = vunpack.c.h.bf16 %v759_v22 }
 0x103   :  { %526 = vst [vmem:[%s853_s5] sm:$0xff] %v525_v36   ;;  %572 = vst [vmem:[%s853_s5 + $0x20] sm:$0xff] %v545_v37   ;;  %v258_v48 = vmul.f32 %v749_v20, %v202_v34  ;;  %v501_v49 = vunpack.c.h.bf16 %v764_v27  ;;  %v266_v50 = vmul.f32 %v749_v20, %v234_v35  ;;  %v517_v51 = vunpack.c.h.bf16 %v769_v28 }
 0x104   :  { %v330_v52 = vadd.f32 %v504_v40, %v282_v32  ;;  %v338_v53 = vadd.f32 %v520_v41, %v290_v33  ;;  %v283_v54 = vadd.f32 %v774_v30, %v260_v42  ;;  %v291_v55 = vadd.f32 %v774_v30, %v268_v44 }
 0x105   :  { %v328_v56 = vadd.f32 %v500_v46, %v280_v38  ;;  %v336_v57 = vadd.f32 %v516_v47, %v288_v39  ;;  %v281_v20 = vadd.f32 %v774_v30, %v258_v48  ;;  %v289_v58 = vadd.f32 %v774_v30, %v266_v50 }
 0x106   :  { %v331_v59 = vadd.f32 %v505_v43, %v283_v54  ;;  %v339_v21 = vadd.f32 %v521_v45, %v291_v55  ;;  %v346_v22 = vmax.f32 %v330_v52, 0.0  ;;  %v354_v41 = vmax.f32 %v338_v53, 0.0 }
 0x107   :  { %v329_v40 = vadd.f32 %v501_v49, %v281_v20  ;;  %v337_v60 = vadd.f32 %v517_v51, %v289_v58  ;;  %v344_v63 = vmax.f32 %v328_v56, 0.0  ;;  %v352_v0 = vmax.f32 %v336_v57, 0.0 }
 0x108   :  { %v347_v61 = vmax.f32 %v331_v59, 0.0  ;;  %v355_v62 = vmax.f32 %v339_v21, 0.0 }
 0x109   :  { %v345_v1 = vmax.f32 %v329_v40, 0.0  ;;  %v353_v27 = vmax.f32 %v337_v60, 0.0 }
 0x10a   :  { %v540_v46 = vpack.c.bf16 %v347_v61, %v346_v22  ;;  %v560_v2 = vpack.c.bf16 %v355_v62, %v354_v41 }
 0x10b   :  { %v535_v28 = vpack.c.bf16 %v345_v1, %v344_v63  ;;  %v555_v47 = vpack.c.bf16 %v353_v27, %v352_v0 }
 0x10c   :  { %571 = vst [vmem:[%s853_s5 + $0x18] sm:$0xff] %v540_v46   ;;  %575 = vst [vmem:[%s853_s5 + $0x38] sm:$0xff] %v560_v2  }
 0x10d   :  { %570 = vst [vmem:[%s853_s5 + $0x10] sm:$0xff] %v535_v28   ;;  %574 = vst [vmem:[%s853_s5 + $0x30] sm:$0xff] %v555_v47  }

// kernel: run.42
= control target key start
LH: loop header
LB: loop body
LE: loop exit
PB: predicated region body
PF: predicated region fallthrough
CT: control target
= control target key end

     0   :  { %s905_s1 = inlined_call_operand.vmem [shape: bf16[256,128], index: 1, kind: input, shape index: {}]   ;;  %s906_s0 = inlined_call_operand.vmem [shape: bf16[128,256], index: 0, kind: input, shape index: {}]   ;;  %s907_s2 = inlined_call_operand.vmem [shape: f32[1,128], index: 2, kind: input, shape index: {}]   ;;  %s908_s3 = inlined_call_operand.vmem [shape: f32[1,128], index: 3, kind: input, shape index: {}]   ;;  %s909_s4 = inlined_call_operand.vmem [shape: bf16[128,128], index: 4, kind: output, shape index: {}]  }
   0x1   :  { %v678_v0 = vld [vmem:[%s905_s1 + $0x40] sm:$0xff]   ;;  %v680_v2 = vld [vmem:[%s905_s1 + $0x48] sm:$0xff]   ;;  %v682_v4 = vld [vmem:[%s905_s1 + $0x50] sm:$0xff]  }
   0x2   :  { %v679_v1 = vld [vmem:[%s905_s1] sm:$0xff]   ;;  %598 = vmatprep.subr.bf16.mxu0 %v678_v0  ;;  %662 = vmatprep.subr.bf16.mxu1 %v678_v0  ;;  %v681_v3 = vld [vmem:[%s905_s1 + $0x8] sm:$0xff]   ;;  %v683_v5 = vld [vmem:[%s905_s1 + $0x10] sm:$0xff]  }
   0x3   :  { %599 = vmatpush3.bf16.msra.mxu0 %v679_v1  ;;  %670 = vmatpush3.bf16.msra.mxu1 %v679_v1  ;;  %v684_v6 = vld [vmem:[%s905_s1 + $0x58] sm:$0xff]   ;;  %v686_v8 = vld [vmem:[%s905_s1 + $0x60] sm:$0xff]   ;;  %v688_v10 = vld [vmem:[%s905_s1 + $0x68] sm:$0xff]  }
   0x4   :  { %600 = vmatprep.subr.bf16.mxu0 %v680_v2  ;;  %663 = vmatprep.subr.bf16.mxu1 %v680_v2  ;;  %v685_v7 = vld [vmem:[%s905_s1 + $0x18] sm:$0xff]   ;;  %v687_v9 = vld [vmem:[%s905_s1 + $0x20] sm:$0xff]   ;;  %v689_v13 = vld [vmem:[%s905_s1 + $0x28] sm:$0xff]  }
   0x5   :  { %v696_v11 = vld [vmem:[%s906_s0 + $0x4] ss:$8 sps:$4 sm:$0xff]   ;;  %v690_v14 = vld [vmem:[%s905_s1 + $0x70] sm:$0xff]   ;;  %v692_v16 = vld [vmem:[%s905_s1 + $0x78] sm:$0xff]  }
   0x6   :  { %v699_v12 = vld [vmem:[%s906_s0 + $0x44] ss:$8 sps:$4 sm:$0xff]   ;;  %274 = vmatprep.mubr.bf16.mxu0 %v696_v11  ;;  %v691_v15 = vld [vmem:[%s905_s1 + $0x30] sm:$0xff]   ;;  %v693_v17 = vld [vmem:[%s905_s1 + $0x38] sm:$0xff]  }
   0x7   :  { %601 = vmatpush3.bf16.msra.mxu0 %v681_v3  ;;  %671 = vmatpush3.bf16.msra.mxu1 %v681_v3  ;;  %v694_v18 = vld [vmem:[%s906_s0] ss:$8 sps:$4 sm:$0xff]   ;;  %v700_v20 = vld [vmem:[%s906_s0 + $0x14] ss:$8 sps:$4 sm:$0xff]   ;;  %v704_v22 = vld [vmem:[%s906_s0 + $0x10] ss:$8 sps:$4 sm:$0xff]  }
   0x8   :  { %602 = vmatprep.subr.bf16.mxu0 %v682_v4  ;;  %664 = vmatprep.subr.bf16.mxu1 %v682_v4  ;;  %v697_v19 = vld [vmem:[%s906_s0 + $0x40] ss:$8 sps:$4 sm:$0xff]   ;;  %v702_v21 = vld [vmem:[%s906_s0 + $0x54] ss:$8 sps:$4 sm:$0xff]   ;;  %v705_v23 = vld [vmem:[%s906_s0 + $0x50] ss:$8 sps:$4 sm:$0xff]  }
   0x9   :  { %306 = vmatprep.mubr.bf16.mxu1 %v699_v12  ;;  %v706_v24 = vld [vmem:[%s906_s0 + $0x24] ss:$8 sps:$4 sm:$0xff]   ;;  %v710_v26 = vld [vmem:[%s906_s0 + $0x20] ss:$8 sps:$4 sm:$0xff]   ;;  %v712_v28 = vld [vmem:[%s906_s0 + $0x34] ss:$8 sps:$4 sm:$0xff]  }
   0xa   :  { %v708_v25 = vld [vmem:[%s906_s0 + $0x64] ss:$8 sps:$4 sm:$0xff]   ;;  %v711_v27 = vld [vmem:[%s906_s0 + $0x60] ss:$8 sps:$4 sm:$0xff]   ;;  %v714_v29 = vld [vmem:[%s906_s0 + $0x74] ss:$8 sps:$4 sm:$0xff]  }
   0xb   :  { %603 = vmatpush3.bf16.msra.mxu0 %v683_v5  ;;  %672 = vmatpush3.bf16.msra.mxu1 %v683_v5  ;;  %v716_v30 = vld [vmem:[%s906_s0 + $0x30] ss:$8 sps:$4 sm:$0xff]   ;;  %v842_v35 = vld [vmem:[%s907_s2] ss:$0 sm:$0xff] }
   0xc   :  { %604 = vmatprep.subr.bf16.mxu0 %v684_v6  ;;  %665 = vmatprep.subr.bf16.mxu1 %v684_v6  ;;  %v717_v31 = vld [vmem:[%s906_s0 + $0x70] ss:$8 sps:$4 sm:$0xff]   ;;  %v847_v41 = vld [vmem:[%s908_s3] ss:$0 sm:$0xff] }
   0xf   :  { %605 = vmatpush3.bf16.msra.mxu0 %v685_v7  ;;  %673 = vmatpush3.bf16.msra.mxu1 %v685_v7 }
  0x10   :  { %606 = vmatprep.subr.bf16.mxu0 %v686_v8  ;;  %666 = vmatprep.subr.bf16.mxu1 %v686_v8 }
  0x13   :  { %607 = vmatpush3.bf16.msra.mxu0 %v687_v9  ;;  %674 = vmatpush3.bf16.msra.mxu1 %v687_v9 }
  0x14   :  { %608 = vmatprep.subr.bf16.mxu0 %v688_v10  ;;  %667 = vmatprep.subr.bf16.mxu1 %v688_v10 }
  0x17   :  { %609 = vmatpush3.bf16.msra.mxu0 %v689_v13  ;;  %675 = vmatpush3.bf16.msra.mxu1 %v689_v13 }
  0x18   :  { %610 = vmatprep.subr.bf16.mxu0 %v690_v14  ;;  %668 = vmatprep.subr.bf16.mxu1 %v690_v14 }
  0x1b   :  { %611 = vmatpush3.bf16.msra.mxu0 %v691_v15  ;;  %676 = vmatpush3.bf16.msra.mxu1 %v691_v15 }
  0x1c   :  { %612 = vmatprep.subr.bf16.mxu0 %v692_v16  ;;  %669 = vmatprep.subr.bf16.mxu1 %v692_v16 }
  0x1f   :  { %613 = vmatpush3.bf16.msra.mxu0 %v693_v17  ;;  %677 = vmatpush3.bf16.msra.mxu1 %v693_v17 }
  0x22   :  { %275 = vmatmul.mubr.bf16.vlgmr.msra.gmra.mrb[0].mxu0 %v694_v18  ;;  %307 = vmatmul.mubr.bf16.vlgmr.msra.gmra.mrb[0].mxu1 %v697_v19 }
  0x23   :  { %282 = vmatprep.mubr.bf16.mxu0 %v700_v20  ;;  %314 = vmatprep.mubr.bf16.mxu1 %v702_v21 }
  0x2a   :  { %283 = vmatmul.mubr.bf16.gmra.mrb[4].mxu0 %v704_v22  ;;  %315 = vmatmul.mubr.bf16.gmra.mrb[4].mxu1 %v705_v23 }
  0x2b   :  { %290 = vmatprep.mubr.bf16.mxu0 %v706_v24  ;;  %322 = vmatprep.mubr.bf16.mxu1 %v708_v25 }
  0x32   :  { %291 = vmatmul.mubr.bf16.gmra.mrb[8].mxu0 %v710_v26  ;;  %323 = vmatmul.mubr.bf16.gmra.mrb[8].mxu1 %v711_v27 }
  0x33   :  { %298 = vmatprep.mubr.bf16.mxu0 %v712_v28  ;;  %330 = vmatprep.mubr.bf16.mxu1 %v714_v29 }
  0x3a   :  { %299 = vmatmul.mubr.bf16.gmra.mrb[12].mxu0 %v716_v30  ;;  %331 = vmatmul.mubr.bf16.gmra.mrb[12].mxu1 %v717_v31 }
  0xf5   :  { %v614_v32 = vpop.f32.mrb[0].mxu0  ;;  %v638_v33 = vpop.f32.mrb[0].mxu1 }
  0xf6   :  { %v615_v34 = vpop.f32.mrb[1].mxu0  ;;  %v639_v36 = vpop.f32.mrb[1].mxu1 }
  0xf7   :  { %v616_v37 = vadd.f32 %v615_v34, %v614_v32  ;;  %v640_v38 = vadd.f32 %v639_v36, %v638_v33  ;;  %v617_v39 = vpop.f32.mrb[2].mxu0  ;;  %v641_v40 = vpop.f32.mrb[2].mxu1 }
  0xf8   :  { %v618_v42 = vpop.f32.mrb[3].mxu0  ;;  %v642_v43 = vpop.f32.mrb[3].mxu1 }
  0xf9   :  { %v346_v44 = vmul.f32 %v616_v37, %v842_v35  ;;  %v354_v45 = vmul.f32 %v640_v38, %v842_v35  ;;  %v619_v46 = vadd.f32 %v618_v42, %v617_v39  ;;  %v643_v47 = vadd.f32 %v642_v43, %v641_v40 }
  0xfb   :  { %v369_v48 = vadd.f32 %v847_v41, %v346_v44  ;;  %v377_v49 = vadd.f32 %v847_v41, %v354_v45  ;;  %v347_v50 = vmul.f32 %v619_v46, %v842_v35  ;;  %v355_v51 = vmul.f32 %v643_v47, %v842_v35 }
  0xfd   :  { %v370_v52 = vadd.f32 %v847_v41, %v347_v50  ;;  %v378_v53 = vadd.f32 %v847_v41, %v355_v51  ;;  %v620_v54 = vpop.f32.mrb[4].mxu0  ;;  %v644_v55 = vpop.f32.mrb[4].mxu1  ;;  %v385_v56 = vmax.f32 %v369_v48, 0.0  ;;  %v393_v57 = vmax.f32 %v377_v49, 0.0 }
  0xfe   :  { %v621_v58 = vpop.f32.mrb[5].mxu0  ;;  %v645_v59 = vpop.f32.mrb[5].mxu1 }
  0xff   :  { %v386_v60 = vmax.f32 %v370_v52, 0.0  ;;  %v394_v61 = vmax.f32 %v378_v53, 0.0  ;;  %v622_v62 = vadd.f32 %v621_v58, %v620_v54  ;;  %v646_v63 = vadd.f32 %v645_v59, %v644_v55  ;;  %v623_v0 = vpop.f32.mrb[6].mxu0  ;;  %v647_v1 = vpop.f32.mrb[6].mxu1 }
 0x100   :  { %v624_v2 = vpop.f32.mrb[7].mxu0  ;;  %v648_v3 = vpop.f32.mrb[7].mxu1 }
 0x101   :  { %v554_v4 = vpack.c.bf16 %v386_v60, %v385_v56  ;;  %v574_v5 = vpack.c.bf16 %v394_v61, %v393_v57  ;;  %v348_v6 = vmul.f32 %v622_v62, %v842_v35  ;;  %v356_v7 = vmul.f32 %v646_v63, %v842_v35 }
 0x102   :  { %v625_v8 = vadd.f32 %v624_v2, %v623_v0  ;;  %v649_v9 = vadd.f32 %v648_v3, %v647_v1 }
 0x103   :  { %555 = vst [vmem:[%s909_s4] sm:$0xff] %v554_v4   ;;  %594 = vst [vmem:[%s909_s4 + $0x20] sm:$0xff] %v574_v5   ;;  %v371_v10 = vadd.f32 %v847_v41, %v348_v6  ;;  %v379_v11 = vadd.f32 %v847_v41, %v356_v7 }
 0x104   :  { %v349_v12 = vmul.f32 %v625_v8, %v842_v35  ;;  %v357_v13 = vmul.f32 %v649_v9, %v842_v35 }
 0x105   :  { %v626_v14 = vpop.f32.mrb[8].mxu0  ;;  %v650_v15 = vpop.f32.mrb[8].mxu1  ;;  %v387_v24 = vmax.f32 %v371_v10, 0.0  ;;  %v395_v25 = vmax.f32 %v379_v11, 0.0 }
 0x106   :  { %v372_v16 = vadd.f32 %v847_v41, %v349_v12  ;;  %v380_v17 = vadd.f32 %v847_v41, %v357_v13  ;;  %v627_v18 = vpop.f32.mrb[9].mxu0  ;;  %v651_v19 = vpop.f32.mrb[9].mxu1 }
 0x107   :  { %v628_v20 = vadd.f32 %v627_v18, %v626_v14  ;;  %v652_v21 = vadd.f32 %v651_v19, %v650_v15  ;;  %v629_v22 = vpop.f32.mrb[10].mxu0  ;;  %v653_v23 = vpop.f32.mrb[10].mxu1 }
 0x108   :  { %v388_v26 = vmax.f32 %v372_v16, 0.0  ;;  %v396_v27 = vmax.f32 %v380_v17, 0.0  ;;  %v630_v28 = vpop.f32.mrb[11].mxu0  ;;  %v654_v29 = vpop.f32.mrb[11].mxu1 }
 0x109   :  { %v350_v30 = vmul.f32 %v628_v20, %v842_v35  ;;  %v358_v31 = vmul.f32 %v652_v21, %v842_v35  ;;  %v631_v32 = vadd.f32 %v630_v28, %v629_v22  ;;  %v655_v33 = vadd.f32 %v654_v29, %v653_v23 }
 0x10a   :  { %v559_v34 = vpack.c.bf16 %v388_v26, %v387_v24  ;;  %v579_v36 = vpack.c.bf16 %v396_v27, %v395_v25 }
 0x10b   :  { %v373_v37 = vadd.f32 %v847_v41, %v350_v30  ;;  %v381_v38 = vadd.f32 %v847_v41, %v358_v31  ;;  %v351_v39 = vmul.f32 %v631_v32, %v842_v35  ;;  %v359_v40 = vmul.f32 %v655_v33, %v842_v35 }
 0x10c   :  { %591 = vst [vmem:[%s909_s4 + $0x8] sm:$0xff] %v559_v34   ;;  %595 = vst [vmem:[%s909_s4 + $0x28] sm:$0xff] %v579_v36  }
 0x10d   :  { %v374_v42 = vadd.f32 %v847_v41, %v351_v39  ;;  %v382_v43 = vadd.f32 %v847_v41, %v359_v40  ;;  %v632_v44 = vpop.f32.mrb[12].mxu0  ;;  %v656_v45 = vpop.f32.mrb[12].mxu1  ;;  %v389_v46 = vmax.f32 %v373_v37, 0.0  ;;  %v397_v47 = vmax.f32 %v381_v38, 0.0 }
 0x10e   :  { %v633_v48 = vpop.f32.mrb[13].mxu0  ;;  %v657_v49 = vpop.f32.mrb[13].mxu1 }
 0x10f   :  { %v390_v50 = vmax.f32 %v374_v42, 0.0  ;;  %v398_v51 = vmax.f32 %v382_v43, 0.0  ;;  %v634_v52 = vadd.f32 %v633_v48, %v632_v44  ;;  %v658_v53 = vadd.f32 %v657_v49, %v656_v45  ;;  %v635_v54 = vpop.f32.mrb[14].mxu0  ;;  %v659_v55 = vpop.f32.mrb[14].mxu1 }
 0x110   :  { %v636_v56 = vpop.f32.mrb[15].mxu0  ;;  %v660_v57 = vpop.f32.mrb[15].mxu1 }
 0x111   :  { %v564_v58 = vpack.c.bf16 %v390_v50, %v389_v46  ;;  %v584_v59 = vpack.c.bf16 %v398_v51, %v397_v47  ;;  %v352_v60 = vmul.f32 %v634_v52, %v842_v35  ;;  %v360_v61 = vmul.f32 %v658_v53, %v842_v35 }
 0x112   :  { %v637_v62 = vadd.f32 %v636_v56, %v635_v54  ;;  %v661_v63 = vadd.f32 %v660_v57, %v659_v55 }
 0x113   :  { %592 = vst [vmem:[%s909_s4 + $0x10] sm:$0xff] %v564_v58   ;;  %596 = vst [vmem:[%s909_s4 + $0x30] sm:$0xff] %v584_v59   ;;  %v375_v0 = vadd.f32 %v847_v41, %v352_v60  ;;  %v383_v1 = vadd.f32 %v847_v41, %v360_v61 }
 0x114   :  { %v353_v2 = vmul.f32 %v637_v62, %v842_v35  ;;  %v361_v3 = vmul.f32 %v661_v63, %v842_v35 }
 0x115   :  { %v391_v6 = vmax.f32 %v375_v0, 0.0  ;;  %v399_v7 = vmax.f32 %v383_v1, 0.0 }
 0x116   :  { %v376_v4 = vadd.f32 %v847_v41, %v353_v2  ;;  %v384_v5 = vadd.f32 %v847_v41, %v361_v3 }
 0x118   :  { %v392_v8 = vmax.f32 %v376_v4, 0.0  ;;  %v400_v9 = vmax.f32 %v384_v5, 0.0 }
 0x11a   :  { %v569_v10 = vpack.c.bf16 %v392_v8, %v391_v6  ;;  %v589_v11 = vpack.c.bf16 %v400_v9, %v399_v7 }
 0x11c   :  { %593 = vst [vmem:[%s909_s4 + $0x18] sm:$0xff] %v569_v10   ;;  %597 = vst [vmem:[%s909_s4 + $0x38] sm:$0xff] %v589_v11  }

// kernel: run.43
= control target key start
LH: loop header
LB: loop body
LE: loop exit
PB: predicated region body
PF: predicated region fallthrough
CT: control target
= control target key end

     0   :  { %s331_s1 = inlined_call_operand.vmem [shape: bf16[128,128], index: 1, kind: input, shape index: {}]   ;;  %s332_s0 = inlined_call_operand.vmem [shape: bf16[32,128], index: 0, kind: input, shape index: {}]   ;;  %s333_s2 = inlined_call_operand.vmem [shape: f32[1,128], index: 2, kind: input, shape index: {}]   ;;  %s334_s3 = inlined_call_operand.vmem [shape: f32[1,128], index: 3, kind: input, shape index: {}]   ;;  %s335_s4 = inlined_call_operand.vmem [shape: bf16[32,128], index: 4, kind: output, shape index: {}]  }
   0x1   :  { %v254_v0 = vld [vmem:[%s331_s1] sm:$0xff]   ;;  %v255_v1 = vld [vmem:[%s331_s1 + $0x8] sm:$0xff]   ;;  %v256_v2 = vld [vmem:[%s331_s1 + $0x10] sm:$0xff]  }
   0x2   :  { %234 = vmatprep.subr.bf16.mxu0 %v254_v0  ;;  %v257_v3 = vld [vmem:[%s331_s1 + $0x18] sm:$0xff]   ;;  %v262_v4 = vld [vmem:[%s332_s0] sm:$0xff]   ;;  %v259_v6 = vld [vmem:[%s331_s1 + $0x28] sm:$0xff]  }
   0x3   :  { %235 = vmatpush3.bf16.msra.mxu0 %v254_v0  ;;  %250 = vmatprep.mubr.bf16.mxu0 %v262_v4  ;;  %v258_v5 = vld [vmem:[%s331_s1 + $0x20] sm:$0xff]   ;;  %v260_v7 = vld [vmem:[%s331_s1 + $0x30] sm:$0xff]   ;;  %v261_v8 = vld [vmem:[%s331_s1 + $0x38] sm:$0xff]  }
   0x4   :  { %236 = vmatprep.subr.bf16.mxu0 %v255_v1  ;;  %v263_v9 = vld [vmem:[%s332_s0 + $0x8] sm:$0xff]   ;;  %v203_v10 = vld [vmem:[%s333_s2] ss:$0 sm:$0xff] }
   0x5   :  { %v204_v14 = vld [vmem:[%s334_s3] ss:$0 sm:$0xff] }
   0x7   :  { %237 = vmatpush3.bf16.msra.mxu0 %v255_v1 }
   0x8   :  { %238 = vmatprep.subr.bf16.mxu0 %v256_v2 }
   0xb   :  { %239 = vmatpush3.bf16.msra.mxu0 %v256_v2 }
   0xc   :  { %240 = vmatprep.subr.bf16.mxu0 %v257_v3 }
   0xf   :  { %241 = vmatpush3.bf16.msra.mxu0 %v257_v3 }
  0x10   :  { %242 = vmatprep.subr.bf16.mxu0 %v258_v5 }
  0x13   :  { %243 = vmatpush3.bf16.msra.mxu0 %v258_v5 }
  0x14   :  { %244 = vmatprep.subr.bf16.mxu0 %v259_v6 }
  0x17   :  { %245 = vmatpush3.bf16.msra.mxu0 %v259_v6 }
  0x18   :  { %246 = vmatprep.subr.bf16.mxu0 %v260_v7 }
  0x1b   :  { %247 = vmatpush3.bf16.msra.mxu0 %v260_v7 }
  0x1c   :  { %248 = vmatprep.subr.bf16.mxu0 %v261_v8 }
  0x1f   :  { %249 = vmatpush3.bf16.msra.mxu0 %v261_v8 }
  0x22   :  { %251 = vmatmul.mubr.bf16.vlgmr.msra.gmra.mrb[0].mxu0 %v263_v9 }
  0xf5   :  { %v252_v11 = vpop.f32.mrb[0].mxu0 }
  0xf6   :  { %v156_v12 = vmul.f32 %v252_v11, %v203_v10  ;;  %v132_v13 = vpop.f32.mrb[1].mxu0 }
  0xf7   :  { %v154_v15 = vmul.f32 %v203_v10, %v132_v13  ;;  %v253_v16 = vpop.f32.mrb[2].mxu0 }
  0xf8   :  { %v157_v17 = vmul.f32 %v253_v16, %v203_v10  ;;  %v135_v18 = vpop.f32.mrb[3].mxu0  ;;  %v167_v20 = vadd.f32 %v204_v14, %v156_v12 }
  0xf9   :  { %v155_v19 = vmul.f32 %v203_v10, %v135_v18  ;;  %v165_v22 = vadd.f32 %v204_v14, %v154_v15 }
  0xfa   :  { %v168_v21 = vadd.f32 %v204_v14, %v157_v17 }
  0xfb   :  { %v166_v23 = vadd.f32 %v204_v14, %v155_v19 }
  0xfc   :  { %v221_v24 = vpack.c.bf16 %v168_v21, %v167_v20 }
  0xfd   :  { %v216_v25 = vpack.c.bf16 %v166_v23, %v165_v22 }
  0xfe   :  { %223 = vst [vmem:[%s335_s4 + $0x8] sm:$0xff] %v221_v24  }
  0xff   :  { %217 = vst [vmem:[%s335_s4] sm:$0xff] %v216_v25  }

// kernel: run.44
= control target key start
LH: loop header
LB: loop body
LE: loop exit
PB: predicated region body
PF: predicated region fallthrough
CT: control target
= control target key end

     0   :  { %s370_s1 = inlined_call_operand.vmem [shape: bf16[128,128], index: 1, kind: input, shape index: {}]   ;;  %s371_s0 = inlined_call_operand.vmem [shape: bf16[32,128], index: 0, kind: input, shape index: {}]   ;;  %s372_s2 = inlined_call_operand.vmem [shape: f32[1,128], index: 2, kind: input, shape index: {}]   ;;  %s373_s4 = inlined_call_operand.vmem [shape: bf16[32,128], index: 4, kind: input, shape index: {}]   ;;  %s374_s3 = inlined_call_operand.vmem [shape: f32[1,128], index: 3, kind: input, shape index: {}]   ;;  %s375_s5 = inlined_call_operand.vmem [shape: bf16[32,128], index: 5, kind: output, shape index: {}]  }
   0x1   :  { %v282_v0 = vld [vmem:[%s370_s1] sm:$0xff]   ;;  %v283_v1 = vld [vmem:[%s370_s1 + $0x8] sm:$0xff]   ;;  %v284_v2 = vld [vmem:[%s370_s1 + $0x10] sm:$0xff]  }
   0x2   :  { %262 = vmatprep.subr.bf16.mxu0 %v282_v0  ;;  %v285_v3 = vld [vmem:[%s370_s1 + $0x18] sm:$0xff]   ;;  %v290_v4 = vld [vmem:[%s371_s0] sm:$0xff]   ;;  %v287_v6 = vld [vmem:[%s370_s1 + $0x28] sm:$0xff]  }
   0x3   :  { %263 = vmatpush3.bf16.msra.mxu0 %v282_v0  ;;  %278 = vmatprep.mubr.bf16.mxu0 %v290_v4  ;;  %v286_v5 = vld [vmem:[%s370_s1 + $0x20] sm:$0xff]   ;;  %v288_v7 = vld [vmem:[%s370_s1 + $0x30] sm:$0xff]   ;;  %v289_v8 = vld [vmem:[%s370_s1 + $0x38] sm:$0xff]  }
   0x4   :  { %264 = vmatprep.subr.bf16.mxu0 %v283_v1  ;;  %v291_v9 = vld [vmem:[%s371_s0 + $0x8] sm:$0xff]   ;;  %v222_v10 = vld [vmem:[%s372_s2] ss:$0 sm:$0xff] }
   0x5   :  { %v250_v11 = vld [vmem:[%s373_s4 + $0x8] sm:$0xff]   ;;  %v233_v12 = vld [vmem:[%s373_s4] sm:$0xff]  }
   0x6   :  { %v223_v14 = vld [vmem:[%s374_s3] ss:$0 sm:$0xff]  ;;  %v238_v16 = vunpack.c.l.bf16 %v250_v11  ;;  %v234_v19 = vunpack.c.l.bf16 %v233_v12  ;;  %v239_v23 = vunpack.c.h.bf16 %v250_v11  ;;  %v235_v27 = vunpack.c.h.bf16 %v233_v12 }
   0x7   :  { %265 = vmatpush3.bf16.msra.mxu0 %v283_v1 }
   0x8   :  { %266 = vmatprep.subr.bf16.mxu0 %v284_v2 }
   0xb   :  { %267 = vmatpush3.bf16.msra.mxu0 %v284_v2 }
   0xc   :  { %268 = vmatprep.subr.bf16.mxu0 %v285_v3 }
   0xf   :  { %269 = vmatpush3.bf16.msra.mxu0 %v285_v3 }
  0x10   :  { %270 = vmatprep.subr.bf16.mxu0 %v286_v5 }
  0x13   :  { %271 = vmatpush3.bf16.msra.mxu0 %v286_v5 }
  0x14   :  { %272 = vmatprep.subr.bf16.mxu0 %v287_v6 }
  0x17   :  { %273 = vmatpush3.bf16.msra.mxu0 %v287_v6 }
  0x18   :  { %274 = vmatprep.subr.bf16.mxu0 %v288_v7 }
  0x1b   :  { %275 = vmatpush3.bf16.msra.mxu0 %v288_v7 }
  0x1c   :  { %276 = vmatprep.subr.bf16.mxu0 %v289_v8 }
  0x1f   :  { %277 = vmatpush3.bf16.msra.mxu0 %v289_v8 }
  0x22   :  { %279 = vmatmul.mubr.bf16.vlgmr.msra.gmra.mrb[0].mxu0 %v291_v9 }
  0xf5   :  { %v280_v13 = vpop.f32.mrb[0].mxu0 }
  0xf6   :  { %v159_v15 = vmul.f32 %v280_v13, %v222_v10  ;;  %v135_v17 = vpop.f32.mrb[1].mxu0 }
  0xf7   :  { %v157_v18 = vmul.f32 %v222_v10, %v135_v17  ;;  %v281_v20 = vpop.f32.mrb[2].mxu0 }
  0xf8   :  { %v170_v21 = vadd.f32 %v223_v14, %v159_v15  ;;  %v160_v22 = vmul.f32 %v281_v20, %v222_v10  ;;  %v138_v24 = vpop.f32.mrb[3].mxu0 }
  0xf9   :  { %v168_v25 = vadd.f32 %v223_v14, %v157_v18  ;;  %v158_v26 = vmul.f32 %v222_v10, %v138_v24 }
  0xfa   :  { %v182_v28 = vadd.f32 %v238_v16, %v170_v21  ;;  %v171_v29 = vadd.f32 %v223_v14, %v160_v22 }
  0xfb   :  { %v180_v30 = vadd.f32 %v234_v19, %v168_v25  ;;  %v169_v31 = vadd.f32 %v223_v14, %v158_v26 }
  0xfc   :  { %v183_v32 = vadd.f32 %v239_v23, %v171_v29  ;;  %v186_v34 = vmax.f32 %v182_v28, 0.0 }
  0xfd   :  { %v181_v33 = vadd.f32 %v235_v27, %v169_v31  ;;  %v184_v36 = vmax.f32 %v180_v30, 0.0 }
  0xfe   :  { %v187_v35 = vmax.f32 %v183_v32, 0.0 }
  0xff   :  { %v185_v37 = vmax.f32 %v181_v33, 0.0 }
 0x100   :  { %v248_v38 = vpack.c.bf16 %v187_v35, %v186_v34 }
 0x101   :  { %v243_v39 = vpack.c.bf16 %v185_v37, %v184_v36 }
 0x102   :  { %251 = vst [vmem:[%s375_s5 + $0x8] sm:$0xff] %v248_v38  }
 0x103   :  { %244 = vst [vmem:[%s375_s5] sm:$0xff] %v243_v39  }

// kernel: run.45
= control target key start
LH: loop header
LB: loop body
LE: loop exit
PB: predicated region body
PF: predicated region fallthrough
CT: control target
= control target key end

     0   :  { %s335_s1 = inlined_call_operand.vmem [shape: bf16[128,128], index: 1, kind: input, shape index: {}]   ;;  %s336_s0 = inlined_call_operand.vmem [shape: bf16[32,128], index: 0, kind: input, shape index: {}]   ;;  %s337_s2 = inlined_call_operand.vmem [shape: f32[1,128], index: 2, kind: input, shape index: {}]   ;;  %s338_s3 = inlined_call_operand.vmem [shape: f32[1,128], index: 3, kind: input, shape index: {}]   ;;  %s339_s4 = inlined_call_operand.vmem [shape: bf16[32,128], index: 4, kind: output, shape index: {}]  }
   0x1   :  { %v258_v0 = vld [vmem:[%s335_s1] sm:$0xff]   ;;  %v259_v1 = vld [vmem:[%s335_s1 + $0x8] sm:$0xff]   ;;  %v260_v2 = vld [vmem:[%s335_s1 + $0x10] sm:$0xff]  }
   0x2   :  { %238 = vmatprep.subr.bf16.mxu0 %v258_v0  ;;  %v261_v3 = vld [vmem:[%s335_s1 + $0x18] sm:$0xff]   ;;  %v266_v4 = vld [vmem:[%s336_s0] sm:$0xff]   ;;  %v263_v6 = vld [vmem:[%s335_s1 + $0x28] sm:$0xff]  }
   0x3   :  { %239 = vmatpush3.bf16.msra.mxu0 %v258_v0  ;;  %254 = vmatprep.mubr.bf16.mxu0 %v266_v4  ;;  %v262_v5 = vld [vmem:[%s335_s1 + $0x20] sm:$0xff]   ;;  %v264_v7 = vld [vmem:[%s335_s1 + $0x30] sm:$0xff]   ;;  %v265_v8 = vld [vmem:[%s335_s1 + $0x38] sm:$0xff]  }
   0x4   :  { %240 = vmatprep.subr.bf16.mxu0 %v259_v1  ;;  %v267_v9 = vld [vmem:[%s336_s0 + $0x8] sm:$0xff]   ;;  %v207_v10 = vld [vmem:[%s337_s2] ss:$0 sm:$0xff] }
   0x5   :  { %v208_v12 = vld [vmem:[%s338_s3] ss:$0 sm:$0xff] }
   0x7   :  { %241 = vmatpush3.bf16.msra.mxu0 %v259_v1 }
   0x8   :  { %242 = vmatprep.subr.bf16.mxu0 %v260_v2 }
   0xb   :  { %243 = vmatpush3.bf16.msra.mxu0 %v260_v2 }
   0xc   :  { %244 = vmatprep.subr.bf16.mxu0 %v261_v3 }
   0xf   :  { %245 = vmatpush3.bf16.msra.mxu0 %v261_v3 }
  0x10   :  { %246 = vmatprep.subr.bf16.mxu0 %v262_v5 }
  0x13   :  { %247 = vmatpush3.bf16.msra.mxu0 %v262_v5 }
  0x14   :  { %248 = vmatprep.subr.bf16.mxu0 %v263_v6 }
  0x17   :  { %249 = vmatpush3.bf16.msra.mxu0 %v263_v6 }
  0x18   :  { %250 = vmatprep.subr.bf16.mxu0 %v264_v7 }
  0x1b   :  { %251 = vmatpush3.bf16.msra.mxu0 %v264_v7 }
  0x1c   :  { %252 = vmatprep.subr.bf16.mxu0 %v265_v8 }
  0x1f   :  { %253 = vmatpush3.bf16.msra.mxu0 %v265_v8 }
  0x22   :  { %255 = vmatmul.mubr.bf16.vlgmr.msra.gmra.mrb[0].mxu0 %v267_v9 }
  0xf5   :  { %v256_v11 = vpop.f32.mrb[0].mxu0 }
  0xf6   :  { %v156_v13 = vmul.f32 %v256_v11, %v207_v10  ;;  %v132_v14 = vpop.f32.mrb[1].mxu0 }
  0xf7   :  { %v154_v15 = vmul.f32 %v207_v10, %v132_v14  ;;  %v257_v16 = vpop.f32.mrb[2].mxu0 }
  0xf8   :  { %v167_v17 = vadd.f32 %v208_v12, %v156_v13  ;;  %v157_v18 = vmul.f32 %v257_v16, %v207_v10  ;;  %v135_v19 = vpop.f32.mrb[3].mxu0 }
  0xf9   :  { %v165_v20 = vadd.f32 %v208_v12, %v154_v15  ;;  %v155_v21 = vmul.f32 %v207_v10, %v135_v19 }
  0xfa   :  { %v168_v22 = vadd.f32 %v208_v12, %v157_v18  ;;  %v171_v24 = vmax.f32 %v167_v17, 0.0 }
  0xfb   :  { %v166_v23 = vadd.f32 %v208_v12, %v155_v21  ;;  %v169_v26 = vmax.f32 %v165_v20, 0.0 }
  0xfc   :  { %v172_v25 = vmax.f32 %v168_v22, 0.0 }
  0xfd   :  { %v170_v27 = vmax.f32 %v166_v23, 0.0 }
  0xfe   :  { %v225_v28 = vpack.c.bf16 %v172_v25, %v171_v24 }
  0xff   :  { %v220_v29 = vpack.c.bf16 %v170_v27, %v169_v26 }
 0x100   :  { %227 = vst [vmem:[%s339_s4 + $0x8] sm:$0xff] %v225_v28  }
 0x101   :  { %221 = vst [vmem:[%s339_s4] sm:$0xff] %v220_v29  }

// kernel: run.46
= control target key start
LH: loop header
LB: loop body
LE: loop exit
PB: predicated region body
PF: predicated region fallthrough
CT: control target
= control target key end

     0   :  { %s473_s1 = inlined_call_operand.vmem [shape: bf16[256,128], index: 1, kind: input, shape index: {}]   ;;  %s474_s0 = inlined_call_operand.vmem [shape: bf16[32,256], index: 0, kind: input, shape index: {}]   ;;  %s475_s2 = inlined_call_operand.vmem [shape: f32[1,128], index: 2, kind: input, shape index: {}]   ;;  %s476_s3 = inlined_call_operand.vmem [shape: f32[1,128], index: 3, kind: input, shape index: {}]   ;;  %s477_s4 = inlined_call_operand.vmem [shape: bf16[32,128], index: 4, kind: output, shape index: {}]  }
   0x1   :  { %v354_v0 = vld [vmem:[%s473_s1 + $0x40] sm:$0xff]   ;;  %v356_v2 = vld [vmem:[%s473_s1 + $0x48] sm:$0xff]   ;;  %v358_v4 = vld [vmem:[%s473_s1 + $0x50] sm:$0xff]  }
   0x2   :  { %v355_v1 = vld [vmem:[%s473_s1] sm:$0xff]   ;;  %310 = vmatprep.subr.bf16.mxu0 %v354_v0  ;;  %338 = vmatprep.subr.bf16.mxu1 %v354_v0  ;;  %v357_v3 = vld [vmem:[%s473_s1 + $0x8] sm:$0xff]   ;;  %v359_v5 = vld [vmem:[%s473_s1 + $0x10] sm:$0xff]  }
   0x3   :  { %311 = vmatpush3.bf16.msra.mxu0 %v355_v1  ;;  %346 = vmatpush3.bf16.msra.mxu1 %v355_v1  ;;  %v360_v6 = vld [vmem:[%s473_s1 + $0x58] sm:$0xff]   ;;  %v362_v8 = vld [vmem:[%s473_s1 + $0x60] sm:$0xff]   ;;  %v364_v10 = vld [vmem:[%s473_s1 + $0x68] sm:$0xff]  }
   0x4   :  { %312 = vmatprep.subr.bf16.mxu0 %v356_v2  ;;  %339 = vmatprep.subr.bf16.mxu1 %v356_v2  ;;  %v361_v7 = vld [vmem:[%s473_s1 + $0x18] sm:$0xff]   ;;  %v363_v9 = vld [vmem:[%s473_s1 + $0x20] sm:$0xff]   ;;  %v365_v13 = vld [vmem:[%s473_s1 + $0x28] sm:$0xff]  }
   0x5   :  { %v372_v11 = vld [vmem:[%s474_s0 + $0x4] ss:$8 sps:$4 sm:$0xff]   ;;  %v375_v12 = vld [vmem:[%s474_s0 + $0x14] ss:$8 sps:$4 sm:$0xff]   ;;  %v370_v18 = vld [vmem:[%s474_s0] ss:$8 sps:$4 sm:$0xff]  }
   0x6   :  { %v366_v14 = vld [vmem:[%s473_s1 + $0x70] sm:$0xff]   ;;  %202 = vmatprep.mubr.bf16.mxu0 %v372_v11  ;;  %210 = vmatprep.mubr.bf16.mxu1 %v375_v12  ;;  %v368_v16 = vld [vmem:[%s473_s1 + $0x78] sm:$0xff]   ;;  %v289_v23 = vld [vmem:[%s475_s2] ss:$0 sm:$0xff] }
   0x7   :  { %313 = vmatpush3.bf16.msra.mxu0 %v357_v3  ;;  %347 = vmatpush3.bf16.msra.mxu1 %v357_v3  ;;  %v367_v15 = vld [vmem:[%s473_s1 + $0x30] sm:$0xff]   ;;  %v369_v17 = vld [vmem:[%s473_s1 + $0x38] sm:$0xff]   ;;  %v290_v29 = vld [vmem:[%s476_s3] ss:$0 sm:$0xff] }
   0x8   :  { %314 = vmatprep.subr.bf16.mxu0 %v358_v4  ;;  %340 = vmatprep.subr.bf16.mxu1 %v358_v4  ;;  %v373_v19 = vld [vmem:[%s474_s0 + $0x10] ss:$8 sps:$4 sm:$0xff]  }
   0xb   :  { %315 = vmatpush3.bf16.msra.mxu0 %v359_v5  ;;  %348 = vmatpush3.bf16.msra.mxu1 %v359_v5 }
   0xc   :  { %316 = vmatprep.subr.bf16.mxu0 %v360_v6  ;;  %341 = vmatprep.subr.bf16.mxu1 %v360_v6 }
   0xf   :  { %317 = vmatpush3.bf16.msra.mxu0 %v361_v7  ;;  %349 = vmatpush3.bf16.msra.mxu1 %v361_v7 }
  0x10   :  { %318 = vmatprep.subr.bf16.mxu0 %v362_v8  ;;  %342 = vmatprep.subr.bf16.mxu1 %v362_v8 }
  0x13   :  { %319 = vmatpush3.bf16.msra.mxu0 %v363_v9  ;;  %350 = vmatpush3.bf16.msra.mxu1 %v363_v9 }
  0x14   :  { %320 = vmatprep.subr.bf16.mxu0 %v364_v10  ;;  %343 = vmatprep.subr.bf16.mxu1 %v364_v10 }
  0x17   :  { %321 = vmatpush3.bf16.msra.mxu0 %v365_v13  ;;  %351 = vmatpush3.bf16.msra.mxu1 %v365_v13 }
  0x18   :  { %322 = vmatprep.subr.bf16.mxu0 %v366_v14  ;;  %344 = vmatprep.subr.bf16.mxu1 %v366_v14 }
  0x1b   :  { %323 = vmatpush3.bf16.msra.mxu0 %v367_v15  ;;  %352 = vmatpush3.bf16.msra.mxu1 %v367_v15 }
  0x1c   :  { %324 = vmatprep.subr.bf16.mxu0 %v368_v16  ;;  %345 = vmatprep.subr.bf16.mxu1 %v368_v16 }
  0x1f   :  { %325 = vmatpush3.bf16.msra.mxu0 %v369_v17  ;;  %353 = vmatpush3.bf16.msra.mxu1 %v369_v17 }
  0x22   :  { %203 = vmatmul.mubr.bf16.vlgmr.msra.gmra.mrb[0].mxu0 %v370_v18  ;;  %211 = vmatmul.mubr.bf16.vlgmr.msra.gmra.mrb[0].mxu1 %v373_v19 }
  0xf5   :  { %v326_v20 = vpop.f32.mrb[0].mxu0  ;;  %v332_v21 = vpop.f32.mrb[0].mxu1 }
  0xf6   :  { %v327_v22 = vpop.f32.mrb[1].mxu0  ;;  %v333_v24 = vpop.f32.mrb[1].mxu1 }
  0xf7   :  { %v328_v25 = vadd.f32 %v327_v22, %v326_v20  ;;  %v334_v26 = vadd.f32 %v333_v24, %v332_v21  ;;  %v329_v27 = vpop.f32.mrb[2].mxu0  ;;  %v335_v28 = vpop.f32.mrb[2].mxu1 }
  0xf8   :  { %v330_v30 = vpop.f32.mrb[3].mxu0  ;;  %v336_v31 = vpop.f32.mrb[3].mxu1 }
  0xf9   :  { %v226_v32 = vmul.f32 %v328_v25, %v289_v23  ;;  %v228_v33 = vmul.f32 %v334_v26, %v289_v23  ;;  %v331_v34 = vadd.f32 %v330_v30, %v329_v27  ;;  %v337_v35 = vadd.f32 %v336_v31, %v335_v28 }
  0xfb   :  { %v237_v36 = vadd.f32 %v290_v29, %v226_v32  ;;  %v239_v37 = vadd.f32 %v290_v29, %v228_v33  ;;  %v227_v38 = vmul.f32 %v331_v34, %v289_v23  ;;  %v229_v39 = vmul.f32 %v337_v35, %v289_v23 }
  0xfd   :  { %v238_v40 = vadd.f32 %v290_v29, %v227_v38  ;;  %v240_v41 = vadd.f32 %v290_v29, %v229_v39  ;;  %v241_v42 = vmax.f32 %v237_v36, 0.0  ;;  %v243_v43 = vmax.f32 %v239_v37, 0.0 }
  0xff   :  { %v242_v44 = vmax.f32 %v238_v40, 0.0  ;;  %v244_v45 = vmax.f32 %v240_v41, 0.0 }
 0x101   :  { %v302_v46 = vpack.c.bf16 %v242_v44, %v241_v42  ;;  %v307_v47 = vpack.c.bf16 %v244_v45, %v243_v43 }
 0x103   :  { %303 = vst [vmem:[%s477_s4] sm:$0xff] %v302_v46   ;;  %309 = vst [vmem:[%s477_s4 + $0x8] sm:$0xff] %v307_v47  }

// kernel: run.49
= control target key start
LH: loop header
LB: loop body
LE: loop exit
PB: predicated region body
PF: predicated region fallthrough
CT: control target
= control target key end

     0   :  { %s666_s1 = inlined_call_operand.vmem [shape: bf16[384,128], index: 1, kind: input, shape index: {}]   ;;  %s667_s0 = inlined_call_operand.vmem [shape: bf16[32,384], index: 0, kind: input, shape index: {}]   ;;  %s668_s2 = inlined_call_operand.vmem [shape: f32[1,128], index: 2, kind: input, shape index: {}]   ;;  %s669_s3 = inlined_call_operand.vmem [shape: f32[1,128], index: 3, kind: input, shape index: {}]   ;;  %s670_s4 = inlined_call_operand.vmem [shape: bf16[32,128], index: 4, kind: output, shape index: {}]  }
   0x1   :  { %v507_v0 = vld [vmem:[%s666_s1 + $0x40] sm:$0xff]   ;;  %v510_v3 = vld [vmem:[%s666_s1 + $0x48] sm:$0xff]   ;;  %v513_v6 = vld [vmem:[%s666_s1 + $0x50] sm:$0xff]  }
   0x2   :  { %v508_v1 = vld [vmem:[%s666_s1] sm:$0xff]   ;;  %449 = vmatprep.subr.bf16.mxu0 %v507_v0  ;;  %v511_v4 = vld [vmem:[%s666_s1 + $0x8] sm:$0xff]   ;;  %v514_v7 = vld [vmem:[%s666_s1 + $0x10] sm:$0xff]  }
   0x3   :  { %v509_v2 = vld [vmem:[%s666_s1 + $0x80] sm:$0xff]   ;;  %450 = vmatpush3.bf16.msra.mxu0 %v508_v1  ;;  %v512_v5 = vld [vmem:[%s666_s1 + $0x88] sm:$0xff]   ;;  %v515_v8 = vld [vmem:[%s666_s1 + $0x90] sm:$0xff]  }
   0x4   :  { %487 = vmatprep.subr.bf16.mxu1 %v509_v2  ;;  %451 = vmatprep.subr.bf16.mxu0 %v510_v3  ;;  %v516_v9 = vld [vmem:[%s666_s1 + $0x58] sm:$0xff]   ;;  %v519_v12 = vld [vmem:[%s666_s1 + $0x60] sm:$0xff]   ;;  %v522_v15 = vld [vmem:[%s666_s1 + $0x68] sm:$0xff]  }
   0x5   :  { %488 = vmatpush3.bf16.msra.mxu1 %v509_v2  ;;  %v517_v10 = vld [vmem:[%s666_s1 + $0x18] sm:$0xff]   ;;  %v521_v13 = vld [vmem:[%s666_s1 + $0xa0] sm:$0xff]   ;;  %v524_v16 = vld [vmem:[%s666_s1 + $0xa8] sm:$0xff]  }
   0x6   :  { %489 = vmatprep.subr.bf16.mxu1 %v512_v5  ;;  %v518_v11 = vld [vmem:[%s666_s1 + $0x98] sm:$0xff]   ;;  %v520_v14 = vld [vmem:[%s666_s1 + $0x20] sm:$0xff]   ;;  %v523_v17 = vld [vmem:[%s666_s1 + $0x28] sm:$0xff]  }
   0x7   :  { %452 = vmatpush3.bf16.msra.mxu0 %v511_v4  ;;  %v525_v18 = vld [vmem:[%s666_s1 + $0x70] sm:$0xff]   ;;  %v528_v21 = vld [vmem:[%s666_s1 + $0x78] sm:$0xff]   ;;  %v531_v26 = vld [vmem:[%s667_s0] ss:$12 sps:$4 sm:$0xff]  }
   0x8   :  { %453 = vmatprep.subr.bf16.mxu0 %v513_v6  ;;  %v526_v19 = vld [vmem:[%s666_s1 + $0x30] sm:$0xff]   ;;  %v530_v22 = vld [vmem:[%s666_s1 + $0xb8] sm:$0xff]   ;;  %v535_v28 = vld [vmem:[%s667_s0 + $0x20] ss:$12 sps:$4 sm:$0xff]  }
   0x9   :  { %490 = vmatpush3.bf16.msra.mxu1 %v512_v5  ;;  %v527_v20 = vld [vmem:[%s666_s1 + $0xb0] sm:$0xff]   ;;  %v529_v25 = vld [vmem:[%s666_s1 + $0x38] sm:$0xff]   ;;  %v428_v37 = vld [vmem:[%s668_s2] ss:$0 sm:$0xff] }
   0xa   :  { %491 = vmatprep.subr.bf16.mxu1 %v515_v8  ;;  %v533_v23 = vld [vmem:[%s667_s0 + $0x4] ss:$12 sps:$4 sm:$0xff]   ;;  %v534_v24 = vld [vmem:[%s667_s0 + $0x8] ss:$12 sps:$4 sm:$0xff]   ;;  %v429_v41 = vld [vmem:[%s669_s3] ss:$0 sm:$0xff] }
   0xb   :  { %454 = vmatpush3.bf16.msra.mxu0 %v514_v7  ;;  %282 = vmatprep.mubr.bf16.mxu0 %v533_v23  ;;  %v536_v27 = vld [vmem:[%s667_s0 + $0x1c] ss:$12 sps:$4 sm:$0xff]   ;;  %v538_v29 = vld [vmem:[%s667_s0 + $0x18] ss:$12 sps:$4 sm:$0xff]  }
   0xc   :  { %455 = vmatprep.subr.bf16.mxu0 %v516_v9  ;;  %503 = vmatprep.mubr.bf16.mxu1 %v534_v24 }
   0xd   :  { %492 = vmatpush3.bf16.msra.mxu1 %v515_v8 }
   0xe   :  { %493 = vmatprep.subr.bf16.mxu1 %v518_v11 }
   0xf   :  { %456 = vmatpush3.bf16.msra.mxu0 %v517_v10 }
  0x10   :  { %457 = vmatprep.subr.bf16.mxu0 %v519_v12 }
  0x11   :  { %494 = vmatpush3.bf16.msra.mxu1 %v518_v11 }
  0x12   :  { %495 = vmatprep.subr.bf16.mxu1 %v521_v13 }
  0x13   :  { %458 = vmatpush3.bf16.msra.mxu0 %v520_v14 }
  0x14   :  { %459 = vmatprep.subr.bf16.mxu0 %v522_v15 }
  0x15   :  { %496 = vmatpush3.bf16.msra.mxu1 %v521_v13 }
  0x16   :  { %497 = vmatprep.subr.bf16.mxu1 %v524_v16 }
  0x17   :  { %460 = vmatpush3.bf16.msra.mxu0 %v523_v17 }
  0x18   :  { %461 = vmatprep.subr.bf16.mxu0 %v525_v18 }
  0x19   :  { %498 = vmatpush3.bf16.msra.mxu1 %v524_v16 }
  0x1a   :  { %499 = vmatprep.subr.bf16.mxu1 %v527_v20 }
  0x1b   :  { %462 = vmatpush3.bf16.msra.mxu0 %v526_v19 }
  0x1c   :  { %463 = vmatprep.subr.bf16.mxu0 %v528_v21 }
  0x1d   :  { %500 = vmatpush3.bf16.msra.mxu1 %v527_v20 }
  0x1e   :  { %501 = vmatprep.subr.bf16.mxu1 %v530_v22 }
  0x1f   :  { %464 = vmatpush3.bf16.msra.mxu0 %v529_v25 }
  0x21   :  { %502 = vmatpush3.bf16.msra.mxu1 %v530_v22 }
  0x22   :  { %283 = vmatmul.mubr.bf16.vlgmr.msra.gmra.mrb[0].mxu0 %v531_v26 }
  0x23   :  { %290 = vmatprep.mubr.bf16.mxu0 %v536_v27 }
  0x24   :  { %504 = vmatmul.mubr.bf16.vlgmr.msra.gmra.mrb[0].mxu1 %v535_v28 }
  0x2a   :  { %291 = vmatmul.mubr.bf16.gmra.mrb[4].mxu0 %v538_v29 }
  0xf5   :  { %v465_v30 = vpop.f32.mrb[0].mxu0 }
  0xf6   :  { %v466_v31 = vpop.f32.mrb[1].mxu0 }
  0xf7   :  { %v467_v32 = vadd.f32 %v466_v31, %v465_v30  ;;  %v468_v33 = vpop.f32.mrb[2].mxu0  ;;  %v505_v34 = vpop.f32.mrb[0].mxu1 }
  0xf8   :  { %v469_v35 = vpop.f32.mrb[3].mxu0  ;;  %v333_v36 = vpop.f32.mrb[1].mxu1 }
  0xf9   :  { %v470_v38 = vadd.f32 %v469_v35, %v468_v33  ;;  %v334_v39 = vadd.f32 %v467_v32, %v333_v36  ;;  %v506_v40 = vpop.f32.mrb[2].mxu1 }
  0xfa   :  { %v336_v42 = vpop.f32.mrb[3].mxu1 }
  0xfb   :  { %v355_v43 = vmul.f32 %v428_v37, %v334_v39  ;;  %v337_v44 = vadd.f32 %v470_v38, %v336_v42 }
  0xfd   :  { %v366_v45 = vadd.f32 %v429_v41, %v355_v43  ;;  %v356_v46 = vmul.f32 %v428_v37, %v337_v44  ;;  %v471_v47 = vpop.f32.mrb[4].mxu0 }
  0xfe   :  { %v472_v48 = vpop.f32.mrb[5].mxu0 }
  0xff   :  { %v367_v49 = vadd.f32 %v429_v41, %v356_v46  ;;  %v473_v50 = vadd.f32 %v472_v48, %v471_v47  ;;  %v474_v51 = vpop.f32.mrb[6].mxu0  ;;  %v370_v53 = vmax.f32 %v366_v45, 0.0 }
 0x100   :  { %v475_v52 = vpop.f32.mrb[7].mxu0 }
 0x101   :  { %v371_v54 = vmax.f32 %v367_v49, 0.0  ;;  %v342_v55 = vadd.f32 %v505_v34, %v473_v50  ;;  %v476_v56 = vadd.f32 %v475_v52, %v474_v51 }
 0x103   :  { %v441_v57 = vpack.c.bf16 %v371_v54, %v370_v53  ;;  %v357_v58 = vmul.f32 %v428_v37, %v342_v55  ;;  %v345_v59 = vadd.f32 %v506_v40, %v476_v56 }
 0x105   :  { %442 = vst [vmem:[%s670_s4] sm:$0xff] %v441_v57   ;;  %v368_v60 = vadd.f32 %v429_v41, %v357_v58  ;;  %v358_v61 = vmul.f32 %v428_v37, %v345_v59 }
 0x107   :  { %v369_v62 = vadd.f32 %v429_v41, %v358_v61  ;;  %v372_v63 = vmax.f32 %v368_v60, 0.0 }
 0x109   :  { %v373_v0 = vmax.f32 %v369_v62, 0.0 }
 0x10b   :  { %v446_v1 = vpack.c.bf16 %v373_v0, %v372_v63 }
 0x10d   :  { %448 = vst [vmem:[%s670_s4 + $0x8] sm:$0xff] %v446_v1  }

// kernel: run.50
= control target key start
LH: loop header
LB: loop body
LE: loop exit
PB: predicated region body
PF: predicated region fallthrough
CT: control target
= control target key end

     0   :  { %v194_v0 = vmov 0.0   ;;  %vm195_vm0 = vmmov 0   ;;  %s257_s1 = inlined_call_operand.vmem [shape: bf16[128,128], index: 1, kind: input, shape index: {}]   ;;  %s258_s0 = inlined_call_operand.vmem [shape: bf16[8,128], index: 0, kind: input, shape index: {}]   ;;  %s259_s2 = inlined_call_operand.vmem [shape: f32[1,128], index: 2, kind: input, shape index: {}]   ;;  %s260_s3 = inlined_call_operand.vmem [shape: f32[1,128], index: 3, kind: input, shape index: {}]   ;;  %s261_s4 = inlined_call_operand.vmem [shape: bf16[8,128], index: 4, kind: output, shape index: {}]  }
   0x1   :  { %164 = vmatprep.subr.bf16.mxu0 %v194_v0  ;;  %v186_v1 = vld [vmem:[%s257_s1] sm:$0xff]   ;;  %180 = vmatprep.mubr.msk.bf16.mxu0 %vm195_vm0, %v194_v0  ;;  %v187_v2 = vld [vmem:[%s257_s1 + $0x8] sm:$0xff]   ;;  %v188_v3 = vld [vmem:[%s257_s1 + $0x10] sm:$0xff]  }
   0x2   :  { %165 = vmatpush3.bf16.msra.mxu0 %v186_v1  ;;  %v189_v4 = vld [vmem:[%s257_s1 + $0x18] sm:$0xff]   ;;  %v190_v5 = vld [vmem:[%s257_s1 + $0x20] sm:$0xff]   ;;  %v191_v6 = vld [vmem:[%s257_s1 + $0x28] sm:$0xff]  }
   0x3   :  { %166 = vmatprep.subr.bf16.mxu0 %v194_v0  ;;  %v192_v7 = vld [vmem:[%s257_s1 + $0x30] sm:$0xff]   ;;  %v193_v8 = vld [vmem:[%s257_s1 + $0x38] sm:$0xff]   ;;  %v18_v9 = vld [vmem:[%s258_s0] sm:$0xf] }
   0x4   :  { %v153_v10 = vld [vmem:[%s259_s2] ss:$0 sm:$0xff] }
   0x5   :  { %v154_v12 = vld [vmem:[%s260_s3] ss:$0 sm:$0xff] }
   0x6   :  { %167 = vmatpush3.bf16.msra.mxu0 %v187_v2 }
   0x7   :  { %168 = vmatprep.subr.bf16.mxu0 %v194_v0 }
   0xa   :  { %169 = vmatpush3.bf16.msra.mxu0 %v188_v3 }
   0xb   :  { %170 = vmatprep.subr.bf16.mxu0 %v194_v0 }
   0xe   :  { %171 = vmatpush3.bf16.msra.mxu0 %v189_v4 }
   0xf   :  { %172 = vmatprep.subr.bf16.mxu0 %v194_v0 }
  0x12   :  { %173 = vmatpush3.bf16.msra.mxu0 %v190_v5 }
  0x13   :  { %174 = vmatprep.subr.bf16.mxu0 %v194_v0 }
  0x16   :  { %175 = vmatpush3.bf16.msra.mxu0 %v191_v6 }
  0x17   :  { %176 = vmatprep.subr.bf16.mxu0 %v194_v0 }
  0x1a   :  { %177 = vmatpush3.bf16.msra.mxu0 %v192_v7 }
  0x1b   :  { %178 = vmatprep.subr.bf16.mxu0 %v194_v0 }
  0x1e   :  { %179 = vmatpush3.bf16.msra.mxu0 %v193_v8 }
  0x21   :  { %181 = vmatmul.mubr.bf16.vlgmr.msra.gmra.mrb[0].mxu0 %v18_v9 }
  0xf4   :  { %v117_v11 = vpop.f32.mrb[0].mxu0 }
  0xf5   :  { %v130_v13 = vmul.f32 %v153_v10, %v117_v11  ;;  %v182_v14 = vpop.f32.mrb[1].mxu0 }
  0xf6   :  { %v120_v15 = vpop.f32.mrb[2].mxu0 }
  0xf7   :  { %v138_v16 = vadd.f32 %v154_v12, %v130_v13  ;;  %v183_v17 = vpop.f32.mrb[3].mxu0 }
  0xf9   :  { %v139_v18 = vpack.c.bf16 %v138_v16, %v138_v16 }
  0xfb   :  { %140 = vst [vmem:[%s261_s4] sm:$0xf] %v139_v18 }

// kernel: run.51
= control target key start
LH: loop header
LB: loop body
LE: loop exit
PB: predicated region body
PF: predicated region fallthrough
CT: control target
= control target key end

     0   :  { %v201_v0 = vmov 0.0   ;;  %vm202_vm0 = vmmov 0   ;;  %s272_s1 = inlined_call_operand.vmem [shape: bf16[128,128], index: 1, kind: input, shape index: {}]   ;;  %s273_s0 = inlined_call_operand.vmem [shape: bf16[8,128], index: 0, kind: input, shape index: {}]   ;;  %s274_s2 = inlined_call_operand.vmem [shape: f32[1,128], index: 2, kind: input, shape index: {}]   ;;  %s275_s4 = inlined_call_operand.vmem [shape: bf16[8,128], index: 4, kind: input, shape index: {}]   ;;  %s276_s3 = inlined_call_operand.vmem [shape: f32[1,128], index: 3, kind: input, shape index: {}]   ;;  %s277_s5 = inlined_call_operand.vmem [shape: bf16[8,128], index: 5, kind: output, shape index: {}]  }
   0x1   :  { %171 = vmatprep.subr.bf16.mxu0 %v201_v0  ;;  %v193_v1 = vld [vmem:[%s272_s1] sm:$0xff]   ;;  %187 = vmatprep.mubr.msk.bf16.mxu0 %vm202_vm0, %v201_v0  ;;  %v194_v2 = vld [vmem:[%s272_s1 + $0x8] sm:$0xff]   ;;  %v195_v3 = vld [vmem:[%s272_s1 + $0x10] sm:$0xff]  }
   0x2   :  { %172 = vmatpush3.bf16.msra.mxu0 %v193_v1  ;;  %v196_v4 = vld [vmem:[%s272_s1 + $0x18] sm:$0xff]   ;;  %v197_v5 = vld [vmem:[%s272_s1 + $0x20] sm:$0xff]   ;;  %v198_v6 = vld [vmem:[%s272_s1 + $0x28] sm:$0xff]  }
   0x3   :  { %173 = vmatprep.subr.bf16.mxu0 %v201_v0  ;;  %v199_v7 = vld [vmem:[%s272_s1 + $0x30] sm:$0xff]   ;;  %v200_v8 = vld [vmem:[%s272_s1 + $0x38] sm:$0xff]   ;;  %v21_v9 = vld [vmem:[%s273_s0] sm:$0xf] }
   0x4   :  { %v160_v10 = vld [vmem:[%s274_s2] ss:$0 sm:$0xff] }
   0x5   :  { %v142_v11 = vld [vmem:[%s275_s4] sm:$0xf] }
   0x6   :  { %174 = vmatpush3.bf16.msra.mxu0 %v194_v2  ;;  %v161_v13 = vld [vmem:[%s276_s3] ss:$0 sm:$0xff]  ;;  %v143_v15 = vunpack.c.l.bf16 %v142_v11 }
   0x7   :  { %175 = vmatprep.subr.bf16.mxu0 %v201_v0 }
   0xa   :  { %176 = vmatpush3.bf16.msra.mxu0 %v195_v3 }
   0xb   :  { %177 = vmatprep.subr.bf16.mxu0 %v201_v0 }
   0xe   :  { %178 = vmatpush3.bf16.msra.mxu0 %v196_v4 }
   0xf   :  { %179 = vmatprep.subr.bf16.mxu0 %v201_v0 }
  0x12   :  { %180 = vmatpush3.bf16.msra.mxu0 %v197_v5 }
  0x13   :  { %181 = vmatprep.subr.bf16.mxu0 %v201_v0 }
  0x16   :  { %182 = vmatpush3.bf16.msra.mxu0 %v198_v6 }
  0x17   :  { %183 = vmatprep.subr.bf16.mxu0 %v201_v0 }
  0x1a   :  { %184 = vmatpush3.bf16.msra.mxu0 %v199_v7 }
  0x1b   :  { %185 = vmatprep.subr.bf16.mxu0 %v201_v0 }
  0x1e   :  { %186 = vmatpush3.bf16.msra.mxu0 %v200_v8 }
  0x21   :  { %188 = vmatmul.mubr.bf16.vlgmr.msra.gmra.mrb[0].mxu0 %v21_v9 }
  0xf4   :  { %v120_v12 = vpop.f32.mrb[0].mxu0 }
  0xf5   :  { %v133_v14 = vmul.f32 %v160_v10, %v120_v12  ;;  %v189_v16 = vpop.f32.mrb[1].mxu0 }
  0xf6   :  { %v123_v17 = vpop.f32.mrb[2].mxu0 }
  0xf7   :  { %v141_v18 = vadd.f32 %v161_v13, %v133_v14  ;;  %v190_v19 = vpop.f32.mrb[3].mxu0 }
  0xf9   :  { %v144_v20 = vadd.f32 %v143_v15, %v141_v18 }
  0xfb   :  { %v145_v21 = vmax.f32 %v144_v20, 0.0 }
  0xfd   :  { %v146_v22 = vpack.c.bf16 %v145_v21, %v145_v21 }
  0xff   :  { %147 = vst [vmem:[%s277_s5] sm:$0xf] %v146_v22 }

// kernel: run.52
= control target key start
LH: loop header
LB: loop body
LE: loop exit
PB: predicated region body
PF: predicated region fallthrough
CT: control target
= control target key end

     0   :  { %v195_v0 = vmov 0.0   ;;  %vm196_vm0 = vmmov 0   ;;  %s258_s1 = inlined_call_operand.vmem [shape: bf16[128,128], index: 1, kind: input, shape index: {}]   ;;  %s259_s0 = inlined_call_operand.vmem [shape: bf16[8,128], index: 0, kind: input, shape index: {}]   ;;  %s260_s2 = inlined_call_operand.vmem [shape: f32[1,128], index: 2, kind: input, shape index: {}]   ;;  %s261_s3 = inlined_call_operand.vmem [shape: f32[1,128], index: 3, kind: input, shape index: {}]   ;;  %s262_s4 = inlined_call_operand.vmem [shape: bf16[8,128], index: 4, kind: output, shape index: {}]  }
   0x1   :  { %165 = vmatprep.subr.bf16.mxu0 %v195_v0  ;;  %v187_v1 = vld [vmem:[%s258_s1] sm:$0xff]   ;;  %181 = vmatprep.mubr.msk.bf16.mxu0 %vm196_vm0, %v195_v0  ;;  %v188_v2 = vld [vmem:[%s258_s1 + $0x8] sm:$0xff]   ;;  %v189_v3 = vld [vmem:[%s258_s1 + $0x10] sm:$0xff]  }
   0x2   :  { %166 = vmatpush3.bf16.msra.mxu0 %v187_v1  ;;  %v190_v4 = vld [vmem:[%s258_s1 + $0x18] sm:$0xff]   ;;  %v191_v5 = vld [vmem:[%s258_s1 + $0x20] sm:$0xff]   ;;  %v192_v6 = vld [vmem:[%s258_s1 + $0x28] sm:$0xff]  }
   0x3   :  { %167 = vmatprep.subr.bf16.mxu0 %v195_v0  ;;  %v193_v7 = vld [vmem:[%s258_s1 + $0x30] sm:$0xff]   ;;  %v194_v8 = vld [vmem:[%s258_s1 + $0x38] sm:$0xff]   ;;  %v18_v9 = vld [vmem:[%s259_s0] sm:$0xf] }
   0x4   :  { %v154_v10 = vld [vmem:[%s260_s2] ss:$0 sm:$0xff] }
   0x5   :  { %v155_v12 = vld [vmem:[%s261_s3] ss:$0 sm:$0xff] }
   0x6   :  { %168 = vmatpush3.bf16.msra.mxu0 %v188_v2 }
   0x7   :  { %169 = vmatprep.subr.bf16.mxu0 %v195_v0 }
   0xa   :  { %170 = vmatpush3.bf16.msra.mxu0 %v189_v3 }
   0xb   :  { %171 = vmatprep.subr.bf16.mxu0 %v195_v0 }
   0xe   :  { %172 = vmatpush3.bf16.msra.mxu0 %v190_v4 }
   0xf   :  { %173 = vmatprep.subr.bf16.mxu0 %v195_v0 }
  0x12   :  { %174 = vmatpush3.bf16.msra.mxu0 %v191_v5 }
  0x13   :  { %175 = vmatprep.subr.bf16.mxu0 %v195_v0 }
  0x16   :  { %176 = vmatpush3.bf16.msra.mxu0 %v192_v6 }
  0x17   :  { %177 = vmatprep.subr.bf16.mxu0 %v195_v0 }
  0x1a   :  { %178 = vmatpush3.bf16.msra.mxu0 %v193_v7 }
  0x1b   :  { %179 = vmatprep.subr.bf16.mxu0 %v195_v0 }
  0x1e   :  { %180 = vmatpush3.bf16.msra.mxu0 %v194_v8 }
  0x21   :  { %182 = vmatmul.mubr.bf16.vlgmr.msra.gmra.mrb[0].mxu0 %v18_v9 }
  0xf4   :  { %v117_v11 = vpop.f32.mrb[0].mxu0 }
  0xf5   :  { %v130_v13 = vmul.f32 %v154_v10, %v117_v11  ;;  %v183_v14 = vpop.f32.mrb[1].mxu0 }
  0xf6   :  { %v120_v15 = vpop.f32.mrb[2].mxu0 }
  0xf7   :  { %v138_v16 = vadd.f32 %v155_v12, %v130_v13  ;;  %v184_v17 = vpop.f32.mrb[3].mxu0 }
  0xf9   :  { %v139_v18 = vmax.f32 %v138_v16, 0.0 }
  0xfb   :  { %v140_v19 = vpack.c.bf16 %v139_v18, %v139_v18 }
  0xfd   :  { %141 = vst [vmem:[%s262_s4] sm:$0xf] %v140_v19 }

// kernel: run.53
= control target key start
LH: loop header
LB: loop body
LE: loop exit
PB: predicated region body
PF: predicated region fallthrough
CT: control target
= control target key end

     0   :  { %v435_v1 = vmov 0.0   ;;  %vm436_vm0 = vmmov 0   ;;  %s549_s1 = inlined_call_operand.vmem [shape: bf16[384,128], index: 1, kind: input, shape index: {}]   ;;  %s550_s0 = inlined_call_operand.vmem [shape: bf16[8,384], index: 0, kind: input, shape index: {}]   ;;  %s551_s2 = inlined_call_operand.vmem [shape: f32[1,128], index: 2, kind: input, shape index: {}]   ;;  %s552_s3 = inlined_call_operand.vmem [shape: f32[1,128], index: 3, kind: input, shape index: {}]   ;;  %s553_s4 = inlined_call_operand.vmem [shape: bf16[8,128], index: 4, kind: output, shape index: {}]  }
   0x1   :  { %v408_v0 = vld [vmem:[%s549_s1 + $0x40] sm:$0xff]   ;;  %386 = vmatprep.subr.bf16.mxu1 %v435_v1  ;;  %402 = vmatprep.mubr.msk.bf16.mxu1 %vm436_vm0, %v435_v1  ;;  %v411_v4 = vld [vmem:[%s549_s1 + $0x48] sm:$0xff]   ;;  %v414_v7 = vld [vmem:[%s549_s1 + $0x50] sm:$0xff]  }
   0x2   :  { %v409_v2 = vld [vmem:[%s549_s1] sm:$0xff]   ;;  %355 = vmatprep.subr.bf16.mxu0 %v408_v0  ;;  %v412_v5 = vld [vmem:[%s549_s1 + $0x8] sm:$0xff]   ;;  %v415_v8 = vld [vmem:[%s549_s1 + $0x10] sm:$0xff]  }
   0x3   :  { %v410_v3 = vld [vmem:[%s549_s1 + $0x80] sm:$0xff]   ;;  %356 = vmatpush3.bf16.msra.mxu0 %v409_v2  ;;  %v413_v6 = vld [vmem:[%s549_s1 + $0x88] sm:$0xff]   ;;  %v416_v9 = vld [vmem:[%s549_s1 + $0x90] sm:$0xff]  }
   0x4   :  { %387 = vmatpush3.bf16.msra.mxu1 %v410_v3  ;;  %357 = vmatprep.subr.bf16.mxu0 %v411_v4  ;;  %v417_v10 = vld [vmem:[%s549_s1 + $0x58] sm:$0xff]   ;;  %v420_v13 = vld [vmem:[%s549_s1 + $0x60] sm:$0xff]   ;;  %v423_v16 = vld [vmem:[%s549_s1 + $0x68] sm:$0xff]  }
   0x5   :  { %388 = vmatprep.subr.bf16.mxu1 %v435_v1  ;;  %v418_v11 = vld [vmem:[%s549_s1 + $0x18] sm:$0xff]   ;;  %v421_v14 = vld [vmem:[%s549_s1 + $0x20] sm:$0xff]   ;;  %v424_v17 = vld [vmem:[%s549_s1 + $0x28] sm:$0xff]  }
   0x6   :  { %v419_v12 = vld [vmem:[%s549_s1 + $0x98] sm:$0xff]   ;;  %v422_v15 = vld [vmem:[%s549_s1 + $0xa0] sm:$0xff]   ;;  %v425_v18 = vld [vmem:[%s549_s1 + $0xa8] sm:$0xff]  }
   0x7   :  { %358 = vmatpush3.bf16.msra.mxu0 %v412_v5  ;;  %v426_v19 = vld [vmem:[%s549_s1 + $0x70] sm:$0xff]   ;;  %v429_v22 = vld [vmem:[%s549_s1 + $0x78] sm:$0xff]   ;;  %v18_v23 = vld [vmem:[%s550_s0] sm:$0xff] }
   0x8   :  { %389 = vmatpush3.bf16.msra.mxu1 %v413_v6  ;;  %359 = vmatprep.subr.bf16.mxu0 %v414_v7  ;;  %v427_v20 = vld [vmem:[%s549_s1 + $0x30] sm:$0xff]   ;;  %v327_v24 = vcombine.high %v18_v23, %v18_v23  ;;  %v430_v25 = vld [vmem:[%s549_s1 + $0x38] sm:$0xff]   ;;  %v326_v27 = vcombine.low %v18_v23, %v18_v23  ;;  %v434_v28 = vld [vmem:[%s550_s0 + $0x8] ss:$0 sps:$4 sm:$0xff]  }
   0x9   :  { %390 = vmatprep.subr.bf16.mxu1 %v435_v1  ;;  %v428_v21 = vld [vmem:[%s549_s1 + $0xb0] sm:$0xff]   ;;  %v431_v26 = vld [vmem:[%s549_s1 + $0xb8] sm:$0xff]   ;;  %v353_v35 = vld [vmem:[%s551_s2] ss:$0 sm:$0xff] }
   0xa   :  { %255 = vmatprep.mubr.bf16.mxu0 %v327_v24  ;;  %v354_v40 = vld [vmem:[%s552_s3] ss:$0 sm:$0xff] }
   0xb   :  { %360 = vmatpush3.bf16.msra.mxu0 %v415_v8 }
   0xc   :  { %391 = vmatpush3.bf16.msra.mxu1 %v416_v9  ;;  %361 = vmatprep.subr.bf16.mxu0 %v417_v10 }
   0xd   :  { %392 = vmatprep.subr.bf16.mxu1 %v435_v1 }
   0xf   :  { %362 = vmatpush3.bf16.msra.mxu0 %v418_v11 }
  0x10   :  { %393 = vmatpush3.bf16.msra.mxu1 %v419_v12  ;;  %363 = vmatprep.subr.bf16.mxu0 %v420_v13 }
  0x11   :  { %394 = vmatprep.subr.bf16.mxu1 %v435_v1 }
  0x13   :  { %364 = vmatpush3.bf16.msra.mxu0 %v421_v14 }
  0x14   :  { %395 = vmatpush3.bf16.msra.mxu1 %v422_v15  ;;  %365 = vmatprep.subr.bf16.mxu0 %v423_v16 }
  0x15   :  { %396 = vmatprep.subr.bf16.mxu1 %v435_v1 }
  0x17   :  { %366 = vmatpush3.bf16.msra.mxu0 %v424_v17 }
  0x18   :  { %397 = vmatpush3.bf16.msra.mxu1 %v425_v18  ;;  %367 = vmatprep.subr.bf16.mxu0 %v426_v19 }
  0x19   :  { %398 = vmatprep.subr.bf16.mxu1 %v435_v1 }
  0x1b   :  { %368 = vmatpush3.bf16.msra.mxu0 %v427_v20 }
  0x1c   :  { %399 = vmatpush3.bf16.msra.mxu1 %v428_v21  ;;  %369 = vmatprep.subr.bf16.mxu0 %v429_v22 }
  0x1d   :  { %400 = vmatprep.subr.bf16.mxu1 %v435_v1 }
  0x1f   :  { %370 = vmatpush3.bf16.msra.mxu0 %v430_v25 }
  0x20   :  { %401 = vmatpush3.bf16.msra.mxu1 %v431_v26 }
  0x22   :  { %256 = vmatmul.mubr.bf16.vlgmr.msra.gmra.mrb[0].mxu0 %v326_v27 }
  0x23   :  { %403 = vmatmul.mubr.bf16.vlgmr.msra.gmra.mrb[0].mxu1 %v434_v28 }
  0xf5   :  { %v371_v29 = vpop.f32.mrb[0].mxu0 }
  0xf6   :  { %v297_v30 = vpop.f32.mrb[0].mxu1  ;;  %v372_v31 = vpop.f32.mrb[1].mxu0 }
  0xf7   :  { %v373_v32 = vadd.f32 %v372_v31, %v371_v29  ;;  %v404_v33 = vpop.f32.mrb[1].mxu1  ;;  %v374_v34 = vpop.f32.mrb[2].mxu0 }
  0xf8   :  { %v300_v36 = vpop.f32.mrb[2].mxu1  ;;  %v375_v37 = vpop.f32.mrb[3].mxu0 }
  0xf9   :  { %v298_v38 = vadd.f32 %v373_v32, %v297_v30  ;;  %v405_v39 = vpop.f32.mrb[3].mxu1 }
  0xfb   :  { %v310_v41 = vmul.f32 %v353_v35, %v298_v38 }
  0xfd   :  { %v318_v42 = vadd.f32 %v354_v40, %v310_v41 }
  0xff   :  { %v319_v43 = vmax.f32 %v318_v42, 0.0 }
 0x101   :  { %v320_v44 = vpack.c.bf16 %v319_v43, %v319_v43 }
 0x103   :  { %321 = vst [vmem:[%s553_s4] sm:$0xf] %v320_v44 }

// kernel: run.56
= control target key start
LH: loop header
LB: loop body
LE: loop exit
PB: predicated region body
PF: predicated region fallthrough
CT: control target
= control target key end

     0   :  { %v669_v36 = vmov 0.0   ;;  %vm670_vm0 = vmmov 0   ;;  %s834_s1 = inlined_call_operand.vmem [shape: bf16[640,128], index: 1, kind: input, shape index: {}]   ;;  %s835_s0 = inlined_call_operand.vmem [shape: bf16[8,640], index: 0, kind: input, shape index: {}]   ;;  %s836_s2 = inlined_call_operand.vmem [shape: f32[1,128], index: 2, kind: input, shape index: {}]   ;;  %s837_s3 = inlined_call_operand.vmem [shape: f32[1,128], index: 3, kind: input, shape index: {}]   ;;  %s838_s4 = inlined_call_operand.vmem [shape: bf16[8,128], index: 4, kind: output, shape index: {}]  }
   0x1   :  { %v624_v0 = vld [vmem:[%s834_s1 + $0x40] sm:$0xff]   ;;  %v628_v4 = vld [vmem:[%s834_s1 + $0x48] sm:$0xff]   ;;  %v632_v8 = vld [vmem:[%s834_s1 + $0x50] sm:$0xff]  }
   0x2   :  { %v625_v1 = vld [vmem:[%s834_s1 + $0xc0] sm:$0xff]   ;;  %549 = vmatprep.subr.bf16.mxu0 %v624_v0  ;;  %v629_v5 = vld [vmem:[%s834_s1 + $0xc8] sm:$0xff]   ;;  %v633_v9 = vld [vmem:[%s834_s1 + $0xd0] sm:$0xff]  }
   0x3   :  { %v626_v2 = vld [vmem:[%s834_s1] sm:$0xff]   ;;  %571 = vmatprep.subr.bf16.mxu1 %v625_v1  ;;  %v630_v6 = vld [vmem:[%s834_s1 + $0x8] sm:$0xff]   ;;  %v634_v10 = vld [vmem:[%s834_s1 + $0x10] sm:$0xff]  }
   0x4   :  { %v627_v3 = vld [vmem:[%s834_s1 + $0x80] sm:$0xff]   ;;  %550 = vmatpush3.bf16.msra.mxu0 %v626_v2  ;;  %v631_v7 = vld [vmem:[%s834_s1 + $0x88] sm:$0xff]   ;;  %v635_v11 = vld [vmem:[%s834_s1 + $0x90] sm:$0xff]  }
   0x5   :  { %572 = vmatpush3.bf16.msra.mxu1 %v627_v3  ;;  %551 = vmatprep.subr.bf16.mxu0 %v628_v4  ;;  %v636_v12 = vld [vmem:[%s834_s1 + $0x58] sm:$0xff]   ;;  %v640_v16 = vld [vmem:[%s834_s1 + $0x60] sm:$0xff]   ;;  %v644_v20 = vld [vmem:[%s834_s1 + $0x68] sm:$0xff]  }
   0x6   :  { %573 = vmatprep.subr.bf16.mxu1 %v629_v5  ;;  %v637_v13 = vld [vmem:[%s834_s1 + $0xd8] sm:$0xff]   ;;  %v641_v17 = vld [vmem:[%s834_s1 + $0xe0] sm:$0xff]   ;;  %v645_v21 = vld [vmem:[%s834_s1 + $0xe8] sm:$0xff]  }
   0x7   :  { %v638_v14 = vld [vmem:[%s834_s1 + $0x18] sm:$0xff]   ;;  %v642_v18 = vld [vmem:[%s834_s1 + $0x20] sm:$0xff]   ;;  %v646_v22 = vld [vmem:[%s834_s1 + $0x28] sm:$0xff]  }
   0x8   :  { %552 = vmatpush3.bf16.msra.mxu0 %v630_v6  ;;  %v639_v15 = vld [vmem:[%s834_s1 + $0x98] sm:$0xff]   ;;  %v643_v19 = vld [vmem:[%s834_s1 + $0xa0] sm:$0xff]   ;;  %v647_v23 = vld [vmem:[%s834_s1 + $0xa8] sm:$0xff]  }
   0x9   :  { %574 = vmatpush3.bf16.msra.mxu1 %v631_v7  ;;  %553 = vmatprep.subr.bf16.mxu0 %v632_v8  ;;  %v648_v24 = vld [vmem:[%s834_s1 + $0x70] sm:$0xff]   ;;  %v652_v28 = vld [vmem:[%s834_s1 + $0x78] sm:$0xff]   ;;  %v18_v32 = vld [vmem:[%s835_s0] sm:$0xff] }
   0xa   :  { %575 = vmatprep.subr.bf16.mxu1 %v633_v9  ;;  %v649_v25 = vld [vmem:[%s834_s1 + $0xf0] sm:$0xff]   ;;  %v653_v29 = vld [vmem:[%s834_s1 + $0xf8] sm:$0xff]   ;;  %v502_v33 = vcombine.low %v18_v32, %v18_v32  ;;  %v503_v34 = vcombine.high %v18_v32, %v18_v32  ;;  %v19_v35 = vld [vmem:[%s835_s0 + $0x8] sm:$0xff] }
   0xb   :  { %v650_v26 = vld [vmem:[%s834_s1 + $0x30] sm:$0xff]   ;;  %v654_v30 = vld [vmem:[%s834_s1 + $0x38] sm:$0xff]   ;;  %v504_v37 = vcombine.low %v19_v35, %v19_v35  ;;  %v505_v38 = vcombine.high %v19_v35, %v19_v35  ;;  %v661_v39 = vld [vmem:[%s834_s1 + $0x100] sm:$0xff]  }
   0xc   :  { %554 = vmatpush3.bf16.msra.mxu0 %v634_v10  ;;  %v651_v27 = vld [vmem:[%s834_s1 + $0xb0] sm:$0xff]   ;;  %v655_v31 = vld [vmem:[%s834_s1 + $0xb8] sm:$0xff]   ;;  %391 = vmatprep.mubr.bf16.mxu0 %v503_v34  ;;  %v662_v40 = vld [vmem:[%s834_s1 + $0x108] sm:$0xff]  }
   0xd   :  { %576 = vmatpush3.bf16.msra.mxu1 %v635_v11  ;;  %555 = vmatprep.subr.bf16.mxu0 %v636_v12  ;;  %v663_v41 = vld [vmem:[%s834_s1 + $0x110] sm:$0xff]   ;;  %v664_v42 = vld [vmem:[%s834_s1 + $0x118] sm:$0xff]   ;;  %v665_v43 = vld [vmem:[%s834_s1 + $0x120] sm:$0xff]  }
   0xe   :  { %577 = vmatprep.subr.bf16.mxu1 %v637_v13  ;;  %431 = vmatprep.mubr.bf16.mxu1 %v505_v38  ;;  %v666_v44 = vld [vmem:[%s834_s1 + $0x128] sm:$0xff]   ;;  %v667_v45 = vld [vmem:[%s834_s1 + $0x130] sm:$0xff]   ;;  %v668_v46 = vld [vmem:[%s834_s1 + $0x138] sm:$0xff]  }
   0xf   :  { %v658_v47 = vld [vmem:[%s835_s0 + $0x10] ss:$0 sps:$4 sm:$0xff]   ;;  %v547_v60 = vld [vmem:[%s836_s2] ss:$0 sm:$0xff] }
  0x10   :  { %556 = vmatpush3.bf16.msra.mxu0 %v638_v14  ;;  %v548_v63 = vld [vmem:[%s837_s3] ss:$0 sm:$0xff] }
  0x11   :  { %578 = vmatpush3.bf16.msra.mxu1 %v639_v15  ;;  %557 = vmatprep.subr.bf16.mxu0 %v640_v16 }
  0x12   :  { %579 = vmatprep.subr.bf16.mxu1 %v641_v17 }
  0x14   :  { %558 = vmatpush3.bf16.msra.mxu0 %v642_v18 }
  0x15   :  { %580 = vmatpush3.bf16.msra.mxu1 %v643_v19  ;;  %559 = vmatprep.subr.bf16.mxu0 %v644_v20 }
  0x16   :  { %581 = vmatprep.subr.bf16.mxu1 %v645_v21 }
  0x18   :  { %560 = vmatpush3.bf16.msra.mxu0 %v646_v22 }
  0x19   :  { %582 = vmatpush3.bf16.msra.mxu1 %v647_v23  ;;  %561 = vmatprep.subr.bf16.mxu0 %v648_v24 }
  0x1a   :  { %583 = vmatprep.subr.bf16.mxu1 %v649_v25 }
  0x1c   :  { %562 = vmatpush3.bf16.msra.mxu0 %v650_v26 }
  0x1d   :  { %584 = vmatpush3.bf16.msra.mxu1 %v651_v27  ;;  %563 = vmatprep.subr.bf16.mxu0 %v652_v28 }
  0x1e   :  { %585 = vmatprep.subr.bf16.mxu1 %v653_v29 }
  0x20   :  { %564 = vmatpush3.bf16.msra.mxu0 %v654_v30 }
  0x21   :  { %586 = vmatpush3.bf16.msra.mxu1 %v655_v31  ;;  %602 = vmatprep.subr.bf16.mxu0 %v669_v36 }
  0x23   :  { %392 = vmatmul.mubr.bf16.vlgmr.msra.gmra.mrb[0].mxu0 %v502_v33 }
  0x24   :  { %432 = vmatmul.mubr.bf16.vlgmr.msra.gmra.mrb[0].mxu1 %v504_v37  ;;  %603 = vmatpush3.bf16.msra.mxu0 %v661_v39 }
  0x25   :  { %604 = vmatprep.subr.bf16.mxu0 %v669_v36  ;;  %618 = vmatprep.mubr.msk.bf16.mxu0 %vm670_vm0, %v669_v36 }
  0x28   :  { %605 = vmatpush3.bf16.msra.mxu0 %v662_v40 }
  0x29   :  { %606 = vmatprep.subr.bf16.mxu0 %v669_v36 }
  0x2c   :  { %607 = vmatpush3.bf16.msra.mxu0 %v663_v41 }
  0x2d   :  { %608 = vmatprep.subr.bf16.mxu0 %v669_v36 }
  0x30   :  { %609 = vmatpush3.bf16.msra.mxu0 %v664_v42 }
  0x31   :  { %610 = vmatprep.subr.bf16.mxu0 %v669_v36 }
  0x34   :  { %611 = vmatpush3.bf16.msra.mxu0 %v665_v43 }
  0x35   :  { %612 = vmatprep.subr.bf16.mxu0 %v669_v36 }
  0x38   :  { %613 = vmatpush3.bf16.msra.mxu0 %v666_v44 }
  0x39   :  { %614 = vmatprep.subr.bf16.mxu0 %v669_v36 }
  0x3c   :  { %615 = vmatpush3.bf16.msra.mxu0 %v667_v45 }
  0x3d   :  { %616 = vmatprep.subr.bf16.mxu0 %v669_v36 }
  0x40   :  { %617 = vmatpush3.bf16.msra.mxu0 %v668_v46 }
  0x43   :  { %619 = vmatmul.mubr.bf16.vlgmr.msra.gmra.mrb[4].mxu0 %v658_v47 }
  0xf6   :  { %v565_v48 = vpop.f32.mrb[0].mxu0 }
  0xf7   :  { %v587_v49 = vpop.f32.mrb[0].mxu1  ;;  %v566_v50 = vpop.f32.mrb[1].mxu0 }
  0xf8   :  { %v567_v51 = vadd.f32 %v566_v50, %v565_v48  ;;  %v588_v52 = vpop.f32.mrb[1].mxu1  ;;  %v568_v53 = vpop.f32.mrb[2].mxu0 }
  0xf9   :  { %v589_v54 = vadd.f32 %v588_v52, %v587_v49  ;;  %v569_v55 = vpop.f32.mrb[3].mxu0  ;;  %v590_v56 = vpop.f32.mrb[2].mxu1 }
  0xfa   :  { %v591_v57 = vpop.f32.mrb[3].mxu1 }
  0xfb   :  { %v434_v58 = vadd.f32 %v589_v54, %v567_v51 }
 0x116   :  { %v473_v59 = vpop.f32.mrb[4].mxu0 }
 0x117   :  { %v474_v61 = vadd.f32 %v473_v59, %v434_v58  ;;  %v620_v62 = vpop.f32.mrb[5].mxu0 }
 0x118   :  { %v476_v0 = vpop.f32.mrb[6].mxu0 }
 0x119   :  { %v486_v1 = vmul.f32 %v547_v60, %v474_v61  ;;  %v621_v2 = vpop.f32.mrb[7].mxu0 }
 0x11b   :  { %v494_v3 = vadd.f32 %v548_v63, %v486_v1 }
 0x11d   :  { %v495_v4 = vmax.f32 %v494_v3, 0.0 }
 0x11f   :  { %v496_v5 = vpack.c.bf16 %v495_v4, %v495_v4 }
 0x121   :  { %497 = vst [vmem:[%s838_s4] sm:$0xf] %v496_v5 }

// kernel: run.58
= control target key start
LH: loop header
LB: loop body
LE: loop exit
PB: predicated region body
PF: predicated region fallthrough
CT: control target
= control target key end

     0   :  { %v250_v1 = vmov 0   ;;  %v161_v18 = vlaneseq  ;;  %s344_s1 = inlined_call_operand.vmem [shape: bf16[128,256], index: 1, kind: input, shape index: {}]   ;;  %s345_s0 = inlined_call_operand.vmem [shape: bf16[8,128], index: 0, kind: input, shape index: {}]   ;;  %s346_s2 = inlined_call_operand.vmem [shape: f32[1,256], index: 2, kind: input, shape index: {}]   ;;  %s347_s3 = inlined_call_operand.vmem [shape: f32[1,256], index: 3, kind: input, shape index: {}]   ;;  %s348_s4 = inlined_call_operand.vmem [shape: bf16[8,256], index: 4, kind: input, shape index: {}]   ;;  %s349_s5 = inlined_call_operand.vmem [shape: bf16[8,256], index: 5, kind: output, shape index: {}]  }
   0x1   :  { %v226_v0 = vld [vmem:[%s344_s1 + $0x4] ss:$8 sps:$4 sm:$0xff]   ;;  %150 = vmatprep.mubr.bf16.mxu0 %v250_v1  ;;  %v228_v2 = vld [vmem:[%s344_s1] ss:$8 sps:$4 sm:$0xff]   ;;  %v229_v3 = vld [vmem:[%s344_s1 + $0x14] ss:$8 sps:$4 sm:$0xff]  }
   0x2   :  { %118 = vmatprep.subr.bf16.mxu0 %v226_v0  ;;  %v231_v4 = vld [vmem:[%s344_s1 + $0x10] ss:$8 sps:$4 sm:$0xff]   ;;  %v232_v5 = vld [vmem:[%s344_s1 + $0x24] ss:$8 sps:$4 sm:$0xff]   ;;  %v234_v6 = vld [vmem:[%s344_s1 + $0x20] ss:$8 sps:$4 sm:$0xff]  }
   0x3   :  { %119 = vmatpush1.bf16.msra.mxu0 %v228_v2  ;;  %v235_v7 = vld [vmem:[%s344_s1 + $0x34] ss:$8 sps:$4 sm:$0xff]   ;;  %v237_v8 = vld [vmem:[%s344_s1 + $0x30] ss:$8 sps:$4 sm:$0xff]   ;;  %v238_v9 = vld [vmem:[%s344_s1 + $0x44] ss:$8 sps:$4 sm:$0xff]  }
   0x4   :  { %120 = vmatprep.subr.bf16.mxu0 %v229_v3  ;;  %v240_v10 = vld [vmem:[%s344_s1 + $0x40] ss:$8 sps:$4 sm:$0xff]   ;;  %v241_v11 = vld [vmem:[%s344_s1 + $0x54] ss:$8 sps:$4 sm:$0xff]   ;;  %v243_v12 = vld [vmem:[%s344_s1 + $0x50] ss:$8 sps:$4 sm:$0xff]  }
   0x5   :  { %v244_v13 = vld [vmem:[%s344_s1 + $0x64] ss:$8 sps:$4 sm:$0xff]   ;;  %v246_v14 = vld [vmem:[%s344_s1 + $0x60] ss:$8 sps:$4 sm:$0xff]   ;;  %v247_v15 = vld [vmem:[%s344_s1 + $0x74] ss:$8 sps:$4 sm:$0xff]  }
   0x6   :  { %v249_v16 = vld [vmem:[%s344_s1 + $0x70] ss:$8 sps:$4 sm:$0xff]   ;;  %v21_v17 = vld [vmem:[%s345_s0] sm:$0xf]  ;;  %v162_v19 = vshrl.u32 %v161_v18, 7 }
   0x7   :  { %121 = vmatpush1.bf16.msra.mxu0 %v231_v4  ;;  %v159_v21 = vld [vmem:[%s346_s2] sm:$0x3] }
   0x8   :  { %122 = vmatprep.subr.bf16.mxu0 %v232_v5  ;;  %v163_v20 = vsub.s32 0, %v162_v19  ;;  %v167_v22 = vsub.s32 1, %v162_v19  ;;  %v173_v23 = vld [vmem:[%s347_s3] sm:$0x3] }
   0x9   :  { %v187_v25 = vld [vmem:[%s348_s4] sm:$0xff] }
   0xa   :  { %v164_v24 = vrot.slane %v159_v21, %v163_v20  ;;  %v168_v26 = vrot.slane %v159_v21, %v167_v22  ;;  %v178_v27 = vrot.slane %v173_v23, %v163_v20  ;;  %v182_v29 = vrot.slane %v173_v23, %v167_v22 }
   0xb   :  { %123 = vmatpush1.bf16.msra.mxu0 %v234_v6  ;;  %v188_v31 = vunpack.c.l.bf16 %v187_v25  ;;  %v189_v34 = vunpack.c.h.bf16 %v187_v25 }
   0xc   :  { %124 = vmatprep.subr.bf16.mxu0 %v235_v7 }
   0xf   :  { %125 = vmatpush1.bf16.msra.mxu0 %v237_v8 }
  0x10   :  { %126 = vmatprep.subr.bf16.mxu0 %v238_v9 }
  0x13   :  { %127 = vmatpush1.bf16.msra.mxu0 %v240_v10 }
  0x14   :  { %128 = vmatprep.subr.bf16.mxu0 %v241_v11 }
  0x17   :  { %129 = vmatpush1.bf16.msra.mxu0 %v243_v12 }
  0x18   :  { %130 = vmatprep.subr.bf16.mxu0 %v244_v13 }
  0x1b   :  { %131 = vmatpush1.bf16.msra.mxu0 %v246_v14 }
  0x1c   :  { %132 = vmatprep.subr.bf16.mxu0 %v247_v15 }
  0x1f   :  { %133 = vmatpush1.bf16.msra.mxu0 %v249_v16 }
  0x22   :  { %151 = vmatmul.mubr.bf16.vlgmr.msra.gmra.mrb[0].mxu0 %v21_v17 }
  0xf5   :  { %v152_v28 = vpop.f32.mrb[0].mxu0 }
  0xf6   :  { %v171_v30 = vmul.f32 %v164_v24, %v152_v28  ;;  %v154_v32 = vpop.f32.mrb[1].mxu0 }
  0xf7   :  { %v172_v33 = vmul.f32 %v168_v26, %v154_v32  ;;  %v156_v35 = vpop.f32.mrb[2].mxu0 }
  0xf8   :  { %v185_v36 = vadd.f32 %v178_v27, %v171_v30  ;;  %v157_v37 = vpop.f32.mrb[3].mxu0 }
  0xf9   :  { %v186_v38 = vadd.f32 %v182_v29, %v172_v33 }
  0xfa   :  { %v190_v39 = vadd.f32 %v188_v31, %v185_v36 }
  0xfb   :  { %v191_v40 = vadd.f32 %v189_v34, %v186_v38 }
  0xfc   :  { %v192_v41 = vmax.f32 %v190_v39, 0.0 }
  0xfd   :  { %v193_v42 = vmax.f32 %v191_v40, 0.0 }
  0xff   :  { %v224_v43 = vpack.c.bf16 %v193_v42, %v192_v41 }
 0x101   :  { %202 = vst [vmem:[%s349_s5] sm:$0xff] %v224_v43 }

// kernel: run.57
= control target key start
LH: loop header
LB: loop body
LE: loop exit
PB: predicated region body
PF: predicated region fallthrough
CT: control target
= control target key end

     0   :  { %v240_v1 = vmov 0   ;;  %v158_v18 = vlaneseq  ;;  %s326_s1 = inlined_call_operand.vmem [shape: bf16[128,256], index: 1, kind: input, shape index: {}]   ;;  %s327_s0 = inlined_call_operand.vmem [shape: bf16[8,128], index: 0, kind: input, shape index: {}]   ;;  %s328_s2 = inlined_call_operand.vmem [shape: f32[1,256], index: 2, kind: input, shape index: {}]   ;;  %s329_s3 = inlined_call_operand.vmem [shape: f32[1,256], index: 3, kind: input, shape index: {}]   ;;  %s330_s4 = inlined_call_operand.vmem [shape: bf16[8,256], index: 4, kind: output, shape index: {}]  }
   0x1   :  { %v216_v0 = vld [vmem:[%s326_s1 + $0x4] ss:$8 sps:$4 sm:$0xff]   ;;  %147 = vmatprep.mubr.bf16.mxu0 %v240_v1  ;;  %v218_v2 = vld [vmem:[%s326_s1] ss:$8 sps:$4 sm:$0xff]   ;;  %v219_v3 = vld [vmem:[%s326_s1 + $0x14] ss:$8 sps:$4 sm:$0xff]  }
   0x2   :  { %115 = vmatprep.subr.bf16.mxu0 %v216_v0  ;;  %v221_v4 = vld [vmem:[%s326_s1 + $0x10] ss:$8 sps:$4 sm:$0xff]   ;;  %v222_v5 = vld [vmem:[%s326_s1 + $0x24] ss:$8 sps:$4 sm:$0xff]   ;;  %v224_v6 = vld [vmem:[%s326_s1 + $0x20] ss:$8 sps:$4 sm:$0xff]  }
   0x3   :  { %116 = vmatpush1.bf16.msra.mxu0 %v218_v2  ;;  %v225_v7 = vld [vmem:[%s326_s1 + $0x34] ss:$8 sps:$4 sm:$0xff]   ;;  %v227_v8 = vld [vmem:[%s326_s1 + $0x30] ss:$8 sps:$4 sm:$0xff]   ;;  %v228_v9 = vld [vmem:[%s326_s1 + $0x44] ss:$8 sps:$4 sm:$0xff]  }
   0x4   :  { %117 = vmatprep.subr.bf16.mxu0 %v219_v3  ;;  %v230_v10 = vld [vmem:[%s326_s1 + $0x40] ss:$8 sps:$4 sm:$0xff]   ;;  %v231_v11 = vld [vmem:[%s326_s1 + $0x54] ss:$8 sps:$4 sm:$0xff]   ;;  %v233_v12 = vld [vmem:[%s326_s1 + $0x50] ss:$8 sps:$4 sm:$0xff]  }
   0x5   :  { %v234_v13 = vld [vmem:[%s326_s1 + $0x64] ss:$8 sps:$4 sm:$0xff]   ;;  %v236_v14 = vld [vmem:[%s326_s1 + $0x60] ss:$8 sps:$4 sm:$0xff]   ;;  %v237_v15 = vld [vmem:[%s326_s1 + $0x74] ss:$8 sps:$4 sm:$0xff]  }
   0x6   :  { %v239_v16 = vld [vmem:[%s326_s1 + $0x70] ss:$8 sps:$4 sm:$0xff]   ;;  %v18_v17 = vld [vmem:[%s327_s0] sm:$0xf]  ;;  %v159_v19 = vshrl.u32 %v158_v18, 7 }
   0x7   :  { %118 = vmatpush1.bf16.msra.mxu0 %v221_v4  ;;  %v156_v21 = vld [vmem:[%s328_s2] sm:$0x3] }
   0x8   :  { %119 = vmatprep.subr.bf16.mxu0 %v222_v5  ;;  %v160_v20 = vsub.s32 0, %v159_v19  ;;  %v164_v22 = vsub.s32 1, %v159_v19  ;;  %v170_v23 = vld [vmem:[%s329_s3] sm:$0x3] }
   0xa   :  { %v161_v24 = vrot.slane %v156_v21, %v160_v20  ;;  %v165_v25 = vrot.slane %v156_v21, %v164_v22  ;;  %v175_v26 = vrot.slane %v170_v23, %v160_v20  ;;  %v179_v28 = vrot.slane %v170_v23, %v164_v22 }
   0xb   :  { %120 = vmatpush1.bf16.msra.mxu0 %v224_v6 }
   0xc   :  { %121 = vmatprep.subr.bf16.mxu0 %v225_v7 }
   0xf   :  { %122 = vmatpush1.bf16.msra.mxu0 %v227_v8 }
  0x10   :  { %123 = vmatprep.subr.bf16.mxu0 %v228_v9 }
  0x13   :  { %124 = vmatpush1.bf16.msra.mxu0 %v230_v10 }
  0x14   :  { %125 = vmatprep.subr.bf16.mxu0 %v231_v11 }
  0x17   :  { %126 = vmatpush1.bf16.msra.mxu0 %v233_v12 }
  0x18   :  { %127 = vmatprep.subr.bf16.mxu0 %v234_v13 }
  0x1b   :  { %128 = vmatpush1.bf16.msra.mxu0 %v236_v14 }
  0x1c   :  { %129 = vmatprep.subr.bf16.mxu0 %v237_v15 }
  0x1f   :  { %130 = vmatpush1.bf16.msra.mxu0 %v239_v16 }
  0x22   :  { %148 = vmatmul.mubr.bf16.vlgmr.msra.gmra.mrb[0].mxu0 %v18_v17 }
  0xf5   :  { %v149_v27 = vpop.f32.mrb[0].mxu0 }
  0xf6   :  { %v168_v29 = vmul.f32 %v161_v24, %v149_v27  ;;  %v151_v30 = vpop.f32.mrb[1].mxu0 }
  0xf7   :  { %v169_v31 = vmul.f32 %v165_v25, %v151_v30  ;;  %v153_v32 = vpop.f32.mrb[2].mxu0 }
  0xf8   :  { %v182_v33 = vadd.f32 %v175_v26, %v168_v29  ;;  %v154_v34 = vpop.f32.mrb[3].mxu0 }
  0xf9   :  { %v183_v35 = vadd.f32 %v179_v28, %v169_v31 }
  0xfb   :  { %v214_v36 = vpack.c.bf16 %v183_v35, %v182_v33 }
  0xfd   :  { %192 = vst [vmem:[%s330_s4] sm:$0xff] %v214_v36 }

// kernel: run.59
= control target key start
LH: loop header
LB: loop body
LE: loop exit
PB: predicated region body
PF: predicated region fallthrough
CT: control target
= control target key end

     0   :  { %s362_s1 = inlined_call_operand.vmem [shape: bf16[256,128], index: 1, kind: input, shape index: {}]   ;;  %s363_s0 = inlined_call_operand.vmem [shape: bf16[8,256], index: 0, kind: input, shape index: {}]   ;;  %s364_s2 = inlined_call_operand.vmem [shape: f32[1,128], index: 2, kind: input, shape index: {}]   ;;  %s365_s3 = inlined_call_operand.vmem [shape: f32[1,128], index: 3, kind: input, shape index: {}]   ;;  %s366_s4 = inlined_call_operand.vmem [shape: bf16[8,128], index: 4, kind: output, shape index: {}]  }
   0x1   :  { %v259_v0 = vld [vmem:[%s362_s1 + $0x40] sm:$0xff]   ;;  %v261_v2 = vld [vmem:[%s362_s1 + $0x48] sm:$0xff]   ;;  %v263_v4 = vld [vmem:[%s362_s1 + $0x50] sm:$0xff]  }
   0x2   :  { %v260_v1 = vld [vmem:[%s362_s1] sm:$0xff]   ;;  %237 = vmatprep.subr.bf16.mxu0 %v259_v0  ;;  %v262_v3 = vld [vmem:[%s362_s1 + $0x8] sm:$0xff]   ;;  %v264_v5 = vld [vmem:[%s362_s1 + $0x10] sm:$0xff]  }
   0x3   :  { %238 = vmatpush3.bf16.msra.mxu0 %v260_v1  ;;  %v265_v6 = vld [vmem:[%s362_s1 + $0x58] sm:$0xff]   ;;  %v267_v8 = vld [vmem:[%s362_s1 + $0x60] sm:$0xff]   ;;  %v269_v10 = vld [vmem:[%s362_s1 + $0x68] sm:$0xff]  }
   0x4   :  { %239 = vmatprep.subr.bf16.mxu0 %v261_v2  ;;  %v266_v7 = vld [vmem:[%s362_s1 + $0x18] sm:$0xff]   ;;  %v268_v9 = vld [vmem:[%s362_s1 + $0x20] sm:$0xff]   ;;  %v270_v13 = vld [vmem:[%s362_s1 + $0x28] sm:$0xff]  }
   0x5   :  { %v18_v11 = vld [vmem:[%s363_s0] sm:$0xff]  ;;  %v271_v14 = vld [vmem:[%s362_s1 + $0x70] sm:$0xff]   ;;  %v273_v16 = vld [vmem:[%s362_s1 + $0x78] sm:$0xff]  }
   0x6   :  { %v218_v12 = vcombine.high %v18_v11, %v18_v11  ;;  %v272_v15 = vld [vmem:[%s362_s1 + $0x30] sm:$0xff]   ;;  %v274_v17 = vld [vmem:[%s362_s1 + $0x38] sm:$0xff]   ;;  %v217_v18 = vcombine.low %v18_v11, %v18_v11  ;;  %v235_v21 = vld [vmem:[%s364_s2] ss:$0 sm:$0xff] }
   0x7   :  { %240 = vmatpush3.bf16.msra.mxu0 %v262_v3  ;;  %v236_v24 = vld [vmem:[%s365_s3] ss:$0 sm:$0xff] }
   0x8   :  { %241 = vmatprep.subr.bf16.mxu0 %v263_v4  ;;  %186 = vmatprep.mubr.bf16.mxu0 %v218_v12 }
   0xb   :  { %242 = vmatpush3.bf16.msra.mxu0 %v264_v5 }
   0xc   :  { %243 = vmatprep.subr.bf16.mxu0 %v265_v6 }
   0xf   :  { %244 = vmatpush3.bf16.msra.mxu0 %v266_v7 }
  0x10   :  { %245 = vmatprep.subr.bf16.mxu0 %v267_v8 }
  0x13   :  { %246 = vmatpush3.bf16.msra.mxu0 %v268_v9 }
  0x14   :  { %247 = vmatprep.subr.bf16.mxu0 %v269_v10 }
  0x17   :  { %248 = vmatpush3.bf16.msra.mxu0 %v270_v13 }
  0x18   :  { %249 = vmatprep.subr.bf16.mxu0 %v271_v14 }
  0x1b   :  { %250 = vmatpush3.bf16.msra.mxu0 %v272_v15 }
  0x1c   :  { %251 = vmatprep.subr.bf16.mxu0 %v273_v16 }
  0x1f   :  { %252 = vmatpush3.bf16.msra.mxu0 %v274_v17 }
  0x22   :  { %187 = vmatmul.mubr.bf16.vlgmr.msra.gmra.mrb[0].mxu0 %v217_v18 }
  0xf5   :  { %v253_v19 = vpop.f32.mrb[0].mxu0 }
  0xf6   :  { %v254_v20 = vpop.f32.mrb[1].mxu0 }
  0xf7   :  { %v255_v22 = vadd.f32 %v254_v20, %v253_v19  ;;  %v256_v23 = vpop.f32.mrb[2].mxu0 }
  0xf8   :  { %v257_v25 = vpop.f32.mrb[3].mxu0 }
  0xf9   :  { %v201_v26 = vmul.f32 %v255_v22, %v235_v21 }
  0xfb   :  { %v209_v27 = vadd.f32 %v236_v24, %v201_v26 }
  0xfd   :  { %v210_v28 = vmax.f32 %v209_v27, 0.0 }
  0xff   :  { %v211_v29 = vpack.c.bf16 %v210_v28, %v210_v28 }
 0x101   :  { %212 = vst [vmem:[%s366_s4] sm:$0xf] %v211_v29 }

</bundles_post_ra>
